<compile_context>
chip_gen: v5e
topology: v5e:2x2
jax: 0.10.0
libtpu: 0.0.40
codegen_flags: <defaults>
</compile_context>

<pallas_src>
import jax
import jax.numpy as jnp
from jax.experimental import pallas as pl
from jax.experimental.pallas import tpu as pltpu

LEAKY_SLOPE = 0.01   # nn.LeakyReLU() default
BN_EPS = 1e-5        # nn.BatchNorm2d default


def _round_up(x, m):
    return (x + m - 1) // m * m


def _vmem_capacity_bytes():
    try:
        cap = getattr(pltpu.get_tpu_info(), "vmem_capacity_bytes", None)
        if cap:
            return int(cap)
    except Exception:
        pass
    return 64 * 1024 * 1024   # conservative fallback == v7x physical VMEM


_VMEM_CAPACITY = _vmem_capacity_bytes()
# v5e/v6e (128 MiB) -> ~85 MiB, v7x (64 MiB) -> ~42 MiB: always below physical.
_VMEM_LIMIT = min(int(_VMEM_CAPACITY * 2 // 3), 100 * 1024 * 1024)


def _pick_tile_m(k_pad, cb):
    """Largest M-tile that fits the generation's VMEM budget."""
    # Resident blocks: bf16 weight (x2 pipeline buffers) + stats / scale tiles.
    # TODO(synk): K-tile the weight for very large Cin*Cout layers where the
    # resident weight block alone approaches the VMEM limit.
    resident = 2 * (2 * k_pad * cb) + 4 * (8 * cb * 4)
    # Per-M-row bytes, worst of the two passes (double-buffered ins/outs plus
    # the in-kernel f32 temporaries).
    pass1_row = 4 * k_pad + 4 * cb + 4 * cb   # P(bf16 x2) + y out(bf16 x2) + f32 y
    pass2_row = 4 * cb + 8 * cb + 4 * cb      # y in(bf16 x2) + out(f32 x2) + f32 z
    row_bytes = max(pass1_row, pass2_row)
    avail = int(_VMEM_LIMIT * 0.8) - resident
    tm = max(avail, 0) // max(row_bytes, 1)
    return int(max(128, min(2048, (tm // 128) * 128)))


# ---------------------------------------------------------------------------
# Pass 1: parity matmul (bf16 in, f32 acc) + per-tile partial BN moments.
# ---------------------------------------------------------------------------
def _matmul_stats_kernel(p_ref, w_ref, y_ref, stats_ref):
    y = jnp.dot(p_ref[...], w_ref[...], preferred_element_type=jnp.float32)
    y_ref[...] = y.astype(y_ref.dtype)          # bf16 round trip between passes
    # Per-tile partial moments go to this tile's own output block, which keeps
    # the grid axis "parallel" (no shared accumulator / read-modify-write).
    stats_ref[...] = jnp.zeros_like(stats_ref)
    stats_ref[0:1, :] = jnp.sum(y, axis=0, keepdims=True)
    stats_ref[1:2, :] = jnp.sum(y * y, axis=0, keepdims=True)


# ---------------------------------------------------------------------------
# Pass 2: fused BatchNorm (per-channel scale/shift) + LeakyReLU.
# ---------------------------------------------------------------------------
def _bn_act_kernel(y_ref, st_ref, o_ref):
    z = y_ref[...].astype(jnp.float32) * st_ref[0:1, :] + st_ref[1:2, :]
    o_ref[...] = jnp.where(z > 0, z, LEAKY_SLOPE * z).astype(o_ref.dtype)


@jax.jit
def dec_block_forward(x, conv_w, conv_b, bn_gamma, bn_beta):
    """x: [N, Cin, H, W] NCHW; conv_w: [Cin, Cout, 3, 3] (PyTorch ConvTranspose2d
    layout).  Returns NCHW output [N, Cout, 2H, 2W].

    conv_b is accepted for API parity but unused: training-mode BatchNorm right
    after the conv cancels the bias exactly, so it is dropped.
    """
    del conv_b
    N, Cin, H, W = x.shape
    Cout = conv_w.shape[1]
    M0 = N * H * W
    K = 4 * Cin

    # --- parity-decomposed patches: [x(h,w), x(h,w+1), x(h+1,w), x(h+1,w+1)] ---
    xn = jnp.transpose(x, (0, 2, 3, 1))                       # NHWC
    zrow = jnp.zeros((N, 1, W, Cin), x.dtype)
    zcol = jnp.zeros((N, H, 1, Cin), x.dtype)
    x_h = jnp.concatenate([xn[:, 1:], zrow], axis=1)          # x[h+1, w]
    x_w = jnp.concatenate([xn[:, :, 1:], zcol], axis=2)       # x[h, w+1]
    x_hw = jnp.concatenate([x_h[:, :, 1:], zcol], axis=2)     # x[h+1, w+1]
    patches = jnp.concatenate([xn, x_w, x_h, x_hw], axis=-1).reshape(M0, K)
    # TODO(synk): build the three shifted taps inside the kernel from an x tile
    # with a one-row halo (manual DMA) to drop even this small input expansion.

    # --- block-structured weight: one matmul emits all four parity planes ---
    # ConvTranspose2d: y[2h,2w]     = x[h,w]@w11
    #                  y[2h,2w+1]   = x[h,w]@w12 + x[h,w+1]@w10
    #                  y[2h+1,2w]   = x[h,w]@w21 + x[h+1,w]@w01
    #                  y[2h+1,2w+1] = x[h,w]@w22 + x[h,w+1]@w20
    #                               + x[h+1,w]@w02 + x[h+1,w+1]@w00
    C_pad = _round_up(Cout, 128)
    K_pad = _round_up(K, 128)
    CB = 4 * C_pad                                            # [ee|eo|oe|oo] groups

    wf = conv_w.astype(jnp.float32)
    zb = jnp.zeros((Cin, Cout), jnp.float32)
    tap = lambda kh, kw: wf[:, :, kh, kw]                     # [Cin, Cout]
    col_ee = jnp.concatenate([tap(1, 1), zb, zb, zb], axis=0)
    col_eo = jnp.concatenate([tap(1, 2), tap(1, 0), zb, zb], axis=0)
    col_oe = jnp.concatenate([tap(2, 1), zb, tap(0, 1), zb], axis=0)
    col_oo = jnp.concatenate([tap(2, 2), tap(2, 0), tap(0, 2), tap(0, 0)], axis=0)
    padc = lambda m: jnp.pad(m, ((0, 0), (0, C_pad - Cout)))
    w_big = jnp.concatenate([padc(col_ee), padc(col_eo), padc(col_oe), padc(col_oo)],
                            axis=1)                           # [4*Cin, CB]
    w_big = jnp.pad(w_big, ((0, K_pad - K), (0, 0))).astype(jnp.bfloat16)

    TM = min(_pick_tile_m(K_pad, CB), _round_up(M0, 128))
    M_pad = _round_up(M0, TM)
    n_tiles = M_pad // TM

    patches_p = jnp.pad(patches, ((0, M_pad - M0), (0, K_pad - K))).astype(jnp.bfloat16)

    # ---- Pass 1: tiled parity matmul + per-tile partial moments ("parallel").
    y_bf16, stats = pl.pallas_call(
        _matmul_stats_kernel,
        out_shape=(jax.ShapeDtypeStruct((M_pad, CB), jnp.bfloat16),
                   jax.ShapeDtypeStruct((n_tiles * 8, CB), jnp.float32)),
        grid_spec=pltpu.PrefetchScalarGridSpec(
            num_scalar_prefetch=0,
            grid=(n_tiles,),
            in_specs=[pl.BlockSpec((TM, K_pad), lambda i: (i, 0)),
                      pl.BlockSpec((K_pad, CB), lambda i: (0, 0))],
            out_specs=[pl.BlockSpec((TM, CB), lambda i: (i, 0)),
                       pl.BlockSpec((8, CB), lambda i: (i, 0))]),
        compiler_params=pltpu.CompilerParams(
            dimension_semantics=("parallel",),    # per-tile stats -> both TCs on v7x
            vmem_limit_bytes=_VMEM_LIMIT),
    )(patches_p, w_big)

    # ---- Fold BatchNorm into a per-channel scale/shift (tiny XLA ops).
    # Padded rows/columns contribute exact zeros to both sums.
    sums = stats.reshape(n_tiles, 8, CB)[:, :2, :].sum(axis=0)        # [2, CB]
    s1 = sums[0].reshape(4, C_pad).sum(axis=0)                        # per-channel
    s2 = sums[1].reshape(4, C_pad).sum(axis=0)
    cnt = jnp.float32(4 * M0)                                         # N*(2H)*(2W)
    mean = s1 / cnt
    var = s2 / cnt - mean * mean      # single-pass moments; fine at bf16 tolerance
    gamma_p = jnp.pad(bn_gamma.astype(jnp.float32), (0, C_pad - Cout))
    beta_p = jnp.pad(bn_beta.astype(jnp.float32), (0, C_pad - Cout))
    scale = gamma_p * jax.lax.rsqrt(var + BN_EPS)
    shift = beta_p - mean * scale
    st = jnp.zeros((8, CB), jnp.float32)
    st = st.at[0].set(jnp.tile(scale, 4)).at[1].set(jnp.tile(shift, 4))

    # ---- Pass 2: fused scale/shift + LeakyReLU on lane-dense tiles.
    out_p = pl.pallas_call(
        _bn_act_kernel,
        out_shape=jax.ShapeDtypeStruct((M_pad, CB), jnp.float32),
        grid_spec=pltpu.PrefetchScalarGridSpec(
            num_scalar_prefetch=0,
            grid=(n_tiles,),
            in_specs=[pl.BlockSpec((TM, CB), lambda i: (i, 0)),
                      pl.BlockSpec((8, CB), lambda i: (0, 0))],
            out_specs=pl.BlockSpec((TM, CB), lambda i: (i, 0))),
        compiler_params=pltpu.CompilerParams(
            dimension_semantics=("parallel",),
            vmem_limit_bytes=_VMEM_LIMIT),
    )(y_bf16, st)

    # ---- Parity interleave + NHWC->NCHW as a single fused XLA copy.
    # TODO(synk): fold this into pass 2 (in-kernel channel-major store) so the
    # output leaves the kernel already in NCHW and this sweep disappears.
    y4 = out_p[:M0].reshape(N, H, W, 2, 2, C_pad)[..., :Cout]   # dims: n,h,w,dh,dw,c
    out = jnp.transpose(y4, (0, 5, 1, 3, 2, 4)).reshape(N, Cout, 2 * H, 2 * W)
    return out


def dec_block_reference(x, conv_w, conv_b, bn_gamma, bn_beta):
    """Pure-JAX f32 reference mirroring PyTorch semantics (training-mode BN)."""
    w_conv = jnp.transpose(conv_w, (1, 0, 2, 3))[:, :, ::-1, ::-1]
    y = jax.lax.conv_general_dilated(
        x, w_conv, window_strides=(1, 1), padding=((1, 2), (1, 2)),
        lhs_dilation=(2, 2), dimension_numbers=("NCHW", "OIHW", "NCHW"))
    y = y + conv_b[None, :, None, None]
    m = jnp.mean(y, axis=(0, 2, 3), keepdims=True)
    v = jnp.mean((y - m) ** 2, axis=(0, 2, 3), keepdims=True)
    y = bn_gamma[None, :, None, None] * (y - m) * jax.lax.rsqrt(v + BN_EPS) \
        + bn_beta[None, :, None, None]
    return jnp.where(y > 0, y, LEAKY_SLOPE * y)


if __name__ == "__main__":
    key = jax.random.PRNGKey(0)
    k_x, k_w, k_b, k_g, k_be = jax.random.split(key, 5)

    N, Cin, H, W = 2, 4, 16, 16
    Cout = 8

    x = jax.random.normal(k_x, (N, Cin, H, W), dtype=jnp.float32)
    # PyTorch ConvTranspose2d weight layout: [in_c, out_c, kh, kw]
    conv_w = 0.1 * jax.random.normal(k_w, (Cin, Cout, 3, 3), dtype=jnp.float32)
    conv_b = 0.1 * jax.random.normal(k_b, (Cout,), dtype=jnp.float32)
    bn_gamma = 1.0 + 0.1 * jax.random.normal(k_g, (Cout,), dtype=jnp.float32)
    bn_beta = 0.1 * jax.random.normal(k_be, (Cout,), dtype=jnp.float32)

    out = dec_block_forward(x, conv_w, conv_b, bn_gamma, bn_beta)
    out = jax.block_until_ready(out)

    ref = dec_block_reference(x, conv_w, conv_b, bn_gamma, bn_beta)
    assert out.shape == (N, Cout, 2 * H, 2 * W), out.shape
    # bf16 MXU operands / bf16 inter-pass y -> compare at bf16 tolerance.
    err = float(jnp.max(jnp.abs(out - ref)))
    assert jnp.allclose(out, ref, atol=3e-2, rtol=3e-2), err

    print("KERNEL_OK")
</pallas_src>

<mosaic_0001>
module attributes {stable_mosaic.version = 11 : i64} {
  func.func @_matmul_stats_kernel(%arg0: i32, %arg1: memref<512x128xbf16, #tpu.memory_space<vmem>>, %arg2: memref<128x512xbf16, #tpu.memory_space<vmem>>, %arg3: memref<512x512xbf16, #tpu.memory_space<vmem>>, %arg4: memref<8x512xf32, #tpu.memory_space<vmem>>) attributes {dimension_semantics = [#tpu.dimension_semantics<parallel>], iteration_bounds = array<i64: 1>, scalar_prefetch = 0 : i64, scratch_operands = 0 : i64, tpu.core_type = #tpu.core_type<tc>, window_params = [{transform_indices = @transform_0, window_bounds = array<i64: 512, 128>}, {pipeline_mode = #tpu.pipeline_mode<synchronous>, transform_indices = @transform_1, window_bounds = array<i64: 128, 512>}, {transform_indices = @transform_2, window_bounds = array<i64: 512, 512>}, {transform_indices = @transform_3, window_bounds = array<i64: 8, 512>}]} {
    %c0 = arith.constant 0 : index
    %c0_0 = arith.constant 0 : index
    %0 = vector.load %arg1[%c0, %c0_0] : memref<512x128xbf16, #tpu.memory_space<vmem>>, vector<512x128xbf16>
    %c0_1 = arith.constant 0 : index
    %c0_2 = arith.constant 0 : index
    %1 = vector.load %arg2[%c0_1, %c0_2] : memref<128x512xbf16, #tpu.memory_space<vmem>>, vector<128x512xbf16>
    %cst = arith.constant dense<0.000000e+00> : vector<512x512xf32>
    %2 = tpu.matmul %0, %1, %cst {dimension_numbers = #tpu.dot_dimension_numbers<[1], [0], [0], [1], [0, 0, 1, 1], [], []>} : vector<512x128xbf16>, vector<128x512xbf16>, vector<512x512xf32> -> vector<512x512xf32>
    %3 = arith.truncf %2 : vector<512x512xf32> to vector<512x512xbf16>
    %c0_3 = arith.constant 0 : index
    %c0_4 = arith.constant 0 : index
    %4 = vector.load %arg3[%c0_3, %c0_4] : memref<512x512xbf16, #tpu.memory_space<vmem>>, vector<512x512xbf16>
    tpu.vector_store %arg3[%c0_3, %c0_4], %3 {strides = array<i32>} : memref<512x512xbf16, #tpu.memory_space<vmem>>, vector<512x512xbf16>,
    %cst_5 = arith.constant 0.000000e+00 : f32
    %5 = vector.broadcast %cst_5 : f32 to vector<8x512xf32>
    %c0_6 = arith.constant 0 : index
    %c0_7 = arith.constant 0 : index
    %6 = vector.load %arg4[%c0_6, %c0_7] : memref<8x512xf32, #tpu.memory_space<vmem>>, vector<8x512xf32>
    tpu.vector_store %arg4[%c0_6, %c0_7], %5 {strides = array<i32>} : memref<8x512xf32, #tpu.memory_space<vmem>>, vector<8x512xf32>,
    %cst_8 = arith.constant dense<0.000000e+00> : vector<512xf32>
    %7 = vector.multi_reduction <add>, %2, %cst_8 [0] : vector<512x512xf32> to vector<512xf32>
    %8 = vector.shape_cast %7 : vector<512xf32> to vector<1x512xf32>
    %c0_9 = arith.constant 0 : index
    %c0_10 = arith.constant 0 : index
    %9 = vector.load %arg4[%c0_9, %c0_10] : memref<8x512xf32, #tpu.memory_space<vmem>>, vector<1x512xf32>
    tpu.vector_store %arg4[%c0_9, %c0_10], %8 {strides = array<i32>} : memref<8x512xf32, #tpu.memory_space<vmem>>, vector<1x512xf32>,
    %10 = arith.mulf %2, %2 : vector<512x512xf32>
    %cst_11 = arith.constant dense<0.000000e+00> : vector<512xf32>
    %11 = vector.multi_reduction <add>, %10, %cst_11 [0] : vector<512x512xf32> to vector<512xf32>
    %12 = vector.shape_cast %11 : vector<512xf32> to vector<1x512xf32>
    %c1 = arith.constant 1 : index
    %c0_12 = arith.constant 0 : index
    %13 = vector.load %arg4[%c1, %c0_12] : memref<8x512xf32, #tpu.memory_space<vmem>>, vector<1x512xf32>
    tpu.vector_store %arg4[%c1, %c0_12], %12 {strides = array<i32>} : memref<8x512xf32, #tpu.memory_space<vmem>>, vector<1x512xf32>,
    return
  }
  func.func @transform_0(%arg0: i32) -> (i32, i32) {
    %c0_i32 = arith.constant 0 : i32
    %c0_i32_0 = arith.constant 0 : i32
    return %arg0, %c0_i32 : i32, i32
  }
  func.func @transform_1(%arg0: i32) -> (i32, i32) {
    %c0_i32 = arith.constant 0 : i32
    %c0_i32_0 = arith.constant 0 : i32
    %c0_i32_1 = arith.constant 0 : i32
    return %c0_i32, %c0_i32_0 : i32, i32
  }
  func.func @transform_2(%arg0: i32) -> (i32, i32) {
    %c0_i32 = arith.constant 0 : i32
    %c0_i32_0 = arith.constant 0 : i32
    return %arg0, %c0_i32 : i32, i32
  }
  func.func @transform_3(%arg0: i32) -> (i32, i32) {
    %c0_i32 = arith.constant 0 : i32
    %c0_i32_0 = arith.constant 0 : i32
    return %arg0, %c0_i32 : i32, i32
  }
}

module attributes {stable_mosaic.version = 11 : i64} {
  func.func @_bn_act_kernel(%arg0: i32, %arg1: memref<512x512xbf16, #tpu.memory_space<vmem>>, %arg2: memref<8x512xf32, #tpu.memory_space<vmem>>, %arg3: memref<512x512xf32, #tpu.memory_space<vmem>>) attributes {dimension_semantics = [#tpu.dimension_semantics<parallel>], iteration_bounds = array<i64: 1>, scalar_prefetch = 0 : i64, scratch_operands = 0 : i64, tpu.core_type = #tpu.core_type<tc>, window_params = [{transform_indices = @transform_0, window_bounds = array<i64: 512, 512>}, {pipeline_mode = #tpu.pipeline_mode<synchronous>, transform_indices = @transform_1, window_bounds = array<i64: 8, 512>}, {transform_indices = @transform_2, window_bounds = array<i64: 512, 512>}]} {
    %c0 = arith.constant 0 : index
    %c0_0 = arith.constant 0 : index
    %0 = vector.load %arg1[%c0, %c0_0] : memref<512x512xbf16, #tpu.memory_space<vmem>>, vector<512x512xbf16>
    %1 = arith.extf %0 : vector<512x512xbf16> to vector<512x512xf32>
    %c0_1 = arith.constant 0 : index
    %c0_2 = arith.constant 0 : index
    %2 = vector.load %arg2[%c0_1, %c0_2] : memref<8x512xf32, #tpu.memory_space<vmem>>, vector<1x512xf32>
    %3 = vector.broadcast %2 : vector<1x512xf32> to vector<512x512xf32>
    %4 = arith.mulf %1, %3 : vector<512x512xf32>
    %c1 = arith.constant 1 : index
    %c0_3 = arith.constant 0 : index
    %5 = vector.load %arg2[%c1, %c0_3] : memref<8x512xf32, #tpu.memory_space<vmem>>, vector<1x512xf32>
    %6 = vector.broadcast %5 : vector<1x512xf32> to vector<512x512xf32>
    %7 = arith.addf %4, %6 : vector<512x512xf32>
    %cst = arith.constant 0.000000e+00 : f32
    %8 = vector.broadcast %cst : f32 to vector<512x512xf32>
    %9 = arith.cmpf ogt, %7, %8 : vector<512x512xf32>
    %cst_4 = arith.constant 0.00999999977 : f32
    %10 = vector.broadcast %cst_4 : f32 to vector<512x512xf32>
    %11 = arith.mulf %10, %7 : vector<512x512xf32>
    %12 = arith.select %9, %7, %11 : vector<512x512xi1>, vector<512x512xf32>
    %c0_5 = arith.constant 0 : index
    %c0_6 = arith.constant 0 : index
    %13 = vector.load %arg3[%c0_5, %c0_6] : memref<512x512xf32, #tpu.memory_space<vmem>>, vector<512x512xf32>
    tpu.vector_store %arg3[%c0_5, %c0_6], %12 {strides = array<i32>} : memref<512x512xf32, #tpu.memory_space<vmem>>, vector<512x512xf32>,
    return
  }
  func.func @transform_0(%arg0: i32) -> (i32, i32) {
    %c0_i32 = arith.constant 0 : i32
    %c0_i32_0 = arith.constant 0 : i32
    return %arg0, %c0_i32 : i32, i32
  }
  func.func @transform_1(%arg0: i32) -> (i32, i32) {
    %c0_i32 = arith.constant 0 : i32
    %c0_i32_0 = arith.constant 0 : i32
    %c0_i32_1 = arith.constant 0 : i32
    return %c0_i32, %c0_i32_0 : i32, i32
  }
  func.func @transform_2(%arg0: i32) -> (i32, i32) {
    %c0_i32 = arith.constant 0 : i32
    %c0_i32_0 = arith.constant 0 : i32
    return %arg0, %c0_i32 : i32, i32
  }
}

</mosaic_0001>

<bundles_post_ra>
// kernel: tile.18
= control target key start
LH: loop header
LB: loop body
LE: loop exit
PB: predicated region body
PF: predicated region fallthrough
CT: control target
= control target key end

     0   :  { %s22_s0 = inlined_call_operand.vmem [shape: f32[128], index: 0, kind: input, shape index: {}]   ;;  %s23_s1 = inlined_call_operand.vmem [shape: f32[4,128], index: 1, kind: output, shape index: {}]  }
   0x1   :  { %v4_v0 = vld [vmem:[%s22_s0] ss:$0 sm:$0xff] }
   0x2   :  { %5 = vst [vmem:[%s23_s1] sm:$0xf] %v4_v0 }

// kernel: dec_block_forward.2
= control target key start
LH: loop header
LB: loop body
LE: loop exit
PB: predicated region body
PF: predicated region fallthrough
CT: control target
= control target key end

     0   :  { %vm1680_vm0 = vcmask 1040384   ;;  %vm1682_vm1 = vcmask 1042434   ;;  %vm1684_vm2 = vcmask 1041408   ;;  %s3462_s1 = inlined_call_operand.vmem [shape: bf16[128,512], index: 1, kind: input, shape index: {}]   ;;  %s3463_s0 = inlined_call_operand.vmem [shape: bf16[512,128], index: 0, kind: input, shape index: {}]   ;;  %s3464_s2 = inlined_call_operand.vmem [shape: bf16[512,512], index: 2, kind: output, shape index: {0}]   ;;  %s3465_s3 = inlined_call_operand.vmem [shape: f32[8,512], index: 3, kind: output, shape index: {1}]  }
   0x1   :  { %v2489_v0 = vld [vmem:[%s3462_s1 + $0xe0] sm:$0xf]  ;;  %v2566_v1 = vld [vmem:[%s3462_s1 + $0xec] sm:$0xf0]  ;;  %v2564_v2 = vld [vmem:[%s3462_s1 + $0xe4] sm:$0xf] }
   0x2   :  { %v2490_v3 = vor.u32 %v2566_v1, %v2489_v0  ;;  %v2491_v4 = vld [vmem:[%s3462_s1 + $0xf0] sm:$0xf0]  ;;  %v2497_v5 = vld [vmem:[%s3462_s1 + $0xe8] sm:$0xf]  ;;  %v2567_v6 = vld [vmem:[%s3462_s1 + $0xf4] sm:$0xf0] }
   0x3   :  { %v2494_v7 = vor.u32 %v2564_v2, %v2491_v4  ;;  %v2498_v8 = vor.u32 %v2567_v6, %v2497_v5  ;;  %v2565_v9 = vld [vmem:[%s3462_s1 + $0xec] sm:$0xf]  ;;  %v2499_v10 = vld [vmem:[%s3462_s1 + $0xf8] sm:$0xf0]  ;;  %v2473_v11 = vld [vmem:[%s3462_s1 + $0xc0] sm:$0xf] }
   0x4   :  { %461 = vmatpush.bf16.msra.mxu0 %v2490_v3  ;;  %v2502_v12 = vor.u32 %v2565_v9, %v2499_v10  ;;  %v2562_v13 = vld [vmem:[%s3462_s1 + $0xcc] sm:$0xf0]  ;;  %v2560_v14 = vld [vmem:[%s3462_s1 + $0xc4] sm:$0xf]  ;;  %v2475_v15 = vld [vmem:[%s3462_s1 + $0xd0] sm:$0xf0] }
   0x5   :  { %630 = vmatpush.bf16.msra.mxu1 %v2494_v7  ;;  %799 = vmatpush.bf16.msra.mxu2 %v2498_v8  ;;  %v2474_v16 = vor.u32 %v2562_v13, %v2473_v11  ;;  %v2478_v17 = vor.u32 %v2560_v14, %v2475_v15  ;;  %v2481_v18 = vld [vmem:[%s3462_s1 + $0xc8] sm:$0xf]  ;;  %v2563_v19 = vld [vmem:[%s3462_s1 + $0xd4] sm:$0xf0]  ;;  %v2561_v20 = vld [vmem:[%s3462_s1 + $0xcc] sm:$0xf] }
   0x6   :  { %968 = vmatpush.bf16.msra.mxu3 %v2502_v12  ;;  %v2482_v21 = vor.u32 %v2563_v19, %v2481_v18  ;;  %v2483_v22 = vld [vmem:[%s3462_s1 + $0xd8] sm:$0xf0]  ;;  %v2457_v23 = vld [vmem:[%s3462_s1 + $0xa0] sm:$0xf]  ;;  %v2558_v24 = vld [vmem:[%s3462_s1 + $0xac] sm:$0xf0] }
   0x7   :  { %v2486_v25 = vor.u32 %v2561_v20, %v2483_v22  ;;  %v2556_v26 = vld [vmem:[%s3462_s1 + $0xa4] sm:$0xf]  ;;  %v2459_v27 = vld [vmem:[%s3462_s1 + $0xb0] sm:$0xf0]  ;;  %v2465_v28 = vld [vmem:[%s3462_s1 + $0xa8] sm:$0xf]  ;;  %v2458_v29 = vor.u32 %v2558_v24, %v2457_v23 }
   0x8   :  { %462 = vmatpush.bf16.msra.mxu0 %v2474_v16  ;;  %v2559_v30 = vld [vmem:[%s3462_s1 + $0xb4] sm:$0xf0]  ;;  %v2557_v31 = vld [vmem:[%s3462_s1 + $0xac] sm:$0xf]  ;;  %v2467_v32 = vld [vmem:[%s3462_s1 + $0xb8] sm:$0xf0]  ;;  %v2462_v33 = vor.u32 %v2556_v26, %v2459_v27 }
   0x9   :  { %631 = vmatpush.bf16.msra.mxu1 %v2478_v17  ;;  %800 = vmatpush.bf16.msra.mxu2 %v2482_v21  ;;  %v2466_v34 = vor.u32 %v2559_v30, %v2465_v28  ;;  %v2441_v35 = vld [vmem:[%s3462_s1 + $0x80] sm:$0xf]  ;;  %v2554_v36 = vld [vmem:[%s3462_s1 + $0x8c] sm:$0xf0]  ;;  %v2552_v37 = vld [vmem:[%s3462_s1 + $0x84] sm:$0xf]  ;;  %v2470_v38 = vor.u32 %v2557_v31, %v2467_v32 }
   0xa   :  { %969 = vmatpush.bf16.msra.mxu3 %v2486_v25  ;;  %v2443_v39 = vld [vmem:[%s3462_s1 + $0x90] sm:$0xf0]  ;;  %v2449_v40 = vld [vmem:[%s3462_s1 + $0x88] sm:$0xf]  ;;  %v2555_v41 = vld [vmem:[%s3462_s1 + $0x94] sm:$0xf0]  ;;  %v2442_v44 = vor.u32 %v2554_v36, %v2441_v35 }
   0xb   :  { %v2553_v42 = vld [vmem:[%s3462_s1 + $0x8c] sm:$0xf]  ;;  %v2451_v43 = vld [vmem:[%s3462_s1 + $0x98] sm:$0xf0]  ;;  %v2446_v45 = vor.u32 %v2552_v37, %v2443_v39  ;;  %v2450_v46 = vor.u32 %v2555_v41, %v2449_v40  ;;  %v2425_v47 = vld [vmem:[%s3462_s1 + $0x60] sm:$0xf] }
   0xc   :  { %463 = vmatpush.bf16.msra.mxu0 %v2458_v29  ;;  %v2550_v48 = vld [vmem:[%s3462_s1 + $0x6c] sm:$0xf0]  ;;  %v2548_v49 = vld [vmem:[%s3462_s1 + $0x64] sm:$0xf]  ;;  %v2454_v50 = vor.u32 %v2553_v42, %v2451_v43  ;;  %v2427_v51 = vld [vmem:[%s3462_s1 + $0x70] sm:$0xf0] }
   0xd   :  { %632 = vmatpush.bf16.msra.mxu1 %v2462_v33  ;;  %801 = vmatpush.bf16.msra.mxu2 %v2466_v34  ;;  %v2433_v52 = vld [vmem:[%s3462_s1 + $0x68] sm:$0xf]  ;;  %v2551_v53 = vld [vmem:[%s3462_s1 + $0x74] sm:$0xf0]  ;;  %v2549_v54 = vld [vmem:[%s3462_s1 + $0x6c] sm:$0xf]  ;;  %v2426_v56 = vor.u32 %v2550_v48, %v2425_v47  ;;  %v2430_v57 = vor.u32 %v2548_v49, %v2427_v51 }
   0xe   :  { %970 = vmatpush.bf16.msra.mxu3 %v2470_v38  ;;  %v2435_v55 = vld [vmem:[%s3462_s1 + $0x78] sm:$0xf0]  ;;  %v2434_v58 = vor.u32 %v2551_v53, %v2433_v52  ;;  %v2409_v59 = vld [vmem:[%s3462_s1 + $0x40] sm:$0xf]  ;;  %v2546_v60 = vld [vmem:[%s3462_s1 + $0x4c] sm:$0xf0] }
   0xf   :  { %v2544_v61 = vld [vmem:[%s3462_s1 + $0x44] sm:$0xf]  ;;  %v2438_v62 = vor.u32 %v2549_v54, %v2435_v55  ;;  %v2411_v63 = vld [vmem:[%s3462_s1 + $0x50] sm:$0xf0]  ;;  %v2417_v0 = vld [vmem:[%s3462_s1 + $0x48] sm:$0xf]  ;;  %v2410_v4 = vor.u32 %v2546_v60, %v2409_v59 }
  0x10   :  { %464 = vmatpush.bf16.msra.mxu0 %v2442_v44  ;;  %v2547_v1 = vld [vmem:[%s3462_s1 + $0x54] sm:$0xf0]  ;;  %v2545_v2 = vld [vmem:[%s3462_s1 + $0x4c] sm:$0xf]  ;;  %v2419_v3 = vld [vmem:[%s3462_s1 + $0x58] sm:$0xf0]  ;;  %v2414_v5 = vor.u32 %v2544_v61, %v2411_v63 }
  0x11   :  { %633 = vmatpush.bf16.msra.mxu1 %v2446_v45  ;;  %802 = vmatpush.bf16.msra.mxu2 %v2450_v46  ;;  %v2418_v6 = vor.u32 %v2547_v1, %v2417_v0  ;;  %v2393_v7 = vld [vmem:[%s3462_s1 + $0x20] sm:$0xf]  ;;  %v2542_v8 = vld [vmem:[%s3462_s1 + $0x2c] sm:$0xf0]  ;;  %v2540_v9 = vld [vmem:[%s3462_s1 + $0x24] sm:$0xf]  ;;  %v2422_v10 = vor.u32 %v2545_v2, %v2419_v3 }
  0x12   :  { %971 = vmatpush.bf16.msra.mxu3 %v2454_v50  ;;  %v2395_v11 = vld [vmem:[%s3462_s1 + $0x30] sm:$0xf0]  ;;  %v2401_v12 = vld [vmem:[%s3462_s1 + $0x28] sm:$0xf]  ;;  %v2543_v13 = vld [vmem:[%s3462_s1 + $0x34] sm:$0xf0]  ;;  %v2394_v16 = vor.u32 %v2542_v8, %v2393_v7 }
  0x13   :  { %v2541_v14 = vld [vmem:[%s3462_s1 + $0x2c] sm:$0xf]  ;;  %v2403_v15 = vld [vmem:[%s3462_s1 + $0x38] sm:$0xf0]  ;;  %v2398_v17 = vor.u32 %v2540_v9, %v2395_v11  ;;  %v2402_v18 = vor.u32 %v2543_v13, %v2401_v12  ;;  %v2377_v19 = vld [vmem:[%s3462_s1] sm:$0xf] }
  0x14   :  { %465 = vmatpush.bf16.msra.mxu0 %v2426_v56  ;;  %v2538_v20 = vld [vmem:[%s3462_s1 + $0xc] sm:$0xf0]  ;;  %v2536_v21 = vld [vmem:[%s3462_s1 + $0x4] sm:$0xf]  ;;  %v2406_v22 = vor.u32 %v2541_v14, %v2403_v15  ;;  %v2379_v23 = vld [vmem:[%s3462_s1 + $0x10] sm:$0xf0] }
  0x15   :  { %634 = vmatpush.bf16.msra.mxu1 %v2430_v57  ;;  %803 = vmatpush.bf16.msra.mxu2 %v2434_v58  ;;  %v2385_v24 = vld [vmem:[%s3462_s1 + $0x8] sm:$0xf]  ;;  %v2539_v25 = vld [vmem:[%s3462_s1 + $0x14] sm:$0xf0]  ;;  %v2537_v26 = vld [vmem:[%s3462_s1 + $0xc] sm:$0xf]  ;;  %v2378_v28 = vor.u32 %v2538_v20, %v2377_v19  ;;  %v2382_v29 = vor.u32 %v2536_v21, %v2379_v23 }
  0x16   :  { %972 = vmatpush.bf16.msra.mxu3 %v2438_v62  ;;  %v2387_v27 = vld [vmem:[%s3462_s1 + $0x18] sm:$0xf0]  ;;  %v2386_v30 = vor.u32 %v2539_v25, %v2385_v24  ;;  %v2504_v32 = vld [vmem:[%s3463_s0] sm:$0xff]  ;;  %v2505_v33 = vld [vmem:[%s3463_s0 + $0x8] sm:$0xff] }
  0x17   :  { %v2390_v31 = vor.u32 %v2537_v26, %v2387_v27  ;;  %v2506_v34 = vld [vmem:[%s3463_s0 + $0x10] sm:$0xff]  ;;  %v2507_v35 = vld [vmem:[%s3463_s0 + $0x18] sm:$0xff]  ;;  %v2508_v36 = vld [vmem:[%s3463_s0 + $0x20] sm:$0xff] }
  0x18   :  { %466 = vmatpush.bf16.msra.mxu0 %v2410_v4  ;;  %v2509_v37 = vld [vmem:[%s3463_s0 + $0x28] sm:$0xff]  ;;  %v2510_v38 = vld [vmem:[%s3463_s0 + $0x30] sm:$0xff]  ;;  %v2511_v39 = vld [vmem:[%s3463_s0 + $0x38] sm:$0xff] }
  0x19   :  { %635 = vmatpush.bf16.msra.mxu1 %v2414_v5  ;;  %804 = vmatpush.bf16.msra.mxu2 %v2418_v6  ;;  %v2512_v40 = vld [vmem:[%s3463_s0 + $0x40] sm:$0xff]  ;;  %v2513_v59 = vld [vmem:[%s3463_s0 + $0x48] sm:$0xff] }
  0x1a   :  { %973 = vmatpush.bf16.msra.mxu3 %v2422_v10 }
  0x1c   :  { %467 = vmatpush.bf16.msra.mxu0 %v2394_v16 }
  0x1d   :  { %636 = vmatpush.bf16.msra.mxu1 %v2398_v17  ;;  %805 = vmatpush.bf16.msra.mxu2 %v2402_v18 }
  0x1e   :  { %974 = vmatpush.bf16.msra.mxu3 %v2406_v22 }
  0x20   :  { %468 = vmatpush.bf16.msra.mxu0 %v2378_v28 }
  0x21   :  { %637 = vmatpush.bf16.msra.mxu1 %v2382_v29  ;;  %806 = vmatpush.bf16.msra.mxu2 %v2386_v30 }
  0x22   :  { %975 = vmatpush.bf16.msra.mxu3 %v2390_v31 }
  0x23   :  { %469 = vmatmul.bf16.vlgmr.msra.gmra.mxu0 %v2504_v32 }
  0x24   :  { %638 = vmatmul.bf16.vlgmr.msra.gmra.mxu1 %v2504_v32  ;;  %807 = vmatmul.bf16.vlgmr.msra.gmra.mxu2 %v2504_v32 }
  0x25   :  { %976 = vmatmul.bf16.vlgmr.msra.gmra.mxu3 %v2504_v32 }
  0x33   :  { %474 = vmatmul.bf16.gmra.mxu0 %v2505_v33 }
  0x34   :  { %643 = vmatmul.bf16.gmra.mxu1 %v2505_v33  ;;  %812 = vmatmul.bf16.gmra.mxu2 %v2505_v33 }
  0x35   :  { %981 = vmatmul.bf16.gmra.mxu3 %v2505_v33 }
  0x43   :  { %479 = vmatmul.bf16.gmra.mxu0 %v2506_v34 }
  0x44   :  { %648 = vmatmul.bf16.gmra.mxu1 %v2506_v34  ;;  %817 = vmatmul.bf16.gmra.mxu2 %v2506_v34 }
  0x45   :  { %986 = vmatmul.bf16.gmra.mxu3 %v2506_v34  ;;  %v2514_v34 = vld [vmem:[%s3463_s0 + $0x50] sm:$0xff] }
  0x53   :  { %484 = vmatmul.bf16.gmra.mxu0 %v2507_v35 }
  0x54   :  { %653 = vmatmul.bf16.gmra.mxu1 %v2507_v35  ;;  %822 = vmatmul.bf16.gmra.mxu2 %v2507_v35 }
  0x55   :  { %991 = vmatmul.bf16.gmra.mxu3 %v2507_v35 }
  0x63   :  { %489 = vmatmul.bf16.gmra.mxu0 %v2508_v36 }
  0x64   :  { %658 = vmatmul.bf16.gmra.mxu1 %v2508_v36  ;;  %827 = vmatmul.bf16.gmra.mxu2 %v2508_v36 }
  0x65   :  { %996 = vmatmul.bf16.gmra.mxu3 %v2508_v36 }
  0x73   :  { %494 = vmatmul.bf16.gmra.mxu0 %v2509_v37 }
  0x74   :  { %663 = vmatmul.bf16.gmra.mxu1 %v2509_v37  ;;  %832 = vmatmul.bf16.gmra.mxu2 %v2509_v37 }
  0x75   :  { %1001 = vmatmul.bf16.gmra.mxu3 %v2509_v37 }
  0x83   :  { %499 = vmatmul.bf16.gmra.mxu0 %v2510_v38 }
  0x84   :  { %668 = vmatmul.bf16.gmra.mxu1 %v2510_v38  ;;  %837 = vmatmul.bf16.gmra.mxu2 %v2510_v38 }
  0x85   :  { %1006 = vmatmul.bf16.gmra.mxu3 %v2510_v38 }
  0x93   :  { %504 = vmatmul.bf16.gmra.mxu0 %v2511_v39 }
  0x94   :  { %673 = vmatmul.bf16.gmra.mxu1 %v2511_v39  ;;  %842 = vmatmul.bf16.gmra.mxu2 %v2511_v39 }
  0x95   :  { %1011 = vmatmul.bf16.gmra.mxu3 %v2511_v39 }
  0xa0   :  { %v470_v41 = vpop.f32.mrf.mxu0 }
  0xa1   :  { %v639_v42 = vpop.f32.mrf.mxu1  ;;  %v1693_v44 = vmul.f32 %v470_v41, %v470_v41 }
  0xa2   :  { %v1137_v43 = vpack.c.bf16 %v639_v42, %v470_v41  ;;  %v1694_v52 = vmul.f32 %v639_v42, %v639_v42 }
  0xa3   :  { %509 = vmatmul.bf16.gmra.mxu0 %v2512_v40 }
  0xa4   :  { %1265 = vst [vmem:[%s3464_s2] sm:$0xff] %v1137_v43  ;;  %678 = vmatmul.bf16.gmra.mxu1 %v2512_v40  ;;  %847 = vmatmul.bf16.gmra.mxu2 %v2512_v40 }
  0xa5   :  { %1016 = vmatmul.bf16.gmra.mxu3 %v2512_v40 }
  0xa7   :  { %v808_v45 = vpop.f32.mrf.mxu2 }
  0xa8   :  { %v977_v46 = vpop.f32.mrf.mxu3  ;;  %v472_v47 = vpop.f32.mrf.mxu0  ;;  %v1695_v60 = vmul.f32 %v808_v45, %v808_v45 }
  0xa9   :  { %v1138_v48 = vpack.c.bf16 %v977_v46, %v808_v45  ;;  %v1397_v49 = vadd.f32 %v472_v47, %v470_v41  ;;  %v1697_v50 = vmul.f32 %v472_v47, %v472_v47  ;;  %v641_v51 = vpop.f32.mrf.mxu1  ;;  %v1696_v61 = vmul.f32 %v977_v46, %v977_v46 }
  0xaa   :  { %v1139_v53 = vpack.c.bf16 %v641_v51, %v472_v47  ;;  %v1466_v54 = vadd.f32 %v641_v51, %v639_v42  ;;  %v1698_v55 = vmul.f32 %v641_v51, %v641_v51 }
  0xab   :  { %1266 = vst [vmem:[%s3464_s2 + $0x8] sm:$0xff] %v1138_v48  ;;  %v1949_v56 = vadd.f32 %v1697_v50, %v1693_v44 }
  0xac   :  { %1267 = vst [vmem:[%s3464_s2 + $0x10] sm:$0xff] %v1139_v53  ;;  %v2018_v57 = vadd.f32 %v1698_v55, %v1694_v52 }
  0xaf   :  { %v810_v58 = vpop.f32.mrf.mxu2 }
  0xb0   :  { %v1535_v62 = vadd.f32 %v810_v58, %v808_v45  ;;  %v1699_v63 = vmul.f32 %v810_v58, %v810_v58  ;;  %v979_v0 = vpop.f32.mrf.mxu3  ;;  %v475_v1 = vpop.f32.mrf.mxu0 }
  0xb1   :  { %v1140_v2 = vpack.c.bf16 %v979_v0, %v810_v58  ;;  %v1604_v3 = vadd.f32 %v979_v0, %v977_v46  ;;  %v1700_v4 = vmul.f32 %v979_v0, %v979_v0  ;;  %v1398_v5 = vadd.f32 %v1397_v49, %v475_v1  ;;  %v644_v6 = vpop.f32.mrf.mxu1 }
  0xb2   :  { %v2087_v7 = vadd.f32 %v1699_v63, %v1695_v60  ;;  %v1701_v8 = vmul.f32 %v475_v1, %v475_v1  ;;  %v1141_v9 = vpack.c.bf16 %v644_v6, %v475_v1  ;;  %v1467_v10 = vadd.f32 %v1466_v54, %v644_v6 }
  0xb3   :  { %1268 = vst [vmem:[%s3464_s2 + $0x18] sm:$0xff] %v1140_v2  ;;  %v2156_v11 = vadd.f32 %v1700_v4, %v1696_v61  ;;  %v1702_v12 = vmul.f32 %v644_v6, %v644_v6  ;;  %514 = vmatmul.bf16.gmra.mxu0 %v2513_v59 }
  0xb4   :  { %v1950_v13 = vadd.f32 %v1949_v56, %v1701_v8  ;;  %1269 = vst [vmem:[%s3464_s2 + $0x20] sm:$0xff] %v1141_v9  ;;  %683 = vmatmul.bf16.gmra.mxu1 %v2513_v59  ;;  %852 = vmatmul.bf16.gmra.mxu2 %v2513_v59 }
  0xb5   :  { %v2019_v14 = vadd.f32 %v2018_v57, %v1702_v12  ;;  %1021 = vmatmul.bf16.gmra.mxu3 %v2513_v59 }
  0xb7   :  { %v813_v15 = vpop.f32.mrf.mxu2 }
  0xb8   :  { %v1536_v16 = vadd.f32 %v1535_v62, %v813_v15  ;;  %v1703_v17 = vmul.f32 %v813_v15, %v813_v15  ;;  %v982_v18 = vpop.f32.mrf.mxu3  ;;  %v477_v19 = vpop.f32.mrf.mxu0 }
  0xb9   :  { %v1142_v20 = vpack.c.bf16 %v982_v18, %v813_v15  ;;  %v1605_v21 = vadd.f32 %v1604_v3, %v982_v18  ;;  %v1704_v22 = vmul.f32 %v982_v18, %v982_v18  ;;  %v1399_v23 = vadd.f32 %v1398_v5, %v477_v19  ;;  %v646_v24 = vpop.f32.mrf.mxu1 }
  0xba   :  { %v2088_v25 = vadd.f32 %v2087_v7, %v1703_v17  ;;  %v1705_v26 = vmul.f32 %v477_v19, %v477_v19  ;;  %v1143_v27 = vpack.c.bf16 %v646_v24, %v477_v19  ;;  %v1468_v28 = vadd.f32 %v1467_v10, %v646_v24  ;;  %v2515_v7 = vld [vmem:[%s3463_s0 + $0x58] sm:$0xff] }
  0xbb   :  { %1270 = vst [vmem:[%s3464_s2 + $0x28] sm:$0xff] %v1142_v20  ;;  %v2157_v29 = vadd.f32 %v2156_v11, %v1704_v22  ;;  %v1706_v30 = vmul.f32 %v646_v24, %v646_v24 }
  0xbc   :  { %v1951_v31 = vadd.f32 %v1950_v13, %v1705_v26  ;;  %1271 = vst [vmem:[%s3464_s2 + $0x30] sm:$0xff] %v1143_v27 }
  0xbd   :  { %v2020_v32 = vadd.f32 %v2019_v14, %v1706_v30 }
  0xbf   :  { %v815_v33 = vpop.f32.mrf.mxu2 }
  0xc0   :  { %v1537_v35 = vadd.f32 %v1536_v16, %v815_v33  ;;  %v1707_v36 = vmul.f32 %v815_v33, %v815_v33  ;;  %v984_v37 = vpop.f32.mrf.mxu3  ;;  %v480_v38 = vpop.f32.mrf.mxu0 }
  0xc1   :  { %v1144_v39 = vpack.c.bf16 %v984_v37, %v815_v33  ;;  %v1606_v40 = vadd.f32 %v1605_v21, %v984_v37  ;;  %v1708_v41 = vmul.f32 %v984_v37, %v984_v37  ;;  %v1400_v42 = vadd.f32 %v1399_v23, %v480_v38  ;;  %v649_v43 = vpop.f32.mrf.mxu1 }
  0xc2   :  { %v2089_v44 = vadd.f32 %v2088_v25, %v1707_v36  ;;  %v1709_v45 = vmul.f32 %v480_v38, %v480_v38  ;;  %v1145_v46 = vpack.c.bf16 %v649_v43, %v480_v38  ;;  %v1469_v47 = vadd.f32 %v1468_v28, %v649_v43 }
  0xc3   :  { %1272 = vst [vmem:[%s3464_s2 + $0x38] sm:$0xff] %v1144_v39  ;;  %v2158_v48 = vadd.f32 %v2157_v29, %v1708_v41  ;;  %v1710_v49 = vmul.f32 %v649_v43, %v649_v43  ;;  %519 = vmatmul.bf16.gmra.mxu0 %v2514_v34 }
  0xc4   :  { %v1952_v50 = vadd.f32 %v1951_v31, %v1709_v45  ;;  %1273 = vst [vmem:[%s3464_s2 + $0x40] sm:$0xff] %v1145_v46  ;;  %688 = vmatmul.bf16.gmra.mxu1 %v2514_v34  ;;  %857 = vmatmul.bf16.gmra.mxu2 %v2514_v34 }
  0xc5   :  { %v2021_v51 = vadd.f32 %v2020_v32, %v1710_v49  ;;  %1026 = vmatmul.bf16.gmra.mxu3 %v2514_v34 }
  0xc7   :  { %v818_v52 = vpop.f32.mrf.mxu2 }
  0xc8   :  { %v1538_v53 = vadd.f32 %v1537_v35, %v818_v52  ;;  %v1711_v54 = vmul.f32 %v818_v52, %v818_v52  ;;  %v987_v55 = vpop.f32.mrf.mxu3  ;;  %v482_v56 = vpop.f32.mrf.mxu0 }
  0xc9   :  { %v1146_v57 = vpack.c.bf16 %v987_v55, %v818_v52  ;;  %v1607_v58 = vadd.f32 %v1606_v40, %v987_v55  ;;  %v1712_v59 = vmul.f32 %v987_v55, %v987_v55  ;;  %v1401_v60 = vadd.f32 %v1400_v42, %v482_v56  ;;  %v651_v61 = vpop.f32.mrf.mxu1 }
  0xca   :  { %v2090_v62 = vadd.f32 %v2089_v44, %v1711_v54  ;;  %v1713_v63 = vmul.f32 %v482_v56, %v482_v56  ;;  %v1147_v0 = vpack.c.bf16 %v651_v61, %v482_v56  ;;  %v1470_v1 = vadd.f32 %v1469_v47, %v651_v61  ;;  %v2516_v44 = vld [vmem:[%s3463_s0 + $0x60] sm:$0xff] }
  0xcb   :  { %1274 = vst [vmem:[%s3464_s2 + $0x48] sm:$0xff] %v1146_v57  ;;  %v2159_v2 = vadd.f32 %v2158_v48, %v1712_v59  ;;  %v1714_v3 = vmul.f32 %v651_v61, %v651_v61 }
  0xcc   :  { %v1953_v4 = vadd.f32 %v1952_v50, %v1713_v63  ;;  %1275 = vst [vmem:[%s3464_s2 + $0x50] sm:$0xff] %v1147_v0 }
  0xcd   :  { %v2022_v5 = vadd.f32 %v2021_v51, %v1714_v3 }
  0xcf   :  { %v820_v6 = vpop.f32.mrf.mxu2 }
  0xd0   :  { %v1539_v8 = vadd.f32 %v1538_v53, %v820_v6  ;;  %v1715_v9 = vmul.f32 %v820_v6, %v820_v6  ;;  %v989_v10 = vpop.f32.mrf.mxu3  ;;  %v485_v11 = vpop.f32.mrf.mxu0 }
  0xd1   :  { %v1148_v12 = vpack.c.bf16 %v989_v10, %v820_v6  ;;  %v1608_v13 = vadd.f32 %v1607_v58, %v989_v10  ;;  %v1716_v14 = vmul.f32 %v989_v10, %v989_v10  ;;  %v1402_v15 = vadd.f32 %v1401_v60, %v485_v11  ;;  %v654_v16 = vpop.f32.mrf.mxu1 }
  0xd2   :  { %v2091_v17 = vadd.f32 %v2090_v62, %v1715_v9  ;;  %v1717_v18 = vmul.f32 %v485_v11, %v485_v11  ;;  %v1149_v19 = vpack.c.bf16 %v654_v16, %v485_v11  ;;  %v1471_v20 = vadd.f32 %v1470_v1, %v654_v16 }
  0xd3   :  { %1276 = vst [vmem:[%s3464_s2 + $0x58] sm:$0xff] %v1148_v12  ;;  %v2160_v21 = vadd.f32 %v2159_v2, %v1716_v14  ;;  %v1718_v22 = vmul.f32 %v654_v16, %v654_v16  ;;  %524 = vmatmul.bf16.gmra.mxu0 %v2515_v7 }
  0xd4   :  { %v1954_v23 = vadd.f32 %v1953_v4, %v1717_v18  ;;  %1277 = vst [vmem:[%s3464_s2 + $0x60] sm:$0xff] %v1149_v19  ;;  %693 = vmatmul.bf16.gmra.mxu1 %v2515_v7  ;;  %862 = vmatmul.bf16.gmra.mxu2 %v2515_v7 }
  0xd5   :  { %v2023_v24 = vadd.f32 %v2022_v5, %v1718_v22  ;;  %1031 = vmatmul.bf16.gmra.mxu3 %v2515_v7 }
  0xd7   :  { %v823_v25 = vpop.f32.mrf.mxu2 }
  0xd8   :  { %v1540_v26 = vadd.f32 %v1539_v8, %v823_v25  ;;  %v1719_v27 = vmul.f32 %v823_v25, %v823_v25  ;;  %v992_v28 = vpop.f32.mrf.mxu3  ;;  %v487_v29 = vpop.f32.mrf.mxu0 }
  0xd9   :  { %v1150_v30 = vpack.c.bf16 %v992_v28, %v823_v25  ;;  %v1609_v31 = vadd.f32 %v1608_v13, %v992_v28  ;;  %v1720_v32 = vmul.f32 %v992_v28, %v992_v28  ;;  %v1403_v33 = vadd.f32 %v1402_v15, %v487_v29  ;;  %v656_v34 = vpop.f32.mrf.mxu1 }
  0xda   :  { %v2092_v35 = vadd.f32 %v2091_v17, %v1719_v27  ;;  %v1721_v36 = vmul.f32 %v487_v29, %v487_v29  ;;  %v1151_v37 = vpack.c.bf16 %v656_v34, %v487_v29  ;;  %v1472_v38 = vadd.f32 %v1471_v20, %v656_v34  ;;  %v2517_v17 = vld [vmem:[%s3463_s0 + $0x68] sm:$0xff] }
  0xdb   :  { %1278 = vst [vmem:[%s3464_s2 + $0x68] sm:$0xff] %v1150_v30  ;;  %v2161_v39 = vadd.f32 %v2160_v21, %v1720_v32  ;;  %v1722_v40 = vmul.f32 %v656_v34, %v656_v34 }
  0xdc   :  { %v1955_v41 = vadd.f32 %v1954_v23, %v1721_v36  ;;  %1279 = vst [vmem:[%s3464_s2 + $0x70] sm:$0xff] %v1151_v37 }
  0xdd   :  { %v2024_v42 = vadd.f32 %v2023_v24, %v1722_v40 }
  0xdf   :  { %v825_v43 = vpop.f32.mrf.mxu2 }
  0xe0   :  { %v1541_v45 = vadd.f32 %v1540_v26, %v825_v43  ;;  %v1723_v46 = vmul.f32 %v825_v43, %v825_v43  ;;  %v994_v47 = vpop.f32.mrf.mxu3  ;;  %v490_v48 = vpop.f32.mrf.mxu0 }
  0xe1   :  { %v1152_v49 = vpack.c.bf16 %v994_v47, %v825_v43  ;;  %v1610_v50 = vadd.f32 %v1609_v31, %v994_v47  ;;  %v1724_v51 = vmul.f32 %v994_v47, %v994_v47  ;;  %v1404_v52 = vadd.f32 %v1403_v33, %v490_v48  ;;  %v659_v53 = vpop.f32.mrf.mxu1 }
  0xe2   :  { %v2093_v54 = vadd.f32 %v2092_v35, %v1723_v46  ;;  %v1725_v55 = vmul.f32 %v490_v48, %v490_v48  ;;  %v1153_v56 = vpack.c.bf16 %v659_v53, %v490_v48  ;;  %v1473_v57 = vadd.f32 %v1472_v38, %v659_v53 }
  0xe3   :  { %1280 = vst [vmem:[%s3464_s2 + $0x78] sm:$0xff] %v1152_v49  ;;  %v2162_v58 = vadd.f32 %v2161_v39, %v1724_v51  ;;  %v1726_v59 = vmul.f32 %v659_v53, %v659_v53  ;;  %529 = vmatmul.bf16.gmra.mxu0 %v2516_v44 }
  0xe4   :  { %v1956_v60 = vadd.f32 %v1955_v41, %v1725_v55  ;;  %1281 = vst [vmem:[%s3464_s2 + $0x80] sm:$0xff] %v1153_v56  ;;  %698 = vmatmul.bf16.gmra.mxu1 %v2516_v44  ;;  %867 = vmatmul.bf16.gmra.mxu2 %v2516_v44 }
  0xe5   :  { %v2025_v61 = vadd.f32 %v2024_v42, %v1726_v59  ;;  %1036 = vmatmul.bf16.gmra.mxu3 %v2516_v44 }
  0xe7   :  { %v828_v62 = vpop.f32.mrf.mxu2 }
  0xe8   :  { %v1542_v63 = vadd.f32 %v1541_v45, %v828_v62  ;;  %v1727_v0 = vmul.f32 %v828_v62, %v828_v62  ;;  %v997_v1 = vpop.f32.mrf.mxu3  ;;  %v492_v2 = vpop.f32.mrf.mxu0 }
  0xe9   :  { %v1154_v3 = vpack.c.bf16 %v997_v1, %v828_v62  ;;  %v1611_v4 = vadd.f32 %v1610_v50, %v997_v1  ;;  %v1728_v5 = vmul.f32 %v997_v1, %v997_v1  ;;  %v1405_v6 = vadd.f32 %v1404_v52, %v492_v2  ;;  %v661_v7 = vpop.f32.mrf.mxu1 }
  0xea   :  { %v2094_v8 = vadd.f32 %v2093_v54, %v1727_v0  ;;  %v1729_v9 = vmul.f32 %v492_v2, %v492_v2  ;;  %v1155_v10 = vpack.c.bf16 %v661_v7, %v492_v2  ;;  %v1474_v11 = vadd.f32 %v1473_v57, %v661_v7  ;;  %v2518_v54 = vld [vmem:[%s3463_s0 + $0x70] sm:$0xff] }
  0xeb   :  { %1282 = vst [vmem:[%s3464_s2 + $0x88] sm:$0xff] %v1154_v3  ;;  %v2163_v12 = vadd.f32 %v2162_v58, %v1728_v5  ;;  %v1730_v13 = vmul.f32 %v661_v7, %v661_v7 }
  0xec   :  { %v1957_v14 = vadd.f32 %v1956_v60, %v1729_v9  ;;  %1283 = vst [vmem:[%s3464_s2 + $0x90] sm:$0xff] %v1155_v10 }
  0xed   :  { %v2026_v15 = vadd.f32 %v2025_v61, %v1730_v13 }
  0xef   :  { %v830_v16 = vpop.f32.mrf.mxu2 }
  0xf0   :  { %v1543_v18 = vadd.f32 %v1542_v63, %v830_v16  ;;  %v1731_v19 = vmul.f32 %v830_v16, %v830_v16  ;;  %v999_v20 = vpop.f32.mrf.mxu3  ;;  %v495_v21 = vpop.f32.mrf.mxu0 }
  0xf1   :  { %v1156_v22 = vpack.c.bf16 %v999_v20, %v830_v16  ;;  %v1612_v23 = vadd.f32 %v1611_v4, %v999_v20  ;;  %v1732_v24 = vmul.f32 %v999_v20, %v999_v20  ;;  %v1406_v25 = vadd.f32 %v1405_v6, %v495_v21  ;;  %v664_v26 = vpop.f32.mrf.mxu1 }
  0xf2   :  { %v2095_v27 = vadd.f32 %v2094_v8, %v1731_v19  ;;  %v1733_v28 = vmul.f32 %v495_v21, %v495_v21  ;;  %v1157_v29 = vpack.c.bf16 %v664_v26, %v495_v21  ;;  %v1475_v30 = vadd.f32 %v1474_v11, %v664_v26 }
  0xf3   :  { %1284 = vst [vmem:[%s3464_s2 + $0x98] sm:$0xff] %v1156_v22  ;;  %v2164_v31 = vadd.f32 %v2163_v12, %v1732_v24  ;;  %v1734_v32 = vmul.f32 %v664_v26, %v664_v26  ;;  %534 = vmatmul.bf16.gmra.mxu0 %v2517_v17 }
  0xf4   :  { %v1958_v33 = vadd.f32 %v1957_v14, %v1733_v28  ;;  %1285 = vst [vmem:[%s3464_s2 + $0xa0] sm:$0xff] %v1157_v29  ;;  %703 = vmatmul.bf16.gmra.mxu1 %v2517_v17  ;;  %872 = vmatmul.bf16.gmra.mxu2 %v2517_v17 }
  0xf5   :  { %v2027_v34 = vadd.f32 %v2026_v15, %v1734_v32  ;;  %1041 = vmatmul.bf16.gmra.mxu3 %v2517_v17 }
  0xf7   :  { %v833_v35 = vpop.f32.mrf.mxu2 }
  0xf8   :  { %v1544_v36 = vadd.f32 %v1543_v18, %v833_v35  ;;  %v1735_v37 = vmul.f32 %v833_v35, %v833_v35  ;;  %v1002_v38 = vpop.f32.mrf.mxu3  ;;  %v497_v39 = vpop.f32.mrf.mxu0 }
  0xf9   :  { %v1158_v40 = vpack.c.bf16 %v1002_v38, %v833_v35  ;;  %v1613_v41 = vadd.f32 %v1612_v23, %v1002_v38  ;;  %v1736_v42 = vmul.f32 %v1002_v38, %v1002_v38  ;;  %v1407_v43 = vadd.f32 %v1406_v25, %v497_v39  ;;  %v666_v44 = vpop.f32.mrf.mxu1 }
  0xfa   :  { %v2096_v45 = vadd.f32 %v2095_v27, %v1735_v37  ;;  %v1737_v46 = vmul.f32 %v497_v39, %v497_v39  ;;  %v1159_v47 = vpack.c.bf16 %v666_v44, %v497_v39  ;;  %v1476_v48 = vadd.f32 %v1475_v30, %v666_v44  ;;  %v2519_v27 = vld [vmem:[%s3463_s0 + $0x78] sm:$0xff] }
  0xfb   :  { %1286 = vst [vmem:[%s3464_s2 + $0xa8] sm:$0xff] %v1158_v40  ;;  %v2165_v49 = vadd.f32 %v2164_v31, %v1736_v42  ;;  %v1738_v50 = vmul.f32 %v666_v44, %v666_v44 }
  0xfc   :  { %v1959_v51 = vadd.f32 %v1958_v33, %v1737_v46  ;;  %1287 = vst [vmem:[%s3464_s2 + $0xb0] sm:$0xff] %v1159_v47 }
  0xfd   :  { %v2028_v52 = vadd.f32 %v2027_v34, %v1738_v50 }
  0xff   :  { %v835_v53 = vpop.f32.mrf.mxu2 }
 0x100   :  { %v1545_v55 = vadd.f32 %v1544_v36, %v835_v53  ;;  %v1739_v56 = vmul.f32 %v835_v53, %v835_v53  ;;  %v1004_v57 = vpop.f32.mrf.mxu3  ;;  %v500_v58 = vpop.f32.mrf.mxu0 }
 0x101   :  { %v1160_v59 = vpack.c.bf16 %v1004_v57, %v835_v53  ;;  %v1614_v60 = vadd.f32 %v1613_v41, %v1004_v57  ;;  %v1740_v61 = vmul.f32 %v1004_v57, %v1004_v57  ;;  %v1408_v62 = vadd.f32 %v1407_v43, %v500_v58  ;;  %v669_v63 = vpop.f32.mrf.mxu1 }
 0x102   :  { %v2097_v0 = vadd.f32 %v2096_v45, %v1739_v56  ;;  %v1741_v1 = vmul.f32 %v500_v58, %v500_v58  ;;  %v1161_v2 = vpack.c.bf16 %v669_v63, %v500_v58  ;;  %v1477_v3 = vadd.f32 %v1476_v48, %v669_v63 }
 0x103   :  { %1288 = vst [vmem:[%s3464_s2 + $0xb8] sm:$0xff] %v1160_v59  ;;  %v2166_v4 = vadd.f32 %v2165_v49, %v1740_v61  ;;  %v1742_v5 = vmul.f32 %v669_v63, %v669_v63  ;;  %539 = vmatmul.bf16.gmra.mxu0 %v2518_v54 }
 0x104   :  { %v1960_v6 = vadd.f32 %v1959_v51, %v1741_v1  ;;  %1289 = vst [vmem:[%s3464_s2 + $0xc0] sm:$0xff] %v1161_v2  ;;  %708 = vmatmul.bf16.gmra.mxu1 %v2518_v54  ;;  %877 = vmatmul.bf16.gmra.mxu2 %v2518_v54 }
 0x105   :  { %v2029_v7 = vadd.f32 %v2028_v52, %v1742_v5  ;;  %1046 = vmatmul.bf16.gmra.mxu3 %v2518_v54 }
 0x107   :  { %v838_v8 = vpop.f32.mrf.mxu2 }
 0x108   :  { %v1546_v9 = vadd.f32 %v1545_v55, %v838_v8  ;;  %v1743_v10 = vmul.f32 %v838_v8, %v838_v8  ;;  %v1007_v11 = vpop.f32.mrf.mxu3  ;;  %v502_v12 = vpop.f32.mrf.mxu0 }
 0x109   :  { %v1162_v13 = vpack.c.bf16 %v1007_v11, %v838_v8  ;;  %v1615_v14 = vadd.f32 %v1614_v60, %v1007_v11  ;;  %v1744_v15 = vmul.f32 %v1007_v11, %v1007_v11  ;;  %v1409_v16 = vadd.f32 %v1408_v62, %v502_v12  ;;  %v671_v17 = vpop.f32.mrf.mxu1 }
 0x10a   :  { %v2098_v18 = vadd.f32 %v2097_v0, %v1743_v10  ;;  %v1745_v19 = vmul.f32 %v502_v12, %v502_v12  ;;  %v1163_v20 = vpack.c.bf16 %v671_v17, %v502_v12  ;;  %v1478_v21 = vadd.f32 %v1477_v3, %v671_v17  ;;  %v2520_v0 = vld [vmem:[%s3463_s0 + $0x80] sm:$0xff] }
 0x10b   :  { %1290 = vst [vmem:[%s3464_s2 + $0xc8] sm:$0xff] %v1162_v13  ;;  %v2167_v22 = vadd.f32 %v2166_v4, %v1744_v15  ;;  %v1746_v23 = vmul.f32 %v671_v17, %v671_v17 }
 0x10c   :  { %v1961_v24 = vadd.f32 %v1960_v6, %v1745_v19  ;;  %1291 = vst [vmem:[%s3464_s2 + $0xd0] sm:$0xff] %v1163_v20 }
 0x10d   :  { %v2030_v25 = vadd.f32 %v2029_v7, %v1746_v23 }
 0x10f   :  { %v840_v26 = vpop.f32.mrf.mxu2 }
 0x110   :  { %v1547_v28 = vadd.f32 %v1546_v9, %v840_v26  ;;  %v1747_v29 = vmul.f32 %v840_v26, %v840_v26  ;;  %v1009_v30 = vpop.f32.mrf.mxu3  ;;  %v505_v31 = vpop.f32.mrf.mxu0 }
 0x111   :  { %v1164_v32 = vpack.c.bf16 %v1009_v30, %v840_v26  ;;  %v1616_v33 = vadd.f32 %v1615_v14, %v1009_v30  ;;  %v1748_v34 = vmul.f32 %v1009_v30, %v1009_v30  ;;  %v1410_v35 = vadd.f32 %v1409_v16, %v505_v31  ;;  %v674_v36 = vpop.f32.mrf.mxu1 }
 0x112   :  { %v2099_v37 = vadd.f32 %v2098_v18, %v1747_v29  ;;  %v1749_v38 = vmul.f32 %v505_v31, %v505_v31  ;;  %v1165_v39 = vpack.c.bf16 %v674_v36, %v505_v31  ;;  %v1479_v40 = vadd.f32 %v1478_v21, %v674_v36 }
 0x113   :  { %1292 = vst [vmem:[%s3464_s2 + $0xd8] sm:$0xff] %v1164_v32  ;;  %v2168_v41 = vadd.f32 %v2167_v22, %v1748_v34  ;;  %v1750_v42 = vmul.f32 %v674_v36, %v674_v36  ;;  %544 = vmatmul.bf16.gmra.mxu0 %v2519_v27 }
 0x114   :  { %v1962_v43 = vadd.f32 %v1961_v24, %v1749_v38  ;;  %1293 = vst [vmem:[%s3464_s2 + $0xe0] sm:$0xff] %v1165_v39  ;;  %713 = vmatmul.bf16.gmra.mxu1 %v2519_v27  ;;  %882 = vmatmul.bf16.gmra.mxu2 %v2519_v27 }
 0x115   :  { %v2031_v44 = vadd.f32 %v2030_v25, %v1750_v42  ;;  %1051 = vmatmul.bf16.gmra.mxu3 %v2519_v27 }
 0x117   :  { %v843_v45 = vpop.f32.mrf.mxu2 }
 0x118   :  { %v1548_v46 = vadd.f32 %v1547_v28, %v843_v45  ;;  %v1751_v47 = vmul.f32 %v843_v45, %v843_v45  ;;  %v1012_v48 = vpop.f32.mrf.mxu3  ;;  %v507_v49 = vpop.f32.mrf.mxu0 }
 0x119   :  { %v1166_v50 = vpack.c.bf16 %v1012_v48, %v843_v45  ;;  %v1617_v51 = vadd.f32 %v1616_v33, %v1012_v48  ;;  %v1752_v52 = vmul.f32 %v1012_v48, %v1012_v48  ;;  %v1411_v53 = vadd.f32 %v1410_v35, %v507_v49  ;;  %v676_v54 = vpop.f32.mrf.mxu1 }
 0x11a   :  { %v2100_v55 = vadd.f32 %v2099_v37, %v1751_v47  ;;  %v1753_v56 = vmul.f32 %v507_v49, %v507_v49  ;;  %v1167_v57 = vpack.c.bf16 %v676_v54, %v507_v49  ;;  %v1480_v58 = vadd.f32 %v1479_v40, %v676_v54  ;;  %v2521_v37 = vld [vmem:[%s3463_s0 + $0x88] sm:$0xff] }
 0x11b   :  { %1294 = vst [vmem:[%s3464_s2 + $0xe8] sm:$0xff] %v1166_v50  ;;  %v2169_v59 = vadd.f32 %v2168_v41, %v1752_v52  ;;  %v1754_v60 = vmul.f32 %v676_v54, %v676_v54 }
 0x11c   :  { %v1963_v61 = vadd.f32 %v1962_v43, %v1753_v56  ;;  %1295 = vst [vmem:[%s3464_s2 + $0xf0] sm:$0xff] %v1167_v57 }
 0x11d   :  { %v2032_v62 = vadd.f32 %v2031_v44, %v1754_v60 }
 0x11f   :  { %v845_v63 = vpop.f32.mrf.mxu2 }
 0x120   :  { %v1549_v1 = vadd.f32 %v1548_v46, %v845_v63  ;;  %v1755_v2 = vmul.f32 %v845_v63, %v845_v63  ;;  %v1014_v3 = vpop.f32.mrf.mxu3  ;;  %v510_v4 = vpop.f32.mrf.mxu0 }
 0x121   :  { %v1168_v5 = vpack.c.bf16 %v1014_v3, %v845_v63  ;;  %v1618_v6 = vadd.f32 %v1617_v51, %v1014_v3  ;;  %v1756_v7 = vmul.f32 %v1014_v3, %v1014_v3  ;;  %v1412_v8 = vadd.f32 %v1411_v53, %v510_v4  ;;  %v679_v9 = vpop.f32.mrf.mxu1 }
 0x122   :  { %v2101_v10 = vadd.f32 %v2100_v55, %v1755_v2  ;;  %v1757_v11 = vmul.f32 %v510_v4, %v510_v4  ;;  %v1169_v12 = vpack.c.bf16 %v679_v9, %v510_v4  ;;  %v1481_v13 = vadd.f32 %v1480_v58, %v679_v9 }
 0x123   :  { %1296 = vst [vmem:[%s3464_s2 + $0xf8] sm:$0xff] %v1168_v5  ;;  %v2170_v14 = vadd.f32 %v2169_v59, %v1756_v7  ;;  %v1758_v15 = vmul.f32 %v679_v9, %v679_v9  ;;  %549 = vmatmul.bf16.gmra.mxu0 %v2520_v0 }
 0x124   :  { %v1964_v16 = vadd.f32 %v1963_v61, %v1757_v11  ;;  %1297 = vst [vmem:[%s3464_s2 + $0x100] sm:$0xff] %v1169_v12  ;;  %718 = vmatmul.bf16.gmra.mxu1 %v2520_v0  ;;  %887 = vmatmul.bf16.gmra.mxu2 %v2520_v0 }
 0x125   :  { %v2033_v17 = vadd.f32 %v2032_v62, %v1758_v15  ;;  %1056 = vmatmul.bf16.gmra.mxu3 %v2520_v0 }
 0x127   :  { %v848_v18 = vpop.f32.mrf.mxu2 }
 0x128   :  { %v1550_v19 = vadd.f32 %v1549_v1, %v848_v18  ;;  %v1759_v20 = vmul.f32 %v848_v18, %v848_v18  ;;  %v1017_v21 = vpop.f32.mrf.mxu3  ;;  %v512_v22 = vpop.f32.mrf.mxu0 }
 0x129   :  { %v1170_v23 = vpack.c.bf16 %v1017_v21, %v848_v18  ;;  %v1619_v24 = vadd.f32 %v1618_v6, %v1017_v21  ;;  %v1760_v25 = vmul.f32 %v1017_v21, %v1017_v21  ;;  %v1413_v26 = vadd.f32 %v1412_v8, %v512_v22  ;;  %v681_v27 = vpop.f32.mrf.mxu1 }
 0x12a   :  { %v2102_v28 = vadd.f32 %v2101_v10, %v1759_v20  ;;  %v1761_v29 = vmul.f32 %v512_v22, %v512_v22  ;;  %v1171_v30 = vpack.c.bf16 %v681_v27, %v512_v22  ;;  %v1482_v31 = vadd.f32 %v1481_v13, %v681_v27  ;;  %v2522_v10 = vld [vmem:[%s3463_s0 + $0x90] sm:$0xff] }
 0x12b   :  { %1298 = vst [vmem:[%s3464_s2 + $0x108] sm:$0xff] %v1170_v23  ;;  %v2171_v32 = vadd.f32 %v2170_v14, %v1760_v25  ;;  %v1762_v33 = vmul.f32 %v681_v27, %v681_v27 }
 0x12c   :  { %v1965_v34 = vadd.f32 %v1964_v16, %v1761_v29  ;;  %1299 = vst [vmem:[%s3464_s2 + $0x110] sm:$0xff] %v1171_v30 }
 0x12d   :  { %v2034_v35 = vadd.f32 %v2033_v17, %v1762_v33 }
 0x12f   :  { %v850_v36 = vpop.f32.mrf.mxu2 }
 0x130   :  { %v1551_v38 = vadd.f32 %v1550_v19, %v850_v36  ;;  %v1763_v39 = vmul.f32 %v850_v36, %v850_v36  ;;  %v1019_v40 = vpop.f32.mrf.mxu3  ;;  %v515_v41 = vpop.f32.mrf.mxu0 }
 0x131   :  { %v1172_v42 = vpack.c.bf16 %v1019_v40, %v850_v36  ;;  %v1620_v43 = vadd.f32 %v1619_v24, %v1019_v40  ;;  %v1764_v44 = vmul.f32 %v1019_v40, %v1019_v40  ;;  %v1414_v45 = vadd.f32 %v1413_v26, %v515_v41  ;;  %v684_v46 = vpop.f32.mrf.mxu1 }
 0x132   :  { %v2103_v47 = vadd.f32 %v2102_v28, %v1763_v39  ;;  %v1765_v48 = vmul.f32 %v515_v41, %v515_v41  ;;  %v1173_v49 = vpack.c.bf16 %v684_v46, %v515_v41  ;;  %v1483_v50 = vadd.f32 %v1482_v31, %v684_v46 }
 0x133   :  { %1300 = vst [vmem:[%s3464_s2 + $0x118] sm:$0xff] %v1172_v42  ;;  %v2172_v51 = vadd.f32 %v2171_v32, %v1764_v44  ;;  %v1766_v52 = vmul.f32 %v684_v46, %v684_v46  ;;  %554 = vmatmul.bf16.gmra.mxu0 %v2521_v37 }
 0x134   :  { %v1966_v53 = vadd.f32 %v1965_v34, %v1765_v48  ;;  %1301 = vst [vmem:[%s3464_s2 + $0x120] sm:$0xff] %v1173_v49  ;;  %723 = vmatmul.bf16.gmra.mxu1 %v2521_v37  ;;  %892 = vmatmul.bf16.gmra.mxu2 %v2521_v37 }
 0x135   :  { %v2035_v54 = vadd.f32 %v2034_v35, %v1766_v52  ;;  %1061 = vmatmul.bf16.gmra.mxu3 %v2521_v37 }
 0x137   :  { %v853_v55 = vpop.f32.mrf.mxu2 }
 0x138   :  { %v1552_v56 = vadd.f32 %v1551_v38, %v853_v55  ;;  %v1767_v57 = vmul.f32 %v853_v55, %v853_v55  ;;  %v1022_v58 = vpop.f32.mrf.mxu3  ;;  %v517_v59 = vpop.f32.mrf.mxu0 }
 0x139   :  { %v1174_v60 = vpack.c.bf16 %v1022_v58, %v853_v55  ;;  %v1621_v61 = vadd.f32 %v1620_v43, %v1022_v58  ;;  %v1768_v62 = vmul.f32 %v1022_v58, %v1022_v58  ;;  %v1415_v63 = vadd.f32 %v1414_v45, %v517_v59  ;;  %v686_v0 = vpop.f32.mrf.mxu1 }
 0x13a   :  { %v2104_v1 = vadd.f32 %v2103_v47, %v1767_v57  ;;  %v1769_v2 = vmul.f32 %v517_v59, %v517_v59  ;;  %v1175_v3 = vpack.c.bf16 %v686_v0, %v517_v59  ;;  %v1484_v4 = vadd.f32 %v1483_v50, %v686_v0  ;;  %v2523_v47 = vld [vmem:[%s3463_s0 + $0x98] sm:$0xff] }
 0x13b   :  { %1302 = vst [vmem:[%s3464_s2 + $0x128] sm:$0xff] %v1174_v60  ;;  %v2173_v5 = vadd.f32 %v2172_v51, %v1768_v62  ;;  %v1770_v6 = vmul.f32 %v686_v0, %v686_v0 }
 0x13c   :  { %v1967_v7 = vadd.f32 %v1966_v53, %v1769_v2  ;;  %1303 = vst [vmem:[%s3464_s2 + $0x130] sm:$0xff] %v1175_v3 }
 0x13d   :  { %v2036_v8 = vadd.f32 %v2035_v54, %v1770_v6 }
 0x13f   :  { %v855_v9 = vpop.f32.mrf.mxu2 }
 0x140   :  { %v1553_v11 = vadd.f32 %v1552_v56, %v855_v9  ;;  %v1771_v12 = vmul.f32 %v855_v9, %v855_v9  ;;  %v1024_v13 = vpop.f32.mrf.mxu3  ;;  %v520_v14 = vpop.f32.mrf.mxu0 }
 0x141   :  { %v1176_v15 = vpack.c.bf16 %v1024_v13, %v855_v9  ;;  %v1622_v16 = vadd.f32 %v1621_v61, %v1024_v13  ;;  %v1772_v17 = vmul.f32 %v1024_v13, %v1024_v13  ;;  %v1416_v18 = vadd.f32 %v1415_v63, %v520_v14  ;;  %v689_v19 = vpop.f32.mrf.mxu1 }
 0x142   :  { %v2105_v20 = vadd.f32 %v2104_v1, %v1771_v12  ;;  %v1773_v21 = vmul.f32 %v520_v14, %v520_v14  ;;  %v1177_v22 = vpack.c.bf16 %v689_v19, %v520_v14  ;;  %v1485_v23 = vadd.f32 %v1484_v4, %v689_v19 }
 0x143   :  { %1304 = vst [vmem:[%s3464_s2 + $0x138] sm:$0xff] %v1176_v15  ;;  %v2174_v24 = vadd.f32 %v2173_v5, %v1772_v17  ;;  %v1774_v25 = vmul.f32 %v689_v19, %v689_v19  ;;  %559 = vmatmul.bf16.gmra.mxu0 %v2522_v10 }
 0x144   :  { %v1968_v26 = vadd.f32 %v1967_v7, %v1773_v21  ;;  %1305 = vst [vmem:[%s3464_s2 + $0x140] sm:$0xff] %v1177_v22  ;;  %728 = vmatmul.bf16.gmra.mxu1 %v2522_v10  ;;  %897 = vmatmul.bf16.gmra.mxu2 %v2522_v10 }
 0x145   :  { %v2037_v27 = vadd.f32 %v2036_v8, %v1774_v25  ;;  %1066 = vmatmul.bf16.gmra.mxu3 %v2522_v10 }
 0x147   :  { %v858_v28 = vpop.f32.mrf.mxu2 }
 0x148   :  { %v1554_v29 = vadd.f32 %v1553_v11, %v858_v28  ;;  %v1775_v30 = vmul.f32 %v858_v28, %v858_v28  ;;  %v1027_v31 = vpop.f32.mrf.mxu3  ;;  %v522_v32 = vpop.f32.mrf.mxu0 }
 0x149   :  { %v1178_v33 = vpack.c.bf16 %v1027_v31, %v858_v28  ;;  %v1623_v34 = vadd.f32 %v1622_v16, %v1027_v31  ;;  %v1776_v35 = vmul.f32 %v1027_v31, %v1027_v31  ;;  %v1417_v36 = vadd.f32 %v1416_v18, %v522_v32  ;;  %v691_v37 = vpop.f32.mrf.mxu1 }
 0x14a   :  { %v2106_v38 = vadd.f32 %v2105_v20, %v1775_v30  ;;  %v1777_v39 = vmul.f32 %v522_v32, %v522_v32  ;;  %v1179_v40 = vpack.c.bf16 %v691_v37, %v522_v32  ;;  %v1486_v41 = vadd.f32 %v1485_v23, %v691_v37  ;;  %v2524_v20 = vld [vmem:[%s3463_s0 + $0xa0] sm:$0xff] }
 0x14b   :  { %1306 = vst [vmem:[%s3464_s2 + $0x148] sm:$0xff] %v1178_v33  ;;  %v2175_v42 = vadd.f32 %v2174_v24, %v1776_v35  ;;  %v1778_v43 = vmul.f32 %v691_v37, %v691_v37 }
 0x14c   :  { %v1969_v44 = vadd.f32 %v1968_v26, %v1777_v39  ;;  %1307 = vst [vmem:[%s3464_s2 + $0x150] sm:$0xff] %v1179_v40 }
 0x14d   :  { %v2038_v45 = vadd.f32 %v2037_v27, %v1778_v43 }
 0x14f   :  { %v860_v46 = vpop.f32.mrf.mxu2 }
 0x150   :  { %v1555_v48 = vadd.f32 %v1554_v29, %v860_v46  ;;  %v1779_v49 = vmul.f32 %v860_v46, %v860_v46  ;;  %v1029_v50 = vpop.f32.mrf.mxu3  ;;  %v525_v51 = vpop.f32.mrf.mxu0 }
 0x151   :  { %v1180_v52 = vpack.c.bf16 %v1029_v50, %v860_v46  ;;  %v1624_v53 = vadd.f32 %v1623_v34, %v1029_v50  ;;  %v1780_v54 = vmul.f32 %v1029_v50, %v1029_v50  ;;  %v1418_v55 = vadd.f32 %v1417_v36, %v525_v51  ;;  %v694_v56 = vpop.f32.mrf.mxu1 }
 0x152   :  { %v2107_v57 = vadd.f32 %v2106_v38, %v1779_v49  ;;  %v1781_v58 = vmul.f32 %v525_v51, %v525_v51  ;;  %v1181_v59 = vpack.c.bf16 %v694_v56, %v525_v51  ;;  %v1487_v60 = vadd.f32 %v1486_v41, %v694_v56 }
 0x153   :  { %1308 = vst [vmem:[%s3464_s2 + $0x158] sm:$0xff] %v1180_v52  ;;  %v2176_v61 = vadd.f32 %v2175_v42, %v1780_v54  ;;  %v1782_v62 = vmul.f32 %v694_v56, %v694_v56  ;;  %564 = vmatmul.bf16.gmra.mxu0 %v2523_v47 }
 0x154   :  { %v1970_v63 = vadd.f32 %v1969_v44, %v1781_v58  ;;  %1309 = vst [vmem:[%s3464_s2 + $0x160] sm:$0xff] %v1181_v59  ;;  %733 = vmatmul.bf16.gmra.mxu1 %v2523_v47  ;;  %902 = vmatmul.bf16.gmra.mxu2 %v2523_v47 }
 0x155   :  { %v2039_v0 = vadd.f32 %v2038_v45, %v1782_v62  ;;  %1071 = vmatmul.bf16.gmra.mxu3 %v2523_v47 }
 0x157   :  { %v863_v1 = vpop.f32.mrf.mxu2 }
 0x158   :  { %v1556_v2 = vadd.f32 %v1555_v48, %v863_v1  ;;  %v1783_v3 = vmul.f32 %v863_v1, %v863_v1  ;;  %v1032_v4 = vpop.f32.mrf.mxu3  ;;  %v527_v5 = vpop.f32.mrf.mxu0 }
 0x159   :  { %v1182_v6 = vpack.c.bf16 %v1032_v4, %v863_v1  ;;  %v1625_v7 = vadd.f32 %v1624_v53, %v1032_v4  ;;  %v1784_v8 = vmul.f32 %v1032_v4, %v1032_v4  ;;  %v1419_v9 = vadd.f32 %v1418_v55, %v527_v5  ;;  %v696_v10 = vpop.f32.mrf.mxu1 }
 0x15a   :  { %v2108_v11 = vadd.f32 %v2107_v57, %v1783_v3  ;;  %v1785_v12 = vmul.f32 %v527_v5, %v527_v5  ;;  %v1183_v13 = vpack.c.bf16 %v696_v10, %v527_v5  ;;  %v1488_v14 = vadd.f32 %v1487_v60, %v696_v10  ;;  %v2525_v57 = vld [vmem:[%s3463_s0 + $0xa8] sm:$0xff] }
 0x15b   :  { %1310 = vst [vmem:[%s3464_s2 + $0x168] sm:$0xff] %v1182_v6  ;;  %v2177_v15 = vadd.f32 %v2176_v61, %v1784_v8  ;;  %v1786_v16 = vmul.f32 %v696_v10, %v696_v10 }
 0x15c   :  { %v1971_v17 = vadd.f32 %v1970_v63, %v1785_v12  ;;  %1311 = vst [vmem:[%s3464_s2 + $0x170] sm:$0xff] %v1183_v13 }
 0x15d   :  { %v2040_v18 = vadd.f32 %v2039_v0, %v1786_v16 }
 0x15f   :  { %v865_v19 = vpop.f32.mrf.mxu2 }
 0x160   :  { %v1557_v21 = vadd.f32 %v1556_v2, %v865_v19  ;;  %v1787_v22 = vmul.f32 %v865_v19, %v865_v19  ;;  %v1034_v23 = vpop.f32.mrf.mxu3  ;;  %v530_v24 = vpop.f32.mrf.mxu0 }
 0x161   :  { %v1184_v25 = vpack.c.bf16 %v1034_v23, %v865_v19  ;;  %v1626_v26 = vadd.f32 %v1625_v7, %v1034_v23  ;;  %v1788_v27 = vmul.f32 %v1034_v23, %v1034_v23  ;;  %v1420_v28 = vadd.f32 %v1419_v9, %v530_v24  ;;  %v699_v29 = vpop.f32.mrf.mxu1 }
 0x162   :  { %v2109_v30 = vadd.f32 %v2108_v11, %v1787_v22  ;;  %v1789_v31 = vmul.f32 %v530_v24, %v530_v24  ;;  %v1185_v32 = vpack.c.bf16 %v699_v29, %v530_v24  ;;  %v1489_v33 = vadd.f32 %v1488_v14, %v699_v29 }
 0x163   :  { %1312 = vst [vmem:[%s3464_s2 + $0x178] sm:$0xff] %v1184_v25  ;;  %v2178_v34 = vadd.f32 %v2177_v15, %v1788_v27  ;;  %v1790_v35 = vmul.f32 %v699_v29, %v699_v29  ;;  %569 = vmatmul.bf16.gmra.mxu0 %v2524_v20 }
 0x164   :  { %v1972_v36 = vadd.f32 %v1971_v17, %v1789_v31  ;;  %1313 = vst [vmem:[%s3464_s2 + $0x180] sm:$0xff] %v1185_v32  ;;  %738 = vmatmul.bf16.gmra.mxu1 %v2524_v20  ;;  %907 = vmatmul.bf16.gmra.mxu2 %v2524_v20 }
 0x165   :  { %v2041_v37 = vadd.f32 %v2040_v18, %v1790_v35  ;;  %1076 = vmatmul.bf16.gmra.mxu3 %v2524_v20 }
 0x167   :  { %v868_v38 = vpop.f32.mrf.mxu2 }
 0x168   :  { %v1558_v39 = vadd.f32 %v1557_v21, %v868_v38  ;;  %v1791_v40 = vmul.f32 %v868_v38, %v868_v38  ;;  %v1037_v41 = vpop.f32.mrf.mxu3  ;;  %v532_v42 = vpop.f32.mrf.mxu0 }
 0x169   :  { %v1186_v43 = vpack.c.bf16 %v1037_v41, %v868_v38  ;;  %v1627_v44 = vadd.f32 %v1626_v26, %v1037_v41  ;;  %v1792_v45 = vmul.f32 %v1037_v41, %v1037_v41  ;;  %v1421_v46 = vadd.f32 %v1420_v28, %v532_v42  ;;  %v701_v47 = vpop.f32.mrf.mxu1 }
 0x16a   :  { %v2110_v48 = vadd.f32 %v2109_v30, %v1791_v40  ;;  %v1793_v49 = vmul.f32 %v532_v42, %v532_v42  ;;  %v1187_v50 = vpack.c.bf16 %v701_v47, %v532_v42  ;;  %v1490_v51 = vadd.f32 %v1489_v33, %v701_v47  ;;  %v2526_v30 = vld [vmem:[%s3463_s0 + $0xb0] sm:$0xff] }
 0x16b   :  { %1314 = vst [vmem:[%s3464_s2 + $0x188] sm:$0xff] %v1186_v43  ;;  %v2179_v52 = vadd.f32 %v2178_v34, %v1792_v45  ;;  %v1794_v53 = vmul.f32 %v701_v47, %v701_v47 }
 0x16c   :  { %v1973_v54 = vadd.f32 %v1972_v36, %v1793_v49  ;;  %1315 = vst [vmem:[%s3464_s2 + $0x190] sm:$0xff] %v1187_v50 }
 0x16d   :  { %v2042_v55 = vadd.f32 %v2041_v37, %v1794_v53 }
 0x16f   :  { %v870_v56 = vpop.f32.mrf.mxu2 }
 0x170   :  { %v1559_v58 = vadd.f32 %v1558_v39, %v870_v56  ;;  %v1795_v59 = vmul.f32 %v870_v56, %v870_v56  ;;  %v1039_v60 = vpop.f32.mrf.mxu3  ;;  %v535_v61 = vpop.f32.mrf.mxu0 }
 0x171   :  { %v1188_v62 = vpack.c.bf16 %v1039_v60, %v870_v56  ;;  %v1628_v63 = vadd.f32 %v1627_v44, %v1039_v60  ;;  %v1796_v0 = vmul.f32 %v1039_v60, %v1039_v60  ;;  %v1422_v1 = vadd.f32 %v1421_v46, %v535_v61  ;;  %v704_v2 = vpop.f32.mrf.mxu1 }
 0x172   :  { %v2111_v3 = vadd.f32 %v2110_v48, %v1795_v59  ;;  %v1797_v4 = vmul.f32 %v535_v61, %v535_v61  ;;  %v1189_v5 = vpack.c.bf16 %v704_v2, %v535_v61  ;;  %v1491_v6 = vadd.f32 %v1490_v51, %v704_v2 }
 0x173   :  { %1316 = vst [vmem:[%s3464_s2 + $0x198] sm:$0xff] %v1188_v62  ;;  %v2180_v7 = vadd.f32 %v2179_v52, %v1796_v0  ;;  %v1798_v8 = vmul.f32 %v704_v2, %v704_v2  ;;  %574 = vmatmul.bf16.gmra.mxu0 %v2525_v57 }
 0x174   :  { %v1974_v9 = vadd.f32 %v1973_v54, %v1797_v4  ;;  %1317 = vst [vmem:[%s3464_s2 + $0x1a0] sm:$0xff] %v1189_v5  ;;  %743 = vmatmul.bf16.gmra.mxu1 %v2525_v57  ;;  %912 = vmatmul.bf16.gmra.mxu2 %v2525_v57 }
 0x175   :  { %v2043_v10 = vadd.f32 %v2042_v55, %v1798_v8  ;;  %1081 = vmatmul.bf16.gmra.mxu3 %v2525_v57 }
 0x177   :  { %v873_v11 = vpop.f32.mrf.mxu2 }
 0x178   :  { %v1560_v12 = vadd.f32 %v1559_v58, %v873_v11  ;;  %v1799_v13 = vmul.f32 %v873_v11, %v873_v11  ;;  %v1042_v14 = vpop.f32.mrf.mxu3  ;;  %v537_v15 = vpop.f32.mrf.mxu0 }
 0x179   :  { %v1190_v16 = vpack.c.bf16 %v1042_v14, %v873_v11  ;;  %v1629_v17 = vadd.f32 %v1628_v63, %v1042_v14  ;;  %v1800_v18 = vmul.f32 %v1042_v14, %v1042_v14  ;;  %v1801_v19 = vmul.f32 %v537_v15, %v537_v15  ;;  %v706_v20 = vpop.f32.mrf.mxu1 }
 0x17a   :  { %v2112_v21 = vadd.f32 %v2111_v3, %v1799_v13  ;;  %v1191_v22 = vpack.c.bf16 %v706_v20, %v537_v15  ;;  %v1802_v23 = vmul.f32 %v706_v20, %v706_v20  ;;  %v1423_v24 = vadd.f32 %v1422_v1, %v537_v15  ;;  %v2527_v3 = vld [vmem:[%s3463_s0 + $0xb8] sm:$0xff] }
 0x17b   :  { %1318 = vst [vmem:[%s3464_s2 + $0x1a8] sm:$0xff] %v1190_v16  ;;  %v2181_v25 = vadd.f32 %v2180_v7, %v1800_v18  ;;  %v1975_v26 = vadd.f32 %v1974_v9, %v1801_v19  ;;  %v1492_v27 = vadd.f32 %v1491_v6, %v706_v20 }
 0x17c   :  { %1319 = vst [vmem:[%s3464_s2 + $0x1b0] sm:$0xff] %v1191_v22  ;;  %v2044_v28 = vadd.f32 %v2043_v10, %v1802_v23 }
 0x17f   :  { %v875_v29 = vpop.f32.mrf.mxu2 }
 0x180   :  { %v1803_v31 = vmul.f32 %v875_v29, %v875_v29  ;;  %v1044_v32 = vpop.f32.mrf.mxu3  ;;  %v540_v33 = vpop.f32.mrf.mxu0  ;;  %v1561_v34 = vadd.f32 %v1560_v12, %v875_v29 }
 0x181   :  { %v1192_v35 = vpack.c.bf16 %v1044_v32, %v875_v29  ;;  %v1804_v36 = vmul.f32 %v1044_v32, %v1044_v32  ;;  %v1424_v37 = vadd.f32 %v1423_v24, %v540_v33  ;;  %v1805_v38 = vmul.f32 %v540_v33, %v540_v33  ;;  %v709_v39 = vpop.f32.mrf.mxu1 }
 0x182   :  { %v1193_v40 = vpack.c.bf16 %v709_v39, %v540_v33  ;;  %v1493_v41 = vadd.f32 %v1492_v27, %v709_v39  ;;  %v1806_v42 = vmul.f32 %v709_v39, %v709_v39  ;;  %v2113_v43 = vadd.f32 %v2112_v21, %v1803_v31 }
 0x183   :  { %1320 = vst [vmem:[%s3464_s2 + $0x1b8] sm:$0xff] %v1192_v35  ;;  %v1976_v44 = vadd.f32 %v1975_v26, %v1805_v38  ;;  %579 = vmatmul.bf16.gmra.mxu0 %v2526_v30  ;;  %v1630_v45 = vadd.f32 %v1629_v17, %v1044_v32  ;;  %v2182_v46 = vadd.f32 %v2181_v25, %v1804_v36 }
 0x184   :  { %1321 = vst [vmem:[%s3464_s2 + $0x1c0] sm:$0xff] %v1193_v40  ;;  %v2045_v47 = vadd.f32 %v2044_v28, %v1806_v42  ;;  %748 = vmatmul.bf16.gmra.mxu1 %v2526_v30  ;;  %917 = vmatmul.bf16.gmra.mxu2 %v2526_v30  ;;  %v2528_v40 = vld [vmem:[%s3463_s0 + $0xc0] sm:$0xff] }
 0x185   :  { %1086 = vmatmul.bf16.gmra.mxu3 %v2526_v30 }
 0x187   :  { %v878_v48 = vpop.f32.mrf.mxu2 }
 0x188   :  { %v1562_v49 = vadd.f32 %v1561_v34, %v878_v48  ;;  %v1807_v50 = vmul.f32 %v878_v48, %v878_v48  ;;  %v1047_v51 = vpop.f32.mrf.mxu3  ;;  %v542_v52 = vpop.f32.mrf.mxu0 }
 0x189   :  { %v1194_v53 = vpack.c.bf16 %v1047_v51, %v878_v48  ;;  %v1631_v54 = vadd.f32 %v1630_v45, %v1047_v51  ;;  %v1808_v55 = vmul.f32 %v1047_v51, %v1047_v51  ;;  %v1809_v56 = vmul.f32 %v542_v52, %v542_v52  ;;  %v711_v57 = vpop.f32.mrf.mxu1 }
 0x18a   :  { %v2114_v58 = vadd.f32 %v2113_v43, %v1807_v50  ;;  %v1195_v59 = vpack.c.bf16 %v711_v57, %v542_v52  ;;  %v1810_v60 = vmul.f32 %v711_v57, %v711_v57  ;;  %v1425_v61 = vadd.f32 %v1424_v37, %v542_v52 }
 0x18b   :  { %1322 = vst [vmem:[%s3464_s2 + $0x1c8] sm:$0xff] %v1194_v53  ;;  %v2183_v62 = vadd.f32 %v2182_v46, %v1808_v55  ;;  %v1977_v63 = vadd.f32 %v1976_v44, %v1809_v56  ;;  %v1494_v0 = vadd.f32 %v1493_v41, %v711_v57 }
 0x18c   :  { %1323 = vst [vmem:[%s3464_s2 + $0x1d0] sm:$0xff] %v1195_v59  ;;  %v2046_v1 = vadd.f32 %v2045_v47, %v1810_v60 }
 0x18f   :  { %v880_v2 = vpop.f32.mrf.mxu2 }
 0x190   :  { %v1811_v4 = vmul.f32 %v880_v2, %v880_v2  ;;  %v1049_v5 = vpop.f32.mrf.mxu3  ;;  %v545_v6 = vpop.f32.mrf.mxu0  ;;  %v1563_v7 = vadd.f32 %v1562_v49, %v880_v2 }
 0x191   :  { %v1196_v8 = vpack.c.bf16 %v1049_v5, %v880_v2  ;;  %v1812_v9 = vmul.f32 %v1049_v5, %v1049_v5  ;;  %v1426_v10 = vadd.f32 %v1425_v61, %v545_v6  ;;  %v1813_v11 = vmul.f32 %v545_v6, %v545_v6  ;;  %v714_v12 = vpop.f32.mrf.mxu1 }
 0x192   :  { %v1197_v13 = vpack.c.bf16 %v714_v12, %v545_v6  ;;  %v1495_v14 = vadd.f32 %v1494_v0, %v714_v12  ;;  %v1814_v15 = vmul.f32 %v714_v12, %v714_v12  ;;  %v2115_v16 = vadd.f32 %v2114_v58, %v1811_v4 }
 0x193   :  { %1324 = vst [vmem:[%s3464_s2 + $0x1d8] sm:$0xff] %v1196_v8  ;;  %v1978_v17 = vadd.f32 %v1977_v63, %v1813_v11  ;;  %584 = vmatmul.bf16.gmra.mxu0 %v2527_v3  ;;  %v1632_v18 = vadd.f32 %v1631_v54, %v1049_v5  ;;  %v2184_v19 = vadd.f32 %v2183_v62, %v1812_v9 }
 0x194   :  { %1325 = vst [vmem:[%s3464_s2 + $0x1e0] sm:$0xff] %v1197_v13  ;;  %v2047_v20 = vadd.f32 %v2046_v1, %v1814_v15  ;;  %753 = vmatmul.bf16.gmra.mxu1 %v2527_v3  ;;  %922 = vmatmul.bf16.gmra.mxu2 %v2527_v3  ;;  %v2529_v13 = vld [vmem:[%s3463_s0 + $0xc8] sm:$0xff] }
 0x195   :  { %1091 = vmatmul.bf16.gmra.mxu3 %v2527_v3 }
 0x197   :  { %v883_v21 = vpop.f32.mrf.mxu2 }
 0x198   :  { %v1564_v22 = vadd.f32 %v1563_v7, %v883_v21  ;;  %v1815_v23 = vmul.f32 %v883_v21, %v883_v21  ;;  %v1052_v24 = vpop.f32.mrf.mxu3  ;;  %v547_v25 = vpop.f32.mrf.mxu0 }
 0x199   :  { %v1198_v26 = vpack.c.bf16 %v1052_v24, %v883_v21  ;;  %v1633_v27 = vadd.f32 %v1632_v18, %v1052_v24  ;;  %v1816_v28 = vmul.f32 %v1052_v24, %v1052_v24  ;;  %v1817_v29 = vmul.f32 %v547_v25, %v547_v25  ;;  %v716_v30 = vpop.f32.mrf.mxu1 }
 0x19a   :  { %v2116_v31 = vadd.f32 %v2115_v16, %v1815_v23  ;;  %v1199_v32 = vpack.c.bf16 %v716_v30, %v547_v25  ;;  %v1818_v33 = vmul.f32 %v716_v30, %v716_v30  ;;  %v1427_v34 = vadd.f32 %v1426_v10, %v547_v25 }
 0x19b   :  { %1326 = vst [vmem:[%s3464_s2 + $0x1e8] sm:$0xff] %v1198_v26  ;;  %v2185_v35 = vadd.f32 %v2184_v19, %v1816_v28  ;;  %v1979_v36 = vadd.f32 %v1978_v17, %v1817_v29  ;;  %v1496_v37 = vadd.f32 %v1495_v14, %v716_v30 }
 0x19c   :  { %1327 = vst [vmem:[%s3464_s2 + $0x1f0] sm:$0xff] %v1199_v32  ;;  %v2048_v38 = vadd.f32 %v2047_v20, %v1818_v33 }
 0x19f   :  { %v885_v39 = vpop.f32.mrf.mxu2 }
 0x1a0   :  { %v1819_v41 = vmul.f32 %v885_v39, %v885_v39  ;;  %v1054_v42 = vpop.f32.mrf.mxu3  ;;  %v550_v43 = vpop.f32.mrf.mxu0  ;;  %v1565_v44 = vadd.f32 %v1564_v22, %v885_v39 }
 0x1a1   :  { %v1200_v45 = vpack.c.bf16 %v1054_v42, %v885_v39  ;;  %v1820_v46 = vmul.f32 %v1054_v42, %v1054_v42  ;;  %v1428_v47 = vadd.f32 %v1427_v34, %v550_v43  ;;  %v1821_v48 = vmul.f32 %v550_v43, %v550_v43  ;;  %v719_v49 = vpop.f32.mrf.mxu1 }
 0x1a2   :  { %v1201_v50 = vpack.c.bf16 %v719_v49, %v550_v43  ;;  %v1497_v51 = vadd.f32 %v1496_v37, %v719_v49  ;;  %v1822_v52 = vmul.f32 %v719_v49, %v719_v49  ;;  %v2117_v53 = vadd.f32 %v2116_v31, %v1819_v41 }
 0x1a3   :  { %1328 = vst [vmem:[%s3464_s2 + $0x1f8] sm:$0xff] %v1200_v45  ;;  %v1980_v54 = vadd.f32 %v1979_v36, %v1821_v48  ;;  %589 = vmatmul.bf16.gmra.mxu0 %v2528_v40  ;;  %v1634_v55 = vadd.f32 %v1633_v27, %v1054_v42  ;;  %v2186_v56 = vadd.f32 %v2185_v35, %v1820_v46 }
 0x1a4   :  { %1329 = vst [vmem:[%s3464_s2 + $0x200] sm:$0xff] %v1201_v50  ;;  %v2049_v57 = vadd.f32 %v2048_v38, %v1822_v52  ;;  %758 = vmatmul.bf16.gmra.mxu1 %v2528_v40  ;;  %927 = vmatmul.bf16.gmra.mxu2 %v2528_v40  ;;  %v2530_v50 = vld [vmem:[%s3463_s0 + $0xd0] sm:$0xff] }
 0x1a5   :  { %1096 = vmatmul.bf16.gmra.mxu3 %v2528_v40 }
 0x1a7   :  { %v888_v58 = vpop.f32.mrf.mxu2 }
 0x1a8   :  { %v1566_v59 = vadd.f32 %v1565_v44, %v888_v58  ;;  %v1823_v60 = vmul.f32 %v888_v58, %v888_v58  ;;  %v1057_v61 = vpop.f32.mrf.mxu3  ;;  %v552_v62 = vpop.f32.mrf.mxu0 }
 0x1a9   :  { %v1202_v63 = vpack.c.bf16 %v1057_v61, %v888_v58  ;;  %v1635_v0 = vadd.f32 %v1634_v55, %v1057_v61  ;;  %v1824_v1 = vmul.f32 %v1057_v61, %v1057_v61  ;;  %v1825_v2 = vmul.f32 %v552_v62, %v552_v62  ;;  %v721_v3 = vpop.f32.mrf.mxu1 }
 0x1aa   :  { %v2118_v4 = vadd.f32 %v2117_v53, %v1823_v60  ;;  %v1203_v5 = vpack.c.bf16 %v721_v3, %v552_v62  ;;  %v1826_v6 = vmul.f32 %v721_v3, %v721_v3  ;;  %v1429_v7 = vadd.f32 %v1428_v47, %v552_v62 }
 0x1ab   :  { %1330 = vst [vmem:[%s3464_s2 + $0x208] sm:$0xff] %v1202_v63  ;;  %v2187_v8 = vadd.f32 %v2186_v56, %v1824_v1  ;;  %v1981_v9 = vadd.f32 %v1980_v54, %v1825_v2  ;;  %v1498_v10 = vadd.f32 %v1497_v51, %v721_v3 }
 0x1ac   :  { %1331 = vst [vmem:[%s3464_s2 + $0x210] sm:$0xff] %v1203_v5  ;;  %v2050_v11 = vadd.f32 %v2049_v57, %v1826_v6 }
 0x1af   :  { %v890_v12 = vpop.f32.mrf.mxu2 }
 0x1b0   :  { %v1827_v14 = vmul.f32 %v890_v12, %v890_v12  ;;  %v1059_v15 = vpop.f32.mrf.mxu3  ;;  %v555_v16 = vpop.f32.mrf.mxu0  ;;  %v1567_v17 = vadd.f32 %v1566_v59, %v890_v12 }
 0x1b1   :  { %v1204_v18 = vpack.c.bf16 %v1059_v15, %v890_v12  ;;  %v1828_v19 = vmul.f32 %v1059_v15, %v1059_v15  ;;  %v1430_v20 = vadd.f32 %v1429_v7, %v555_v16  ;;  %v1829_v21 = vmul.f32 %v555_v16, %v555_v16  ;;  %v724_v22 = vpop.f32.mrf.mxu1 }
 0x1b2   :  { %v1205_v23 = vpack.c.bf16 %v724_v22, %v555_v16  ;;  %v1499_v24 = vadd.f32 %v1498_v10, %v724_v22  ;;  %v1830_v25 = vmul.f32 %v724_v22, %v724_v22  ;;  %v2119_v26 = vadd.f32 %v2118_v4, %v1827_v14 }
 0x1b3   :  { %1332 = vst [vmem:[%s3464_s2 + $0x218] sm:$0xff] %v1204_v18  ;;  %v1982_v27 = vadd.f32 %v1981_v9, %v1829_v21  ;;  %594 = vmatmul.bf16.gmra.mxu0 %v2529_v13  ;;  %v1636_v28 = vadd.f32 %v1635_v0, %v1059_v15  ;;  %v2188_v29 = vadd.f32 %v2187_v8, %v1828_v19 }
 0x1b4   :  { %1333 = vst [vmem:[%s3464_s2 + $0x220] sm:$0xff] %v1205_v23  ;;  %v2051_v30 = vadd.f32 %v2050_v11, %v1830_v25  ;;  %763 = vmatmul.bf16.gmra.mxu1 %v2529_v13  ;;  %932 = vmatmul.bf16.gmra.mxu2 %v2529_v13  ;;  %v2531_v23 = vld [vmem:[%s3463_s0 + $0xd8] sm:$0xff] }
 0x1b5   :  { %1101 = vmatmul.bf16.gmra.mxu3 %v2529_v13 }
 0x1b7   :  { %v893_v31 = vpop.f32.mrf.mxu2 }
 0x1b8   :  { %v1568_v32 = vadd.f32 %v1567_v17, %v893_v31  ;;  %v1831_v33 = vmul.f32 %v893_v31, %v893_v31  ;;  %v1062_v34 = vpop.f32.mrf.mxu3  ;;  %v557_v35 = vpop.f32.mrf.mxu0 }
 0x1b9   :  { %v1206_v36 = vpack.c.bf16 %v1062_v34, %v893_v31  ;;  %v1637_v37 = vadd.f32 %v1636_v28, %v1062_v34  ;;  %v1832_v38 = vmul.f32 %v1062_v34, %v1062_v34  ;;  %v1833_v39 = vmul.f32 %v557_v35, %v557_v35  ;;  %v726_v40 = vpop.f32.mrf.mxu1 }
 0x1ba   :  { %v2120_v41 = vadd.f32 %v2119_v26, %v1831_v33  ;;  %v1207_v42 = vpack.c.bf16 %v726_v40, %v557_v35  ;;  %v1834_v43 = vmul.f32 %v726_v40, %v726_v40  ;;  %v1431_v44 = vadd.f32 %v1430_v20, %v557_v35 }
 0x1bb   :  { %1334 = vst [vmem:[%s3464_s2 + $0x228] sm:$0xff] %v1206_v36  ;;  %v2189_v45 = vadd.f32 %v2188_v29, %v1832_v38  ;;  %v1983_v46 = vadd.f32 %v1982_v27, %v1833_v39  ;;  %v1500_v47 = vadd.f32 %v1499_v24, %v726_v40 }
 0x1bc   :  { %1335 = vst [vmem:[%s3464_s2 + $0x230] sm:$0xff] %v1207_v42  ;;  %v2052_v48 = vadd.f32 %v2051_v30, %v1834_v43 }
 0x1bf   :  { %v895_v49 = vpop.f32.mrf.mxu2 }
 0x1c0   :  { %v1835_v51 = vmul.f32 %v895_v49, %v895_v49  ;;  %v1064_v52 = vpop.f32.mrf.mxu3  ;;  %v560_v53 = vpop.f32.mrf.mxu0  ;;  %v1569_v54 = vadd.f32 %v1568_v32, %v895_v49 }
 0x1c1   :  { %v1208_v55 = vpack.c.bf16 %v1064_v52, %v895_v49  ;;  %v1836_v56 = vmul.f32 %v1064_v52, %v1064_v52  ;;  %v1432_v57 = vadd.f32 %v1431_v44, %v560_v53  ;;  %v1837_v58 = vmul.f32 %v560_v53, %v560_v53  ;;  %v729_v59 = vpop.f32.mrf.mxu1 }
 0x1c2   :  { %v1209_v60 = vpack.c.bf16 %v729_v59, %v560_v53  ;;  %v1501_v61 = vadd.f32 %v1500_v47, %v729_v59  ;;  %v1838_v62 = vmul.f32 %v729_v59, %v729_v59  ;;  %v2121_v63 = vadd.f32 %v2120_v41, %v1835_v51 }
 0x1c3   :  { %1336 = vst [vmem:[%s3464_s2 + $0x238] sm:$0xff] %v1208_v55  ;;  %v1984_v0 = vadd.f32 %v1983_v46, %v1837_v58  ;;  %599 = vmatmul.bf16.gmra.mxu0 %v2530_v50  ;;  %v1638_v1 = vadd.f32 %v1637_v37, %v1064_v52  ;;  %v2190_v2 = vadd.f32 %v2189_v45, %v1836_v56 }
 0x1c4   :  { %1337 = vst [vmem:[%s3464_s2 + $0x240] sm:$0xff] %v1209_v60  ;;  %v2053_v3 = vadd.f32 %v2052_v48, %v1838_v62  ;;  %768 = vmatmul.bf16.gmra.mxu1 %v2530_v50  ;;  %937 = vmatmul.bf16.gmra.mxu2 %v2530_v50  ;;  %v2532_v60 = vld [vmem:[%s3463_s0 + $0xe0] sm:$0xff] }
 0x1c5   :  { %1106 = vmatmul.bf16.gmra.mxu3 %v2530_v50 }
 0x1c7   :  { %v898_v4 = vpop.f32.mrf.mxu2 }
 0x1c8   :  { %v1570_v5 = vadd.f32 %v1569_v54, %v898_v4  ;;  %v1839_v6 = vmul.f32 %v898_v4, %v898_v4  ;;  %v1067_v7 = vpop.f32.mrf.mxu3  ;;  %v562_v8 = vpop.f32.mrf.mxu0 }
 0x1c9   :  { %v1210_v9 = vpack.c.bf16 %v1067_v7, %v898_v4  ;;  %v1639_v10 = vadd.f32 %v1638_v1, %v1067_v7  ;;  %v1840_v11 = vmul.f32 %v1067_v7, %v1067_v7  ;;  %v1841_v12 = vmul.f32 %v562_v8, %v562_v8  ;;  %v731_v13 = vpop.f32.mrf.mxu1 }
 0x1ca   :  { %v2122_v14 = vadd.f32 %v2121_v63, %v1839_v6  ;;  %v1211_v15 = vpack.c.bf16 %v731_v13, %v562_v8  ;;  %v1842_v16 = vmul.f32 %v731_v13, %v731_v13  ;;  %v1433_v17 = vadd.f32 %v1432_v57, %v562_v8 }
 0x1cb   :  { %1338 = vst [vmem:[%s3464_s2 + $0x248] sm:$0xff] %v1210_v9  ;;  %v2191_v18 = vadd.f32 %v2190_v2, %v1840_v11  ;;  %v1985_v19 = vadd.f32 %v1984_v0, %v1841_v12  ;;  %v1502_v20 = vadd.f32 %v1501_v61, %v731_v13 }
 0x1cc   :  { %1339 = vst [vmem:[%s3464_s2 + $0x250] sm:$0xff] %v1211_v15  ;;  %v2054_v21 = vadd.f32 %v2053_v3, %v1842_v16 }
 0x1cf   :  { %v900_v22 = vpop.f32.mrf.mxu2 }
 0x1d0   :  { %v1843_v24 = vmul.f32 %v900_v22, %v900_v22  ;;  %v1069_v25 = vpop.f32.mrf.mxu3  ;;  %v565_v26 = vpop.f32.mrf.mxu0  ;;  %v1571_v27 = vadd.f32 %v1570_v5, %v900_v22 }
 0x1d1   :  { %v1212_v28 = vpack.c.bf16 %v1069_v25, %v900_v22  ;;  %v1844_v29 = vmul.f32 %v1069_v25, %v1069_v25  ;;  %v1434_v30 = vadd.f32 %v1433_v17, %v565_v26  ;;  %v1845_v31 = vmul.f32 %v565_v26, %v565_v26  ;;  %v734_v32 = vpop.f32.mrf.mxu1 }
 0x1d2   :  { %v1213_v33 = vpack.c.bf16 %v734_v32, %v565_v26  ;;  %v1503_v34 = vadd.f32 %v1502_v20, %v734_v32  ;;  %v1846_v35 = vmul.f32 %v734_v32, %v734_v32  ;;  %v2123_v36 = vadd.f32 %v2122_v14, %v1843_v24 }
 0x1d3   :  { %1340 = vst [vmem:[%s3464_s2 + $0x258] sm:$0xff] %v1212_v28  ;;  %v1986_v37 = vadd.f32 %v1985_v19, %v1845_v31  ;;  %604 = vmatmul.bf16.gmra.mxu0 %v2531_v23  ;;  %v1640_v38 = vadd.f32 %v1639_v10, %v1069_v25  ;;  %v2192_v39 = vadd.f32 %v2191_v18, %v1844_v29 }
 0x1d4   :  { %1341 = vst [vmem:[%s3464_s2 + $0x260] sm:$0xff] %v1213_v33  ;;  %v2055_v40 = vadd.f32 %v2054_v21, %v1846_v35  ;;  %773 = vmatmul.bf16.gmra.mxu1 %v2531_v23  ;;  %942 = vmatmul.bf16.gmra.mxu2 %v2531_v23  ;;  %v2533_v33 = vld [vmem:[%s3463_s0 + $0xe8] sm:$0xff] }
 0x1d5   :  { %1111 = vmatmul.bf16.gmra.mxu3 %v2531_v23 }
 0x1d7   :  { %v903_v41 = vpop.f32.mrf.mxu2 }
 0x1d8   :  { %v1572_v42 = vadd.f32 %v1571_v27, %v903_v41  ;;  %v1847_v43 = vmul.f32 %v903_v41, %v903_v41  ;;  %v1072_v44 = vpop.f32.mrf.mxu3  ;;  %v567_v45 = vpop.f32.mrf.mxu0 }
 0x1d9   :  { %v1214_v46 = vpack.c.bf16 %v1072_v44, %v903_v41  ;;  %v1641_v47 = vadd.f32 %v1640_v38, %v1072_v44  ;;  %v1848_v48 = vmul.f32 %v1072_v44, %v1072_v44  ;;  %v1849_v49 = vmul.f32 %v567_v45, %v567_v45  ;;  %v736_v50 = vpop.f32.mrf.mxu1 }
 0x1da   :  { %v2124_v51 = vadd.f32 %v2123_v36, %v1847_v43  ;;  %v1215_v52 = vpack.c.bf16 %v736_v50, %v567_v45  ;;  %v1850_v53 = vmul.f32 %v736_v50, %v736_v50  ;;  %v1435_v54 = vadd.f32 %v1434_v30, %v567_v45 }
 0x1db   :  { %1342 = vst [vmem:[%s3464_s2 + $0x268] sm:$0xff] %v1214_v46  ;;  %v2193_v55 = vadd.f32 %v2192_v39, %v1848_v48  ;;  %v1987_v56 = vadd.f32 %v1986_v37, %v1849_v49  ;;  %v1504_v57 = vadd.f32 %v1503_v34, %v736_v50 }
 0x1dc   :  { %1343 = vst [vmem:[%s3464_s2 + $0x270] sm:$0xff] %v1215_v52  ;;  %v2056_v58 = vadd.f32 %v2055_v40, %v1850_v53 }
 0x1df   :  { %v905_v59 = vpop.f32.mrf.mxu2 }
 0x1e0   :  { %v1851_v61 = vmul.f32 %v905_v59, %v905_v59  ;;  %v1074_v62 = vpop.f32.mrf.mxu3  ;;  %v570_v63 = vpop.f32.mrf.mxu0  ;;  %v1573_v0 = vadd.f32 %v1572_v42, %v905_v59 }
 0x1e1   :  { %v1216_v1 = vpack.c.bf16 %v1074_v62, %v905_v59  ;;  %v1852_v2 = vmul.f32 %v1074_v62, %v1074_v62  ;;  %v1436_v3 = vadd.f32 %v1435_v54, %v570_v63  ;;  %v1853_v4 = vmul.f32 %v570_v63, %v570_v63  ;;  %v739_v5 = vpop.f32.mrf.mxu1 }
 0x1e2   :  { %v1217_v6 = vpack.c.bf16 %v739_v5, %v570_v63  ;;  %v1505_v7 = vadd.f32 %v1504_v57, %v739_v5  ;;  %v1854_v8 = vmul.f32 %v739_v5, %v739_v5  ;;  %v2125_v9 = vadd.f32 %v2124_v51, %v1851_v61 }
 0x1e3   :  { %1344 = vst [vmem:[%s3464_s2 + $0x278] sm:$0xff] %v1216_v1  ;;  %v1988_v10 = vadd.f32 %v1987_v56, %v1853_v4  ;;  %609 = vmatmul.bf16.gmra.mxu0 %v2532_v60  ;;  %v1642_v11 = vadd.f32 %v1641_v47, %v1074_v62  ;;  %v2194_v12 = vadd.f32 %v2193_v55, %v1852_v2 }
 0x1e4   :  { %1345 = vst [vmem:[%s3464_s2 + $0x280] sm:$0xff] %v1217_v6  ;;  %v2057_v13 = vadd.f32 %v2056_v58, %v1854_v8  ;;  %778 = vmatmul.bf16.gmra.mxu1 %v2532_v60  ;;  %947 = vmatmul.bf16.gmra.mxu2 %v2532_v60  ;;  %v2534_v6 = vld [vmem:[%s3463_s0 + $0xf0] sm:$0xff] }
 0x1e5   :  { %1116 = vmatmul.bf16.gmra.mxu3 %v2532_v60 }
 0x1e7   :  { %v908_v14 = vpop.f32.mrf.mxu2 }
 0x1e8   :  { %v1574_v15 = vadd.f32 %v1573_v0, %v908_v14  ;;  %v1855_v16 = vmul.f32 %v908_v14, %v908_v14  ;;  %v1077_v17 = vpop.f32.mrf.mxu3  ;;  %v572_v18 = vpop.f32.mrf.mxu0 }
 0x1e9   :  { %v1218_v19 = vpack.c.bf16 %v1077_v17, %v908_v14  ;;  %v1643_v20 = vadd.f32 %v1642_v11, %v1077_v17  ;;  %v1856_v21 = vmul.f32 %v1077_v17, %v1077_v17  ;;  %v1437_v22 = vadd.f32 %v1436_v3, %v572_v18  ;;  %v741_v23 = vpop.f32.mrf.mxu1 }
 0x1ea   :  { %v2126_v24 = vadd.f32 %v2125_v9, %v1855_v16  ;;  %v1857_v25 = vmul.f32 %v572_v18, %v572_v18  ;;  %v1219_v26 = vpack.c.bf16 %v741_v23, %v572_v18  ;;  %v1506_v27 = vadd.f32 %v1505_v7, %v741_v23 }
 0x1eb   :  { %1346 = vst [vmem:[%s3464_s2 + $0x288] sm:$0xff] %v1218_v19  ;;  %v2195_v28 = vadd.f32 %v2194_v12, %v1856_v21  ;;  %v1858_v29 = vmul.f32 %v741_v23, %v741_v23 }
 0x1ec   :  { %v1989_v30 = vadd.f32 %v1988_v10, %v1857_v25  ;;  %1347 = vst [vmem:[%s3464_s2 + $0x290] sm:$0xff] %v1219_v26 }
 0x1ed   :  { %v2058_v31 = vadd.f32 %v2057_v13, %v1858_v29 }
 0x1ef   :  { %v910_v32 = vpop.f32.mrf.mxu2 }
 0x1f0   :  { %v1575_v34 = vadd.f32 %v1574_v15, %v910_v32  ;;  %v1859_v35 = vmul.f32 %v910_v32, %v910_v32  ;;  %v1079_v36 = vpop.f32.mrf.mxu3  ;;  %v575_v37 = vpop.f32.mrf.mxu0 }
 0x1f1   :  { %v1220_v38 = vpack.c.bf16 %v1079_v36, %v910_v32  ;;  %v1644_v39 = vadd.f32 %v1643_v20, %v1079_v36  ;;  %v1860_v40 = vmul.f32 %v1079_v36, %v1079_v36  ;;  %v1438_v41 = vadd.f32 %v1437_v22, %v575_v37  ;;  %v744_v42 = vpop.f32.mrf.mxu1 }
 0x1f2   :  { %v2127_v43 = vadd.f32 %v2126_v24, %v1859_v35  ;;  %v1861_v44 = vmul.f32 %v575_v37, %v575_v37  ;;  %v1221_v45 = vpack.c.bf16 %v744_v42, %v575_v37  ;;  %v1507_v46 = vadd.f32 %v1506_v27, %v744_v42 }
 0x1f3   :  { %1348 = vst [vmem:[%s3464_s2 + $0x298] sm:$0xff] %v1220_v38  ;;  %v2196_v47 = vadd.f32 %v2195_v28, %v1860_v40  ;;  %v1862_v48 = vmul.f32 %v744_v42, %v744_v42  ;;  %614 = vmatmul.bf16.gmra.mxu0 %v2533_v33 }
 0x1f4   :  { %v1990_v49 = vadd.f32 %v1989_v30, %v1861_v44  ;;  %1349 = vst [vmem:[%s3464_s2 + $0x2a0] sm:$0xff] %v1221_v45  ;;  %783 = vmatmul.bf16.gmra.mxu1 %v2533_v33  ;;  %952 = vmatmul.bf16.gmra.mxu2 %v2533_v33 }
 0x1f5   :  { %v2059_v50 = vadd.f32 %v2058_v31, %v1862_v48  ;;  %1121 = vmatmul.bf16.gmra.mxu3 %v2533_v33 }
 0x1f7   :  { %v913_v51 = vpop.f32.mrf.mxu2 }
 0x1f8   :  { %v1576_v52 = vadd.f32 %v1575_v34, %v913_v51  ;;  %v1863_v53 = vmul.f32 %v913_v51, %v913_v51  ;;  %v1082_v54 = vpop.f32.mrf.mxu3  ;;  %v577_v55 = vpop.f32.mrf.mxu0 }
 0x1f9   :  { %v1222_v56 = vpack.c.bf16 %v1082_v54, %v913_v51  ;;  %v1645_v57 = vadd.f32 %v1644_v39, %v1082_v54  ;;  %v1864_v58 = vmul.f32 %v1082_v54, %v1082_v54  ;;  %v1439_v59 = vadd.f32 %v1438_v41, %v577_v55  ;;  %v746_v60 = vpop.f32.mrf.mxu1 }
 0x1fa   :  { %v2128_v61 = vadd.f32 %v2127_v43, %v1863_v53  ;;  %v1865_v62 = vmul.f32 %v577_v55, %v577_v55  ;;  %v1223_v63 = vpack.c.bf16 %v746_v60, %v577_v55  ;;  %v1508_v0 = vadd.f32 %v1507_v46, %v746_v60  ;;  %v2535_v43 = vld [vmem:[%s3463_s0 + $0xf8] sm:$0xff] }
 0x1fb   :  { %1350 = vst [vmem:[%s3464_s2 + $0x2a8] sm:$0xff] %v1222_v56  ;;  %v2197_v1 = vadd.f32 %v2196_v47, %v1864_v58  ;;  %v1866_v2 = vmul.f32 %v746_v60, %v746_v60 }
 0x1fc   :  { %v1991_v3 = vadd.f32 %v1990_v49, %v1865_v62  ;;  %1351 = vst [vmem:[%s3464_s2 + $0x2b0] sm:$0xff] %v1223_v63 }
 0x1fd   :  { %v2060_v4 = vadd.f32 %v2059_v50, %v1866_v2 }
 0x1ff   :  { %v915_v5 = vpop.f32.mrf.mxu2 }
 0x200   :  { %v1577_v7 = vadd.f32 %v1576_v52, %v915_v5  ;;  %v1867_v8 = vmul.f32 %v915_v5, %v915_v5  ;;  %v1084_v9 = vpop.f32.mrf.mxu3  ;;  %v580_v10 = vpop.f32.mrf.mxu0 }
 0x201   :  { %v1224_v11 = vpack.c.bf16 %v1084_v9, %v915_v5  ;;  %v1646_v12 = vadd.f32 %v1645_v57, %v1084_v9  ;;  %v1868_v13 = vmul.f32 %v1084_v9, %v1084_v9  ;;  %v1440_v14 = vadd.f32 %v1439_v59, %v580_v10  ;;  %v749_v15 = vpop.f32.mrf.mxu1 }
 0x202   :  { %v2129_v16 = vadd.f32 %v2128_v61, %v1867_v8  ;;  %v1869_v17 = vmul.f32 %v580_v10, %v580_v10  ;;  %v1225_v18 = vpack.c.bf16 %v749_v15, %v580_v10  ;;  %v1509_v19 = vadd.f32 %v1508_v0, %v749_v15 }
 0x203   :  { %1352 = vst [vmem:[%s3464_s2 + $0x2b8] sm:$0xff] %v1224_v11  ;;  %v2198_v20 = vadd.f32 %v2197_v1, %v1868_v13  ;;  %v1870_v21 = vmul.f32 %v749_v15, %v749_v15  ;;  %619 = vmatmul.bf16.gmra.mxu0 %v2534_v6 }
 0x204   :  { %v1992_v22 = vadd.f32 %v1991_v3, %v1869_v17  ;;  %1353 = vst [vmem:[%s3464_s2 + $0x2c0] sm:$0xff] %v1225_v18  ;;  %788 = vmatmul.bf16.gmra.mxu1 %v2534_v6  ;;  %957 = vmatmul.bf16.gmra.mxu2 %v2534_v6 }
 0x205   :  { %v2061_v23 = vadd.f32 %v2060_v4, %v1870_v21  ;;  %1126 = vmatmul.bf16.gmra.mxu3 %v2534_v6 }
 0x207   :  { %v918_v24 = vpop.f32.mrf.mxu2 }
 0x208   :  { %v1578_v25 = vadd.f32 %v1577_v7, %v918_v24  ;;  %v1871_v26 = vmul.f32 %v918_v24, %v918_v24  ;;  %v1087_v27 = vpop.f32.mrf.mxu3  ;;  %v582_v28 = vpop.f32.mrf.mxu0 }
 0x209   :  { %v1226_v29 = vpack.c.bf16 %v1087_v27, %v918_v24  ;;  %v1647_v30 = vadd.f32 %v1646_v12, %v1087_v27  ;;  %v1872_v31 = vmul.f32 %v1087_v27, %v1087_v27  ;;  %v1441_v32 = vadd.f32 %v1440_v14, %v582_v28  ;;  %v751_v33 = vpop.f32.mrf.mxu1 }
 0x20a   :  { %v2130_v34 = vadd.f32 %v2129_v16, %v1871_v26  ;;  %v1873_v35 = vmul.f32 %v582_v28, %v582_v28  ;;  %v1227_v36 = vpack.c.bf16 %v751_v33, %v582_v28  ;;  %v1510_v37 = vadd.f32 %v1509_v19, %v751_v33 }
 0x20b   :  { %1354 = vst [vmem:[%s3464_s2 + $0x2c8] sm:$0xff] %v1226_v29  ;;  %v2199_v38 = vadd.f32 %v2198_v20, %v1872_v31  ;;  %v1874_v39 = vmul.f32 %v751_v33, %v751_v33 }
 0x20c   :  { %v1993_v40 = vadd.f32 %v1992_v22, %v1873_v35  ;;  %1355 = vst [vmem:[%s3464_s2 + $0x2d0] sm:$0xff] %v1227_v36 }
 0x20d   :  { %v2062_v41 = vadd.f32 %v2061_v23, %v1874_v39 }
 0x20f   :  { %v920_v42 = vpop.f32.mrf.mxu2 }
 0x210   :  { %v1579_v44 = vadd.f32 %v1578_v25, %v920_v42  ;;  %v1875_v45 = vmul.f32 %v920_v42, %v920_v42  ;;  %v1089_v46 = vpop.f32.mrf.mxu3  ;;  %v585_v47 = vpop.f32.mrf.mxu0 }
 0x211   :  { %v1228_v48 = vpack.c.bf16 %v1089_v46, %v920_v42  ;;  %v1648_v49 = vadd.f32 %v1647_v30, %v1089_v46  ;;  %v1876_v50 = vmul.f32 %v1089_v46, %v1089_v46  ;;  %v1442_v51 = vadd.f32 %v1441_v32, %v585_v47  ;;  %v754_v52 = vpop.f32.mrf.mxu1 }
 0x212   :  { %v2131_v53 = vadd.f32 %v2130_v34, %v1875_v45  ;;  %v1877_v54 = vmul.f32 %v585_v47, %v585_v47  ;;  %v1229_v55 = vpack.c.bf16 %v754_v52, %v585_v47  ;;  %v1511_v56 = vadd.f32 %v1510_v37, %v754_v52 }
 0x213   :  { %1356 = vst [vmem:[%s3464_s2 + $0x2d8] sm:$0xff] %v1228_v48  ;;  %v2200_v57 = vadd.f32 %v2199_v38, %v1876_v50  ;;  %v1878_v58 = vmul.f32 %v754_v52, %v754_v52  ;;  %624 = vmatmul.bf16.gmra.mxu0 %v2535_v43 }
 0x214   :  { %v1994_v59 = vadd.f32 %v1993_v40, %v1877_v54  ;;  %1357 = vst [vmem:[%s3464_s2 + $0x2e0] sm:$0xff] %v1229_v55  ;;  %793 = vmatmul.bf16.gmra.mxu1 %v2535_v43  ;;  %962 = vmatmul.bf16.gmra.mxu2 %v2535_v43 }
 0x215   :  { %v2063_v60 = vadd.f32 %v2062_v41, %v1878_v58  ;;  %1131 = vmatmul.bf16.gmra.mxu3 %v2535_v43 }
 0x217   :  { %v923_v61 = vpop.f32.mrf.mxu2 }
 0x218   :  { %v1580_v62 = vadd.f32 %v1579_v44, %v923_v61  ;;  %v1879_v63 = vmul.f32 %v923_v61, %v923_v61  ;;  %v1092_v0 = vpop.f32.mrf.mxu3  ;;  %v587_v1 = vpop.f32.mrf.mxu0 }
 0x219   :  { %v1230_v2 = vpack.c.bf16 %v1092_v0, %v923_v61  ;;  %v1649_v3 = vadd.f32 %v1648_v49, %v1092_v0  ;;  %v1880_v4 = vmul.f32 %v1092_v0, %v1092_v0  ;;  %v1443_v5 = vadd.f32 %v1442_v51, %v587_v1  ;;  %v756_v6 = vpop.f32.mrf.mxu1 }
 0x21a   :  { %v2132_v7 = vadd.f32 %v2131_v53, %v1879_v63  ;;  %v1881_v8 = vmul.f32 %v587_v1, %v587_v1  ;;  %v1231_v9 = vpack.c.bf16 %v756_v6, %v587_v1  ;;  %v1512_v10 = vadd.f32 %v1511_v56, %v756_v6 }
 0x21b   :  { %1358 = vst [vmem:[%s3464_s2 + $0x2e8] sm:$0xff] %v1230_v2  ;;  %v2201_v11 = vadd.f32 %v2200_v57, %v1880_v4  ;;  %v1882_v12 = vmul.f32 %v756_v6, %v756_v6 }
 0x21c   :  { %v1995_v13 = vadd.f32 %v1994_v59, %v1881_v8  ;;  %1359 = vst [vmem:[%s3464_s2 + $0x2f0] sm:$0xff] %v1231_v9 }
 0x21d   :  { %v2064_v14 = vadd.f32 %v2063_v60, %v1882_v12 }
 0x21f   :  { %v925_v15 = vpop.f32.mrf.mxu2 }
 0x220   :  { %v1581_v16 = vadd.f32 %v1580_v62, %v925_v15  ;;  %v1883_v17 = vmul.f32 %v925_v15, %v925_v15  ;;  %v1094_v18 = vpop.f32.mrf.mxu3  ;;  %v590_v19 = vpop.f32.mrf.mxu0 }
 0x221   :  { %v1232_v20 = vpack.c.bf16 %v1094_v18, %v925_v15  ;;  %v1650_v21 = vadd.f32 %v1649_v3, %v1094_v18  ;;  %v1884_v22 = vmul.f32 %v1094_v18, %v1094_v18  ;;  %v1444_v23 = vadd.f32 %v1443_v5, %v590_v19  ;;  %v759_v24 = vpop.f32.mrf.mxu1 }
 0x222   :  { %v2133_v25 = vadd.f32 %v2132_v7, %v1883_v17  ;;  %v1885_v26 = vmul.f32 %v590_v19, %v590_v19  ;;  %v1233_v27 = vpack.c.bf16 %v759_v24, %v590_v19  ;;  %v1513_v28 = vadd.f32 %v1512_v10, %v759_v24 }
 0x223   :  { %1360 = vst [vmem:[%s3464_s2 + $0x2f8] sm:$0xff] %v1232_v20  ;;  %v2202_v29 = vadd.f32 %v2201_v11, %v1884_v22  ;;  %v1886_v30 = vmul.f32 %v759_v24, %v759_v24 }
 0x224   :  { %v1996_v31 = vadd.f32 %v1995_v13, %v1885_v26  ;;  %1361 = vst [vmem:[%s3464_s2 + $0x300] sm:$0xff] %v1233_v27 }
 0x225   :  { %v2065_v32 = vadd.f32 %v2064_v14, %v1886_v30 }
 0x227   :  { %v928_v33 = vpop.f32.mrf.mxu2 }
 0x228   :  { %v1582_v34 = vadd.f32 %v1581_v16, %v928_v33  ;;  %v1887_v35 = vmul.f32 %v928_v33, %v928_v33  ;;  %v1097_v36 = vpop.f32.mrf.mxu3  ;;  %v592_v37 = vpop.f32.mrf.mxu0 }
 0x229   :  { %v1234_v38 = vpack.c.bf16 %v1097_v36, %v928_v33  ;;  %v1651_v39 = vadd.f32 %v1650_v21, %v1097_v36  ;;  %v1888_v40 = vmul.f32 %v1097_v36, %v1097_v36  ;;  %v1445_v41 = vadd.f32 %v1444_v23, %v592_v37  ;;  %v761_v42 = vpop.f32.mrf.mxu1 }
 0x22a   :  { %v2134_v43 = vadd.f32 %v2133_v25, %v1887_v35  ;;  %v1889_v44 = vmul.f32 %v592_v37, %v592_v37  ;;  %v1235_v45 = vpack.c.bf16 %v761_v42, %v592_v37  ;;  %v1514_v46 = vadd.f32 %v1513_v28, %v761_v42 }
 0x22b   :  { %1362 = vst [vmem:[%s3464_s2 + $0x308] sm:$0xff] %v1234_v38  ;;  %v2203_v47 = vadd.f32 %v2202_v29, %v1888_v40  ;;  %v1890_v48 = vmul.f32 %v761_v42, %v761_v42 }
 0x22c   :  { %v1997_v49 = vadd.f32 %v1996_v31, %v1889_v44  ;;  %1363 = vst [vmem:[%s3464_s2 + $0x310] sm:$0xff] %v1235_v45 }
 0x22d   :  { %v2066_v50 = vadd.f32 %v2065_v32, %v1890_v48 }
 0x22f   :  { %v930_v51 = vpop.f32.mrf.mxu2 }
 0x230   :  { %v1583_v52 = vadd.f32 %v1582_v34, %v930_v51  ;;  %v1891_v53 = vmul.f32 %v930_v51, %v930_v51  ;;  %v1099_v54 = vpop.f32.mrf.mxu3  ;;  %v595_v55 = vpop.f32.mrf.mxu0 }
 0x231   :  { %v1236_v56 = vpack.c.bf16 %v1099_v54, %v930_v51  ;;  %v1652_v57 = vadd.f32 %v1651_v39, %v1099_v54  ;;  %v1892_v58 = vmul.f32 %v1099_v54, %v1099_v54  ;;  %v1446_v59 = vadd.f32 %v1445_v41, %v595_v55  ;;  %v764_v60 = vpop.f32.mrf.mxu1 }
 0x232   :  { %v2135_v61 = vadd.f32 %v2134_v43, %v1891_v53  ;;  %v1893_v62 = vmul.f32 %v595_v55, %v595_v55  ;;  %v1237_v63 = vpack.c.bf16 %v764_v60, %v595_v55  ;;  %v1515_v0 = vadd.f32 %v1514_v46, %v764_v60 }
 0x233   :  { %1364 = vst [vmem:[%s3464_s2 + $0x318] sm:$0xff] %v1236_v56  ;;  %v2204_v1 = vadd.f32 %v2203_v47, %v1892_v58  ;;  %v1894_v2 = vmul.f32 %v764_v60, %v764_v60 }
 0x234   :  { %v1998_v3 = vadd.f32 %v1997_v49, %v1893_v62  ;;  %1365 = vst [vmem:[%s3464_s2 + $0x320] sm:$0xff] %v1237_v63 }
 0x235   :  { %v2067_v4 = vadd.f32 %v2066_v50, %v1894_v2 }
 0x237   :  { %v933_v5 = vpop.f32.mrf.mxu2 }
 0x238   :  { %v1584_v6 = vadd.f32 %v1583_v52, %v933_v5  ;;  %v1895_v7 = vmul.f32 %v933_v5, %v933_v5  ;;  %v1102_v8 = vpop.f32.mrf.mxu3  ;;  %v597_v9 = vpop.f32.mrf.mxu0 }
 0x239   :  { %v1238_v10 = vpack.c.bf16 %v1102_v8, %v933_v5  ;;  %v1653_v11 = vadd.f32 %v1652_v57, %v1102_v8  ;;  %v1896_v12 = vmul.f32 %v1102_v8, %v1102_v8  ;;  %v1447_v13 = vadd.f32 %v1446_v59, %v597_v9  ;;  %v766_v14 = vpop.f32.mrf.mxu1 }
 0x23a   :  { %v2136_v15 = vadd.f32 %v2135_v61, %v1895_v7  ;;  %v1897_v16 = vmul.f32 %v597_v9, %v597_v9  ;;  %v1239_v17 = vpack.c.bf16 %v766_v14, %v597_v9  ;;  %v1516_v18 = vadd.f32 %v1515_v0, %v766_v14 }
 0x23b   :  { %1366 = vst [vmem:[%s3464_s2 + $0x328] sm:$0xff] %v1238_v10  ;;  %v2205_v19 = vadd.f32 %v2204_v1, %v1896_v12  ;;  %v1898_v20 = vmul.f32 %v766_v14, %v766_v14 }
 0x23c   :  { %v1999_v21 = vadd.f32 %v1998_v3, %v1897_v16  ;;  %1367 = vst [vmem:[%s3464_s2 + $0x330] sm:$0xff] %v1239_v17 }
 0x23d   :  { %v2068_v22 = vadd.f32 %v2067_v4, %v1898_v20 }
 0x23f   :  { %v935_v23 = vpop.f32.mrf.mxu2 }
 0x240   :  { %v1585_v24 = vadd.f32 %v1584_v6, %v935_v23  ;;  %v1899_v25 = vmul.f32 %v935_v23, %v935_v23  ;;  %v1104_v26 = vpop.f32.mrf.mxu3  ;;  %v600_v27 = vpop.f32.mrf.mxu0 }
 0x241   :  { %v1240_v28 = vpack.c.bf16 %v1104_v26, %v935_v23  ;;  %v1654_v29 = vadd.f32 %v1653_v11, %v1104_v26  ;;  %v1900_v30 = vmul.f32 %v1104_v26, %v1104_v26  ;;  %v1448_v31 = vadd.f32 %v1447_v13, %v600_v27  ;;  %v769_v32 = vpop.f32.mrf.mxu1 }
 0x242   :  { %v2137_v33 = vadd.f32 %v2136_v15, %v1899_v25  ;;  %v1901_v34 = vmul.f32 %v600_v27, %v600_v27  ;;  %v1241_v35 = vpack.c.bf16 %v769_v32, %v600_v27  ;;  %v1517_v36 = vadd.f32 %v1516_v18, %v769_v32 }
 0x243   :  { %1368 = vst [vmem:[%s3464_s2 + $0x338] sm:$0xff] %v1240_v28  ;;  %v2206_v37 = vadd.f32 %v2205_v19, %v1900_v30  ;;  %v1902_v38 = vmul.f32 %v769_v32, %v769_v32 }
 0x244   :  { %v2000_v39 = vadd.f32 %v1999_v21, %v1901_v34  ;;  %1369 = vst [vmem:[%s3464_s2 + $0x340] sm:$0xff] %v1241_v35 }
 0x245   :  { %v2069_v40 = vadd.f32 %v2068_v22, %v1902_v38 }
 0x247   :  { %v938_v41 = vpop.f32.mrf.mxu2 }
 0x248   :  { %v3193_v42 = vadd.f32 %v1585_v24, %v938_v41  ;;  %v1903_v43 = vmul.f32 %v938_v41, %v938_v41  ;;  %v1107_v44 = vpop.f32.mrf.mxu3  ;;  %v602_v45 = vpop.f32.mrf.mxu0 }
 0x249   :  { %v1242_v46 = vpack.c.bf16 %v1107_v44, %v938_v41  ;;  %v3195_v47 = vadd.f32 %v1654_v29, %v1107_v44  ;;  %v1904_v48 = vmul.f32 %v1107_v44, %v1107_v44  ;;  %v3197_v49 = vadd.f32 %v1448_v31, %v602_v45  ;;  %v771_v50 = vpop.f32.mrf.mxu1 }
 0x24a   :  { %v3199_v51 = vadd.f32 %v2137_v33, %v1903_v43  ;;  %v1905_v52 = vmul.f32 %v602_v45, %v602_v45  ;;  %v1243_v53 = vpack.c.bf16 %v771_v50, %v602_v45  ;;  %v3201_v54 = vadd.f32 %v1517_v36, %v771_v50 }
 0x24b   :  { %1370 = vst [vmem:[%s3464_s2 + $0x348] sm:$0xff] %v1242_v46  ;;  %v3206_v55 = vadd.f32 %v2206_v37, %v1904_v48  ;;  %v1906_v56 = vmul.f32 %v771_v50, %v771_v50 }
 0x24c   :  { %v2001_v57 = vadd.f32 %v2000_v39, %v1905_v52  ;;  %1371 = vst [vmem:[%s3464_s2 + $0x350] sm:$0xff] %v1243_v53 }
 0x24d   :  { %v3211_v58 = vadd.f32 %v2069_v40, %v1906_v56 }
 0x24f   :  { %v940_v59 = vpop.f32.mrf.mxu2 }
 0x250   :  { %v1109_v60 = vpop.f32.mrf.mxu3  ;;  %v605_v61 = vpop.f32.mrf.mxu0  ;;  %v1907_v33 = vmul.f32 %v940_v59, %v940_v59  ;;  %v1587_v36 = vadd.f32 %v3193_v42, %v940_v59 }
 0x251   :  { %v1244_v62 = vpack.c.bf16 %v1109_v60, %v940_v59  ;;  %v774_v63 = vpop.f32.mrf.mxu1  ;;  %v1909_v0 = vmul.f32 %v605_v61, %v605_v61  ;;  %v1908_v34 = vmul.f32 %v1109_v60, %v1109_v60  ;;  %v1656_v37 = vadd.f32 %v3195_v47, %v1109_v60 }
 0x252   :  { %v1245_v1 = vpack.c.bf16 %v774_v63, %v605_v61  ;;  %v1910_v35 = vmul.f32 %v774_v63, %v774_v63  ;;  %v1450_v38 = vadd.f32 %v3197_v49, %v605_v61  ;;  %v2139_v40 = vadd.f32 %v3199_v51, %v1907_v33 }
 0x253   :  { %1372 = vst [vmem:[%s3464_s2 + $0x358] sm:$0xff] %v1244_v62  ;;  %v3216_v2 = vadd.f32 %v2001_v57, %v1909_v0  ;;  %v1519_v41 = vadd.f32 %v3201_v54, %v774_v63  ;;  %v2208_v48 = vadd.f32 %v3206_v55, %v1908_v34 }
 0x254   :  { %1373 = vst [vmem:[%s3464_s2 + $0x360] sm:$0xff] %v1245_v1  ;;  %v2071_v51 = vadd.f32 %v3211_v58, %v1910_v35 }
 0x257   :  { %v943_v3 = vpop.f32.mrf.mxu2 }
 0x258   :  { %v1112_v4 = vpop.f32.mrf.mxu3  ;;  %v607_v5 = vpop.f32.mrf.mxu0  ;;  %v1911_v43 = vmul.f32 %v943_v3, %v943_v3  ;;  %v1588_v52 = vadd.f32 %v1587_v36, %v943_v3 }
 0x259   :  { %v1246_v6 = vpack.c.bf16 %v1112_v4, %v943_v3  ;;  %v3221_v7 = vpop.f32.mrf.mxu1  ;;  %v1912_v44 = vmul.f32 %v1112_v4, %v1112_v4  ;;  %v1913_v50 = vmul.f32 %v607_v5, %v607_v5  ;;  %v1657_v56 = vadd.f32 %v1656_v37, %v1112_v4 }
 0x25a   :  { %v1247_v8 = vpack.c.bf16 %v3221_v7, %v607_v5  ;;  %v1914_v42 = vmul.f32 %v3221_v7, %v3221_v7  ;;  %v1451_v55 = vadd.f32 %v1450_v38, %v607_v5  ;;  %v2140_v58 = vadd.f32 %v2139_v40, %v1911_v43 }
 0x25b   :  { %1374 = vst [vmem:[%s3464_s2 + $0x368] sm:$0xff] %v1246_v6  ;;  %v2209_v60 = vadd.f32 %v2208_v48, %v1912_v44  ;;  %v1520_v61 = vadd.f32 %v1519_v41, %v3221_v7  ;;  %v2003_v63 = vadd.f32 %v3216_v2, %v1913_v50 }
 0x25c   :  { %1375 = vst [vmem:[%s3464_s2 + $0x370] sm:$0xff] %v1247_v8  ;;  %v2072_v0 = vadd.f32 %v2071_v51, %v1914_v42 }
 0x25f   :  { %v3230_v9 = vpop.f32.mrf.mxu2 }
 0x260   :  { %v3232_v10 = vpop.f32.mrf.mxu3  ;;  %v3234_v11 = vpop.f32.mrf.mxu0  ;;  %v1915_v53 = vmul.f32 %v3230_v9, %v3230_v9  ;;  %v1589_v1 = vadd.f32 %v1588_v52, %v3230_v9 }
 0x261   :  { %v1248_v12 = vpack.c.bf16 %v3232_v10, %v3230_v9  ;;  %v3238_v13 = vpop.f32.mrf.mxu1  ;;  %v1916_v57 = vmul.f32 %v3232_v10, %v3232_v10  ;;  %v1917_v59 = vmul.f32 %v3234_v11, %v3234_v11  ;;  %v1658_v5 = vadd.f32 %v1657_v56, %v3232_v10 }
 0x262   :  { %v1249_v14 = vpack.c.bf16 %v3238_v13, %v3234_v11  ;;  %v1918_v62 = vmul.f32 %v3238_v13, %v3238_v13  ;;  %v2141_v4 = vadd.f32 %v2140_v58, %v1915_v53  ;;  %v1452_v6 = vadd.f32 %v1451_v55, %v3234_v11 }
 0x263   :  { %1376 = vst [vmem:[%s3464_s2 + $0x378] sm:$0xff] %v1248_v12  ;;  %v1521_v7 = vadd.f32 %v1520_v61, %v3238_v13  ;;  %v2210_v8 = vadd.f32 %v2209_v60, %v1916_v57  ;;  %v2004_v12 = vadd.f32 %v2003_v63, %v1917_v59  ;;  %v2569_v63 = vmov 0.0  }
 0x264   :  { %1377 = vst [vmem:[%s3464_s2 + $0x380] sm:$0xff] %v1249_v14  ;;  %v2073_v9 = vadd.f32 %v2072_v0, %v1918_v62 }
 0x265   :  { %1393 = vst [vmem:[%s3465_s3] sm:$0xff] %v2569_v63 }
 0x266   :  { %1394 = vst [vmem:[%s3465_s3 + $0x8] sm:$0xff] %v2569_v63 }
 0x267   :  { %v3248_v15 = vpop.f32.mrf.mxu2  ;;  %1395 = vst [vmem:[%s3465_s3 + $0x10] sm:$0xff] %v2569_v63 }
 0x268   :  { %v3250_v16 = vpop.f32.mrf.mxu3  ;;  %v3252_v17 = vpop.f32.mrf.mxu0  ;;  %v1919_v3 = vmul.f32 %v3248_v15, %v3248_v15  ;;  %1396 = vst [vmem:[%s3465_s3 + $0x18] sm:$0xff] %v2569_v63 }
 0x269   :  { %v1250_v18 = vpack.c.bf16 %v3250_v16, %v3248_v15  ;;  %v3256_v19 = vpop.f32.mrf.mxu1  ;;  %v1920_v14 = vmul.f32 %v3250_v16, %v3250_v16  ;;  %v1921_v2 = vmul.f32 %v3252_v17, %v3252_v17 }
 0x26a   :  { %v1251_v20 = vpack.c.bf16 %v3256_v19, %v3252_v17  ;;  %v1922_v10 = vmul.f32 %v3256_v19, %v3256_v19  ;;  %v1522_v38 = vadd.f32 %v1521_v7, %v3256_v19 }
 0x26b   :  { %1378 = vst [vmem:[%s3464_s2 + $0x388] sm:$0xff] %v1250_v18  ;;  %v2211_v36 = vadd.f32 %v2210_v8, %v1920_v14  ;;  %v2005_v37 = vadd.f32 %v2004_v12, %v1921_v2 }
 0x26c   :  { %1379 = vst [vmem:[%s3464_s2 + $0x390] sm:$0xff] %v1251_v20  ;;  %v1590_v20 = vadd.f32 %v1589_v1, %v3248_v15  ;;  %v2074_v41 = vadd.f32 %v2073_v9, %v1922_v10 }
 0x26f   :  { %v3266_v21 = vpop.f32.mrf.mxu2 }
 0x270   :  { %v3268_v22 = vpop.f32.mrf.mxu3  ;;  %v3270_v23 = vpop.f32.mrf.mxu0  ;;  %v1591_v43 = vadd.f32 %v1590_v20, %v3266_v21 }
 0x271   :  { %v1252_v24 = vpack.c.bf16 %v3268_v22, %v3266_v21  ;;  %v3274_v25 = vpop.f32.mrf.mxu1  ;;  %v1924_v15 = vmul.f32 %v3268_v22, %v3268_v22 }
 0x272   :  { %v1253_v26 = vpack.c.bf16 %v3274_v25, %v3270_v23  ;;  %v1926_v35 = vmul.f32 %v3274_v25, %v3274_v25  ;;  %v1523_v42 = vadd.f32 %v1522_v38, %v3274_v25 }
 0x273   :  { %1380 = vst [vmem:[%s3464_s2 + $0x398] sm:$0xff] %v1252_v24  ;;  %v1659_v24 = vadd.f32 %v1658_v5, %v3250_v16  ;;  %v1925_v16 = vmul.f32 %v3270_v23, %v3270_v23  ;;  %v2212_v51 = vadd.f32 %v2211_v36, %v1924_v15 }
 0x274   :  { %1381 = vst [vmem:[%s3464_s2 + $0x3a0] sm:$0xff] %v1253_v26  ;;  %v2142_v26 = vadd.f32 %v2141_v4, %v1919_v3 }
 0x275   :  { %v1660_v44 = vadd.f32 %v1659_v24, %v3268_v22  ;;  %v2006_v52 = vadd.f32 %v2005_v37, %v1925_v16 }
 0x277   :  { %v3284_v27 = vpop.f32.mrf.mxu2 }
 0x278   :  { %v3286_v28 = vpop.f32.mrf.mxu3  ;;  %v3288_v29 = vpop.f32.mrf.mxu0  ;;  %v1927_v40 = vmul.f32 %v3284_v27, %v3284_v27  ;;  %v1592_v53 = vadd.f32 %v1591_v43, %v3284_v27 }
 0x279   :  { %v1254_v30 = vpack.c.bf16 %v3286_v28, %v3284_v27  ;;  %v3292_v31 = vpop.f32.mrf.mxu1  ;;  %v1928_v48 = vmul.f32 %v3286_v28, %v3286_v28  ;;  %v1661_v56 = vadd.f32 %v1660_v44, %v3286_v28 }
 0x27a   :  { %v1255_v32 = vpack.c.bf16 %v3292_v31, %v3288_v29  ;;  %v1930_v22 = vmul.f32 %v3292_v31, %v3292_v31  ;;  %v1524_v25 = vadd.f32 %v1523_v42, %v3292_v31 }
 0x27b   :  { %1382 = vst [vmem:[%s3464_s2 + $0x3a8] sm:$0xff] %v1254_v30  ;;  %v1453_v30 = vadd.f32 %v1452_v6, %v3252_v17 }
 0x27c   :  { %1383 = vst [vmem:[%s3464_s2 + $0x3b0] sm:$0xff] %v1255_v32  ;;  %v1923_v32 = vmul.f32 %v3266_v21, %v3266_v21  ;;  %v2075_v21 = vadd.f32 %v2074_v41, %v1926_v35 }
 0x27d   :  { %v1454_v50 = vadd.f32 %v1453_v30, %v3270_v23  ;;  %v2213_v23 = vadd.f32 %v2212_v51, %v1928_v48 }
 0x27e   :  { %v2143_v19 = vadd.f32 %v2142_v26, %v1923_v32  ;;  %v2076_v31 = vadd.f32 %v2075_v21, %v1930_v22 }
 0x27f   :  { %v3305_v39 = vpop.f32.mrf.mxu2  ;;  %v1455_v55 = vadd.f32 %v1454_v50, %v3288_v29 }
 0x280   :  { %v3309_v45 = vpop.f32.mrf.mxu3  ;;  %v3311_v46 = vpop.f32.mrf.mxu0  ;;  %v1931_v59 = vmul.f32 %v3305_v39, %v3305_v39  ;;  %v1593_v0 = vadd.f32 %v1592_v53, %v3305_v39 }
 0x281   :  { %v1256_v47 = vpack.c.bf16 %v3309_v45, %v3305_v39  ;;  %v3318_v49 = vpop.f32.mrf.mxu1  ;;  %v1932_v62 = vmul.f32 %v3309_v45, %v3309_v45  ;;  %v1933_v27 = vmul.f32 %v3311_v46, %v3311_v46  ;;  %v1662_v4 = vadd.f32 %v1661_v56, %v3309_v45 }
 0x282   :  { %v1257_v54 = vpack.c.bf16 %v3318_v49, %v3311_v46  ;;  %v1934_v1 = vmul.f32 %v3318_v49, %v3318_v49  ;;  %v1456_v5 = vadd.f32 %v1455_v55, %v3311_v46  ;;  %v1525_v8 = vadd.f32 %v1524_v25, %v3318_v49 }
 0x283   :  { %1384 = vst [vmem:[%s3464_s2 + $0x3b8] sm:$0xff] %v1256_v47  ;;  %v1929_v47 = vmul.f32 %v3288_v29, %v3288_v29  ;;  %v2214_v46 = vadd.f32 %v2213_v23, %v1932_v62 }
 0x284   :  { %1385 = vst [vmem:[%s3464_s2 + $0x3c0] sm:$0xff] %v1257_v54  ;;  %v2144_v54 = vadd.f32 %v2143_v19, %v1927_v40  ;;  %v2077_v49 = vadd.f32 %v2076_v31, %v1934_v1 }
 0x285   :  { %v2007_v61 = vadd.f32 %v2006_v52, %v1929_v47 }
 0x286   :  { %v2145_v39 = vadd.f32 %v2144_v54, %v1931_v59 }
 0x287   :  { %v3349_v18 = vpop.f32.mrf.mxu2  ;;  %v2008_v14 = vadd.f32 %v2007_v61, %v1933_v27 }
 0x288   :  { %v3355_v11 = vpop.f32.mrf.mxu3  ;;  %v3357_v13 = vpop.f32.mrf.mxu0  ;;  %v1935_v6 = vmul.f32 %v3349_v18, %v3349_v18  ;;  %v1594_v20 = vadd.f32 %v1593_v0, %v3349_v18 }
 0x289   :  { %v1258_v33 = vpack.c.bf16 %v3355_v11, %v3349_v18  ;;  %v3364_v34 = vpop.f32.mrf.mxu1  ;;  %v1937_v7 = vmul.f32 %v3357_v13, %v3357_v13  ;;  %v1936_v12 = vmul.f32 %v3355_v11, %v3355_v11  ;;  %v1457_v2 = vadd.f32 %v1456_v5, %v3357_v13 }
 0x28a   :  { %v1259_v17 = vpack.c.bf16 %v3364_v34, %v3357_v13  ;;  %v1938_v45 = vmul.f32 %v3364_v34, %v3364_v34  ;;  %v1526_v24 = vadd.f32 %v1525_v8, %v3364_v34  ;;  %v2146_v26 = vadd.f32 %v2145_v39, %v1935_v6 }
 0x28b   :  { %1386 = vst [vmem:[%s3464_s2 + $0x3c8] sm:$0xff] %v1258_v33  ;;  %v1663_v30 = vadd.f32 %v1662_v4, %v3355_v11  ;;  %v2009_v32 = vadd.f32 %v2008_v14, %v1937_v7  ;;  %v2215_v15 = vadd.f32 %v2214_v46, %v1936_v12 }
 0x28c   :  { %1387 = vst [vmem:[%s3464_s2 + $0x3d0] sm:$0xff] %v1259_v17  ;;  %v2078_v16 = vadd.f32 %v2077_v49, %v1938_v45 }
 0x28f   :  { %v3396_v57 = vpop.f32.mrf.mxu2 }
 0x290   :  { %v1129_v58 = vpop.f32.mrf.mxu3  ;;  %v625_v60 = vpop.f32.mrf.mxu0  ;;  %v1939_v35 = vmul.f32 %v3396_v57, %v3396_v57  ;;  %v1595_v51 = vadd.f32 %v1594_v20, %v3396_v57 }
 0x291   :  { %v1260_v28 = vpack.c.bf16 %v1129_v58, %v3396_v57  ;;  %v794_v29 = vpop.f32.mrf.mxu1  ;;  %v1941_v9 = vmul.f32 %v625_v60, %v625_v60  ;;  %v1458_v13 = vadd.f32 %v1457_v2, %v625_v60  ;;  %v1940_v34 = vmul.f32 %v1129_v58, %v1129_v58 }
 0x292   :  { %v1261_v3 = vpack.c.bf16 %v794_v29, %v625_v60  ;;  %v1942_v10 = vmul.f32 %v794_v29, %v794_v29  ;;  %v1527_v17 = vadd.f32 %v1526_v24, %v794_v29  ;;  %v1664_v52 = vadd.f32 %v1663_v30, %v1129_v58 }
 0x293   :  { %1388 = vst [vmem:[%s3464_s2 + $0x3d8] sm:$0xff] %v1260_v28  ;;  %v2010_v37 = vadd.f32 %v2009_v32, %v1941_v9  ;;  %v2147_v53 = vadd.f32 %v2146_v26, %v1939_v35  ;;  %v2216_v54 = vadd.f32 %v2215_v15, %v1940_v34 }
 0x294   :  { %1389 = vst [vmem:[%s3464_s2 + $0x3e0] sm:$0xff] %v1261_v3  ;;  %v2079_v43 = vadd.f32 %v2078_v16, %v1942_v10 }
 0x297   :  { %v963_v33 = vpop.f32.mrf.mxu2 }
 0x298   :  { %v1132_v18 = vpop.f32.mrf.mxu3  ;;  %v627_v36 = vpop.f32.mrf.mxu0  ;;  %v1943_v19 = vmul.f32 %v963_v33, %v963_v33  ;;  %v1596_v23 = vadd.f32 %v1595_v51, %v963_v33  ;;  %v1687_v51 = vlaneseq }
 0x299   :  { %v1262_v38 = vpack.c.bf16 %v1132_v18, %v963_v33  ;;  %v1459_v40 = vadd.f32 %v1458_v13, %v627_v36  ;;  %v796_v41 = vpop.f32.mrf.mxu1  ;;  %v1945_v44 = vmul.f32 %v627_v36, %v627_v36  ;;  %v1944_v50 = vmul.f32 %v1132_v18, %v1132_v18 }
 0x29a   :  { %v1263_v48 = vpack.c.bf16 %v796_v41, %v627_v36  ;;  %v1528_v11 = vadd.f32 %v1527_v17, %v796_v41  ;;  %v1946_v47 = vmul.f32 %v796_v41, %v796_v41  ;;  %v1665_v25 = vadd.f32 %v1664_v52, %v1132_v18 }
 0x29b   :  { %1390 = vst [vmem:[%s3464_s2 + $0x3e8] sm:$0xff] %v1262_v38  ;;  %v1460_v42 = vrot.slane %v1459_v40, 4  ;;  %v2011_v21 = vadd.f32 %v2010_v37, %v1945_v44  ;;  %v2148_v61 = vadd.f32 %v2147_v53, %v1943_v19  ;;  %v2217_v62 = vadd.f32 %v2216_v54, %v1944_v50 }
 0x29c   :  { %1391 = vst [vmem:[%s3464_s2 + $0x3f0] sm:$0xff] %v1263_v48  ;;  %v1529_v22 = vrot.slane %v1528_v11, 4  ;;  %v2080_v55 = vadd.f32 %v2079_v43, %v1946_v47  ;;  %vm1689_vm3 = vcmp.lt.s32.totalorder %v1687_v51, 512 }
 0x29d   :  { %v1461_v56 = vadd.f32 %v1460_v42, %v1459_v40  ;;  %v2012_v59 = vrot.slane %v2011_v21, 4 }
 0x29e   :  { %v1530_v60 = vadd.f32 %v1529_v22, %v1528_v11  ;;  %v2081_v28 = vrot.slane %v2080_v55, 4 }
 0x29f   :  { %v1462_v27 = vrot.slane %v1461_v56, 2  ;;  %v965_v57 = vpop.f32.mrf.mxu2  ;;  %v2013_v58 = vadd.f32 %v2012_v59, %v2011_v21 }
 0x2a0   :  { %v1531_v29 = vrot.slane %v1530_v60, 2  ;;  %v1597_v63 = vadd.f32 %v1596_v23, %v965_v57  ;;  %v1947_v31 = vmul.f32 %v965_v57, %v965_v57  ;;  %v1134_v0 = vpop.f32.mrf.mxu3  ;;  %v2082_v3 = vadd.f32 %v2081_v28, %v2080_v55 }
 0x2a1   :  { %v1463_v1 = vadd.f32 %v1462_v27, %v1461_v56  ;;  %v1264_v4 = vpack.c.bf16 %v1134_v0, %v965_v57  ;;  %v1666_v5 = vadd.f32 %v1665_v25, %v1134_v0  ;;  %v2014_v6 = vrot.slane %v2013_v58, 2 }
 0x2a2   :  { %v1532_v7 = vadd.f32 %v1531_v29, %v1530_v60  ;;  %v1598_v39 = vrot.slane %v1597_v63, 4  ;;  %v2149_v8 = vadd.f32 %v2148_v61, %v1947_v31  ;;  %v2083_v45 = vrot.slane %v2082_v3, 2 }
 0x2a3   :  { %v1464_v12 = vrot.slane %v1463_v1, 1  ;;  %1392 = vst [vmem:[%s3464_s2 + $0x3f8] sm:$0xff] %v1264_v4  ;;  %v1667_v46 = vrot.slane %v1666_v5, 4  ;;  %v1948_v14 = vmul.f32 %v1134_v0, %v1134_v0  ;;  %v2015_v2 = vadd.f32 %v2014_v6, %v2013_v58 }
 0x2a4   :  { %v1533_v9 = vrot.slane %v1532_v7, 1  ;;  %v1599_v49 = vadd.f32 %v1598_v39, %v1597_v63  ;;  %v2150_v20 = vrot.slane %v2149_v8, 4  ;;  %v2084_v24 = vadd.f32 %v2083_v45, %v2082_v3 }
 0x2a5   :  { %v1668_v10 = vadd.f32 %v1667_v46, %v1666_v5  ;;  %v2218_v26 = vadd.f32 %v2217_v62, %v1948_v14  ;;  %v2016_v33 = vrot.slane %v2015_v2, 1  ;;  %v1465_v17 = vadd.f32 %v1464_v12, %v1463_v1 }
 0x2a6   :  { %v1534_v30 = vadd.f32 %v1533_v9, %v1532_v7  ;;  %v1600_v32 = vrot.slane %v1599_v49, 2  ;;  %v2151_v13 = vadd.f32 %v2150_v20, %v2149_v8  ;;  %v2085_v15 = vrot.slane %v2084_v24, 1 }
 0x2a7   :  { %v1669_v16 = vrot.slane %v1668_v10, 2  ;;  %v2219_v35 = vrot.slane %v2218_v26, 4  ;;  %v2017_v48 = vadd.f32 %v2016_v33, %v2015_v2 }
 0x2a8   :  { %v1677_v18 = vrot.slane %v1534_v30, 7  ;;  %v1601_v36 = vadd.f32 %v1600_v32, %v1599_v49  ;;  %v2152_v34 = vrot.slane %v2151_v13, 2  ;;  %v2086_v37 = vadd.f32 %v2085_v15, %v2084_v24 }
 0x2a9   :  { %v1670_v38 = vadd.f32 %v1669_v16, %v1668_v10  ;;  %v2220_v40 = vadd.f32 %v2219_v35, %v2218_v26 }
 0x2aa   :  { %v1681_v41 = vsel %vm1680_vm0, %v1465_v17, %v1677_v18  ;;  %v1602_v43 = vrot.slane %v1601_v36, 1  ;;  %v2153_v44 = vadd.f32 %v2152_v34, %v2151_v13  ;;  %v2229_v11 = vrot.slane %v2086_v37, 7 }
 0x2ab   :  { %v1671_v19 = vrot.slane %v1670_v38, 1  ;;  %v2221_v50 = vrot.slane %v2220_v40, 2 }
 0x2ac   :  { %v1603_v42 = vadd.f32 %v1602_v43, %v1601_v36  ;;  %v2154_v47 = vrot.slane %v2153_v44, 1  ;;  %v2232_v52 = vsel %vm1680_vm0, %v2017_v48, %v2229_v11 }
 0x2ad   :  { %v1672_v21 = vadd.f32 %v1671_v19, %v1670_v38  ;;  %v2222_v22 = vadd.f32 %v2221_v50, %v2220_v40 }
 0x2ae   :  { %v1678_v53 = vrot.slane %v1603_v42, 6  ;;  %v2155_v54 = vadd.f32 %v2154_v47, %v2153_v44 }
 0x2af   :  { %v1679_v56 = vrot.slane %v1672_v21, 5  ;;  %v2223_v55 = vrot.slane %v2222_v22, 1 }
 0x2b0   :  { %v2230_v23 = vrot.slane %v2155_v54, 6 }
 0x2b1   :  { %v1683_v25 = vsel %vm1682_vm1, %v1678_v53, %v1679_v56  ;;  %v2224_v59 = vadd.f32 %v2223_v55, %v2222_v22 }
 0x2b2   :  { %v1685_v60 = vsel %vm1684_vm2, %v1681_v41, %v1683_v25 }
 0x2b3   :  { %1691 = vst.msk [vmem:[%s3465_s3] ss:$8 sm:$0xf] %vm1689_vm3, %v1685_v60  ;;  %v2231_v61 = vrot.slane %v2224_v59, 5 }
 0x2b5   :  { %v2233_v62 = vsel %vm1682_vm1, %v2230_v23, %v2231_v61 }
 0x2b6   :  { %v2234_v27 = vsel %vm1684_vm2, %v2232_v52, %v2233_v62 }
 0x2b7   :  { %2503 = vst.msk [vmem:[%s3465_s3 + $0x1] ss:$8 sm:$0xf] %vm1689_vm3, %v2234_v27 }

// kernel: dec_block_forward.3
= control target key start
LH: loop header
LB: loop body
LE: loop exit
PB: predicated region body
PF: predicated region fallthrough
CT: control target
= control target key end

     0   :  { %s3658_s0 = inlined_call_operand.vmem [shape: bf16[512,512], index: 0, kind: input, shape index: {}]   ;;  %s3659_s1 = inlined_call_operand.vmem [shape: f32[8,512], index: 1, kind: input, shape index: {}]   ;;  %s3660_s2 = inlined_call_operand.vmem [shape: f32[512,512], index: 2, kind: output, shape index: {}]  }
   0x1   :  { %v11_v0 = vld [vmem:[%s3658_s0] sm:$0xff]  ;;  %v12_v2 = vld [vmem:[%s3658_s0 + $0x8] sm:$0xff]  ;;  %v13_v8 = vld [vmem:[%s3658_s0 + $0x10] sm:$0xff] }
   0x2   :  { %v395_v1 = vld [vmem:[%s3659_s1] ss:$8 sm:$0xf]  ;;  %v139_v3 = vunpack.c.l.bf16 %v11_v0  ;;  %v1956_v5 = vld [vmem:[%s3659_s1 + $0x1] ss:$8 sm:$0xf]  ;;  %v140_v6 = vunpack.c.h.bf16 %v11_v0  ;;  %v141_v11 = vunpack.c.l.bf16 %v12_v2  ;;  %v142_v17 = vunpack.c.h.bf16 %v12_v2 }
   0x3   :  { %v1981_v4 = vperm.slane %v395_v1, 0  ;;  %v1986_v7 = vperm.slane %v395_v1, 1  ;;  %v1991_v9 = vperm.slane %v1956_v5, 0  ;;  %v1993_v10 = vperm.slane %v1956_v5, 1  ;;  %v14_v13 = vld [vmem:[%s3658_s0 + $0x18] sm:$0xff]  ;;  %v15_v39 = vld [vmem:[%s3658_s0 + $0x20] sm:$0xff] }
   0x4   :  { %v1995_v12 = vperm.slane %v395_v1, 2  ;;  %v2002_v16 = vperm.slane %v1956_v5, 2  ;;  %v2005_v19 = vperm.slane %v395_v1, 3  ;;  %v2007_v20 = vperm.slane %v1956_v5, 3  ;;  %v16_v40 = vld [vmem:[%s3658_s0 + $0x28] sm:$0xff]  ;;  %v17_v51 = vld [vmem:[%s3658_s0 + $0x30] sm:$0xff] }
   0x5   :  { %v405_v14 = vmul.f32 %v1981_v4, %v139_v3  ;;  %v406_v15 = vmul.f32 %v1986_v7, %v140_v6  ;;  %v143_v21 = vunpack.c.l.bf16 %v13_v8  ;;  %v144_v24 = vunpack.c.h.bf16 %v13_v8 }
   0x6   :  { %v407_v18 = vmul.f32 %v1995_v12, %v141_v11  ;;  %v145_v25 = vunpack.c.l.bf16 %v14_v13  ;;  %v408_v27 = vmul.f32 %v2005_v19, %v142_v17  ;;  %v146_v29 = vunpack.c.h.bf16 %v14_v13  ;;  %v18_v13 = vld [vmem:[%s3658_s0 + $0x38] sm:$0xff] }
   0x7   :  { %v672_v22 = vadd.f32 %v1991_v9, %v405_v14  ;;  %v673_v23 = vadd.f32 %v1993_v10, %v406_v15  ;;  %v409_v28 = vmul.f32 %v1981_v4, %v143_v21  ;;  %v410_v37 = vmul.f32 %v1986_v7, %v144_v24 }
   0x8   :  { %v674_v26 = vadd.f32 %v2002_v16, %v407_v18  ;;  %v675_v33 = vadd.f32 %v2007_v20, %v408_v27  ;;  %v411_v38 = vmul.f32 %v1995_v12, %v145_v25  ;;  %v412_v46 = vmul.f32 %v2005_v19, %v146_v29 }
   0x9   :  { %vm928_vm0 = vcmp.gt.f32.partialorder %v672_v22, 0.0  ;;  %v1184_v30 = vmul.f32 0.01, %v672_v22  ;;  %vm929_vm1 = vcmp.gt.f32.partialorder %v673_v23, 0.0  ;;  %v1185_v31 = vmul.f32 0.01, %v673_v23 }
   0xa   :  { %vm930_vm2 = vcmp.gt.f32.partialorder %v674_v26, 0.0  ;;  %v1186_v32 = vmul.f32 0.01, %v674_v26  ;;  %v676_v34 = vadd.f32 %v1991_v9, %v409_v28  ;;  %vm931_vm3 = vcmp.gt.f32.partialorder %v675_v33, 0.0 }
   0xb   :  { %v1440_v35 = vsel %vm928_vm0, %v672_v22, %v1184_v30  ;;  %v1441_v36 = vsel %vm929_vm1, %v673_v23, %v1185_v31  ;;  %v1187_v42 = vmul.f32 0.01, %v675_v33  ;;  %v677_v44 = vadd.f32 %v1993_v10, %v410_v37  ;;  %v19_v23 = vld [vmem:[%s3658_s0 + $0x40] sm:$0xff]  ;;  %v20_v30 = vld [vmem:[%s3658_s0 + $0x48] sm:$0xff] }
   0xc   :  { %1696 = vst [vmem:[%s3660_s2] sm:$0xff] %v1440_v35  ;;  %v1442_v41 = vsel %vm930_vm2, %v674_v26, %v1186_v32  ;;  %vm932_vm4 = vcmp.gt.f32.partialorder %v676_v34, 0.0  ;;  %v1188_v43 = vmul.f32 0.01, %v676_v34  ;;  %v678_v45 = vadd.f32 %v2002_v16, %v411_v38  ;;  %v21_v35 = vld [vmem:[%s3658_s0 + $0x50] sm:$0xff] }
   0xd   :  { %1697 = vst [vmem:[%s3660_s2 + $0x8] sm:$0xff] %v1441_v36  ;;  %v1443_v47 = vsel %vm931_vm3, %v675_v33, %v1187_v42  ;;  %v147_v48 = vunpack.c.l.bf16 %v15_v39  ;;  %v148_v49 = vunpack.c.h.bf16 %v15_v39  ;;  %v149_v50 = vunpack.c.l.bf16 %v16_v40 }
   0xe   :  { %1698 = vst [vmem:[%s3660_s2 + $0x10] sm:$0xff] %v1442_v41  ;;  %v1444_v52 = vsel %vm932_vm4, %v676_v34, %v1188_v43  ;;  %vm933_vm5 = vcmp.gt.f32.partialorder %v677_v44, 0.0  ;;  %v1189_v53 = vmul.f32 0.01, %v677_v44  ;;  %vm934_vm6 = vcmp.gt.f32.partialorder %v678_v45, 0.0 }
   0xf   :  { %1699 = vst [vmem:[%s3660_s2 + $0x18] sm:$0xff] %v1443_v47  ;;  %v1190_v54 = vmul.f32 0.01, %v678_v45  ;;  %v679_v55 = vadd.f32 %v2007_v20, %v412_v46  ;;  %v413_v56 = vmul.f32 %v1981_v4, %v147_v48  ;;  %v414_v57 = vmul.f32 %v1986_v7, %v148_v49 }
  0x10   :  { %1700 = vst [vmem:[%s3660_s2 + $0x20] sm:$0xff] %v1444_v52  ;;  %v1445_v58 = vsel %vm933_vm5, %v677_v44, %v1189_v53  ;;  %v415_v59 = vmul.f32 %v1995_v12, %v149_v50  ;;  %v150_v60 = vunpack.c.h.bf16 %v16_v40  ;;  %v151_v61 = vunpack.c.l.bf16 %v17_v51 }
  0x11   :  { %1701 = vst [vmem:[%s3660_s2 + $0x28] sm:$0xff] %v1445_v58  ;;  %v1446_v62 = vsel %vm934_vm6, %v678_v45, %v1190_v54  ;;  %vm935_vm7 = vcmp.gt.f32.partialorder %v679_v55, 0.0  ;;  %v1191_v63 = vmul.f32 0.01, %v679_v55  ;;  %v680_v0 = vadd.f32 %v1991_v9, %v413_v56 }
  0x12   :  { %1702 = vst [vmem:[%s3660_s2 + $0x30] sm:$0xff] %v1446_v62  ;;  %v681_v1 = vadd.f32 %v1993_v10, %v414_v57  ;;  %v682_v2 = vadd.f32 %v2002_v16, %v415_v59  ;;  %v416_v3 = vmul.f32 %v2005_v19, %v150_v60  ;;  %v417_v5 = vmul.f32 %v1981_v4, %v151_v61 }
  0x13   :  { %v1447_v6 = vsel %vm935_vm7, %v679_v55, %v1191_v63  ;;  %vm936_vm8 = vcmp.gt.f32.partialorder %v680_v0, 0.0  ;;  %v1192_v8 = vmul.f32 0.01, %v680_v0  ;;  %v152_v11 = vunpack.c.h.bf16 %v17_v51  ;;  %v22_v63 = vld [vmem:[%s3658_s0 + $0x58] sm:$0xff] }
  0x14   :  { %1703 = vst [vmem:[%s3660_s2 + $0x38] sm:$0xff] %v1447_v6  ;;  %vm937_vm9 = vcmp.gt.f32.partialorder %v681_v1, 0.0  ;;  %v1193_v14 = vmul.f32 0.01, %v681_v1  ;;  %vm938_vm10 = vcmp.gt.f32.partialorder %v682_v2, 0.0  ;;  %v683_v15 = vadd.f32 %v2007_v20, %v416_v3  ;;  %v23_v3 = vld [vmem:[%s3658_s0 + $0x60] sm:$0xff] }
  0x15   :  { %v1448_v17 = vsel %vm936_vm8, %v680_v0, %v1192_v8  ;;  %v1194_v18 = vmul.f32 0.01, %v682_v2  ;;  %v684_v21 = vadd.f32 %v1991_v9, %v417_v5  ;;  %v418_v22 = vmul.f32 %v1986_v7, %v152_v11  ;;  %v24_v8 = vld [vmem:[%s3658_s0 + $0x68] sm:$0xff] }
  0x16   :  { %1704 = vst [vmem:[%s3660_s2 + $0x40] sm:$0xff] %v1448_v17  ;;  %v1449_v24 = vsel %vm937_vm9, %v681_v1, %v1193_v14  ;;  %vm939_vm11 = vcmp.gt.f32.partialorder %v683_v15, 0.0  ;;  %v1195_v25 = vmul.f32 0.01, %v683_v15  ;;  %v153_v26 = vunpack.c.l.bf16 %v18_v13 }
  0x17   :  { %1705 = vst [vmem:[%s3660_s2 + $0x48] sm:$0xff] %v1449_v24  ;;  %v1450_v27 = vsel %vm938_vm10, %v682_v2, %v1194_v18  ;;  %vm940_vm12 = vcmp.gt.f32.partialorder %v684_v21, 0.0  ;;  %v1196_v28 = vmul.f32 0.01, %v684_v21  ;;  %v685_v29 = vadd.f32 %v1993_v10, %v418_v22 }
  0x18   :  { %1706 = vst [vmem:[%s3660_s2 + $0x50] sm:$0xff] %v1450_v27  ;;  %v1451_v31 = vsel %vm939_vm11, %v683_v15, %v1195_v25  ;;  %v419_v32 = vmul.f32 %v1995_v12, %v153_v26  ;;  %v154_v33 = vunpack.c.h.bf16 %v18_v13  ;;  %v155_v34 = vunpack.c.l.bf16 %v19_v23  ;;  %v25_v27 = vld [vmem:[%s3658_s0 + $0x70] sm:$0xff] }
  0x19   :  { %1707 = vst [vmem:[%s3660_s2 + $0x58] sm:$0xff] %v1451_v31  ;;  %v1452_v36 = vsel %vm940_vm12, %v684_v21, %v1196_v28  ;;  %vm941_vm13 = vcmp.gt.f32.partialorder %v685_v29, 0.0  ;;  %v1197_v37 = vmul.f32 0.01, %v685_v29  ;;  %v156_v38 = vunpack.c.h.bf16 %v19_v23 }
  0x1a   :  { %1708 = vst [vmem:[%s3660_s2 + $0x60] sm:$0xff] %v1452_v36  ;;  %v686_v39 = vadd.f32 %v2002_v16, %v419_v32  ;;  %v420_v40 = vmul.f32 %v2005_v19, %v154_v33  ;;  %v421_v41 = vmul.f32 %v1981_v4, %v155_v34  ;;  %v157_v42 = vunpack.c.l.bf16 %v20_v30 }
  0x1b   :  { %v1453_v43 = vsel %vm941_vm13, %v685_v29, %v1197_v37  ;;  %v422_v44 = vmul.f32 %v1986_v7, %v156_v38  ;;  %v158_v45 = vunpack.c.h.bf16 %v20_v30  ;;  %v159_v46 = vunpack.c.l.bf16 %v21_v35 }
  0x1c   :  { %1709 = vst [vmem:[%s3660_s2 + $0x68] sm:$0xff] %v1453_v43  ;;  %vm942_vm14 = vcmp.gt.f32.partialorder %v686_v39, 0.0  ;;  %v1198_v47 = vmul.f32 0.01, %v686_v39  ;;  %v687_v48 = vadd.f32 %v2007_v20, %v420_v40  ;;  %v688_v49 = vadd.f32 %v1991_v9, %v421_v41  ;;  %v26_v41 = vld [vmem:[%s3658_s0 + $0x78] sm:$0xff] }
  0x1d   :  { %v689_v50 = vadd.f32 %v1993_v10, %v422_v44  ;;  %v423_v51 = vmul.f32 %v1995_v12, %v157_v42  ;;  %v424_v52 = vmul.f32 %v2005_v19, %v158_v45  ;;  %v425_v53 = vmul.f32 %v1981_v4, %v159_v46 }
  0x1e   :  { %v1454_v54 = vsel %vm942_vm14, %v686_v39, %v1198_v47  ;;  %vm943_vm15 = vcmp.gt.f32.partialorder %v687_v48, 0.0  ;;  %v1199_v55 = vmul.f32 0.01, %v687_v48  ;;  %vm944_vm0 = vcmp.gt.f32.partialorder %v688_v49, 0.0  ;;  %v27_v47 = vld [vmem:[%s3658_s0 + $0x80] sm:$0xff] }
  0x1f   :  { %1710 = vst [vmem:[%s3660_s2 + $0x70] sm:$0xff] %v1454_v54  ;;  %v1200_v56 = vmul.f32 0.01, %v688_v49  ;;  %vm945_vm1 = vcmp.gt.f32.partialorder %v689_v50, 0.0  ;;  %v1201_v57 = vmul.f32 0.01, %v689_v50  ;;  %v690_v58 = vadd.f32 %v2002_v16, %v423_v51 }
  0x20   :  { %v1455_v59 = vsel %vm943_vm15, %v687_v48, %v1199_v55  ;;  %v691_v60 = vadd.f32 %v2007_v20, %v424_v52  ;;  %v692_v61 = vadd.f32 %v1991_v9, %v425_v53  ;;  %v160_v62 = vunpack.c.h.bf16 %v21_v35  ;;  %v28_v52 = vld [vmem:[%s3658_s0 + $0x88] sm:$0xff] }
  0x21   :  { %1711 = vst [vmem:[%s3660_s2 + $0x78] sm:$0xff] %v1455_v59  ;;  %v1456_v0 = vsel %vm944_vm0, %v688_v49, %v1200_v56  ;;  %v1457_v1 = vsel %vm945_vm1, %v689_v50, %v1201_v57  ;;  %vm946_vm2 = vcmp.gt.f32.partialorder %v690_v58, 0.0  ;;  %v1202_v2 = vmul.f32 0.01, %v690_v58 }
  0x22   :  { %1712 = vst [vmem:[%s3660_s2 + $0x80] sm:$0xff] %v1456_v0  ;;  %vm947_vm3 = vcmp.gt.f32.partialorder %v691_v60, 0.0  ;;  %v1203_v5 = vmul.f32 0.01, %v691_v60  ;;  %vm948_vm4 = vcmp.gt.f32.partialorder %v692_v61, 0.0  ;;  %v426_v6 = vmul.f32 %v1986_v7, %v160_v62 }
  0x23   :  { %1713 = vst [vmem:[%s3660_s2 + $0x88] sm:$0xff] %v1457_v1  ;;  %v1458_v11 = vsel %vm946_vm2, %v690_v58, %v1202_v2  ;;  %v1204_v13 = vmul.f32 0.01, %v692_v61  ;;  %v161_v14 = vunpack.c.l.bf16 %v22_v63  ;;  %v162_v15 = vunpack.c.h.bf16 %v22_v63 }
  0x24   :  { %1714 = vst [vmem:[%s3660_s2 + $0x90] sm:$0xff] %v1458_v11  ;;  %v1459_v17 = vsel %vm947_vm3, %v691_v60, %v1203_v5  ;;  %v693_v18 = vadd.f32 %v1993_v10, %v426_v6  ;;  %v163_v21 = vunpack.c.l.bf16 %v23_v3  ;;  %v164_v22 = vunpack.c.h.bf16 %v23_v3 }
  0x25   :  { %1715 = vst [vmem:[%s3660_s2 + $0x98] sm:$0xff] %v1459_v17  ;;  %v1460_v23 = vsel %vm948_vm4, %v692_v61, %v1204_v13  ;;  %v427_v24 = vmul.f32 %v1995_v12, %v161_v14  ;;  %v428_v25 = vmul.f32 %v2005_v19, %v162_v15  ;;  %v165_v26 = vunpack.c.l.bf16 %v24_v8 }
  0x26   :  { %1716 = vst [vmem:[%s3660_s2 + $0xa0] sm:$0xff] %v1460_v23  ;;  %vm949_vm5 = vcmp.gt.f32.partialorder %v693_v18, 0.0  ;;  %v1205_v28 = vmul.f32 0.01, %v693_v18  ;;  %v429_v29 = vmul.f32 %v1981_v4, %v163_v21  ;;  %v430_v30 = vmul.f32 %v1986_v7, %v164_v22 }
  0x27   :  { %v694_v31 = vadd.f32 %v2002_v16, %v427_v24  ;;  %v695_v32 = vadd.f32 %v2007_v20, %v428_v25  ;;  %v431_v33 = vmul.f32 %v1995_v12, %v165_v26  ;;  %v166_v34 = vunpack.c.h.bf16 %v24_v8 }
  0x28   :  { %v1461_v35 = vsel %vm949_vm5, %v693_v18, %v1205_v28  ;;  %v696_v36 = vadd.f32 %v1991_v9, %v429_v29  ;;  %v697_v37 = vadd.f32 %v1993_v10, %v430_v30  ;;  %v167_v38 = vunpack.c.l.bf16 %v25_v27  ;;  %v29_v28 = vld [vmem:[%s3658_s0 + $0x90] sm:$0xff] }
  0x29   :  { %1717 = vst [vmem:[%s3660_s2 + $0xa8] sm:$0xff] %v1461_v35  ;;  %vm950_vm6 = vcmp.gt.f32.partialorder %v694_v31, 0.0  ;;  %v1206_v39 = vmul.f32 0.01, %v694_v31  ;;  %vm951_vm7 = vcmp.gt.f32.partialorder %v695_v32, 0.0  ;;  %v698_v40 = vadd.f32 %v2002_v16, %v431_v33  ;;  %v31_v35 = vld [vmem:[%s3658_s0 + $0xa0] sm:$0xff] }
  0x2a   :  { %v1207_v42 = vmul.f32 0.01, %v695_v32  ;;  %vm952_vm8 = vcmp.gt.f32.partialorder %v696_v36, 0.0  ;;  %v1208_v43 = vmul.f32 0.01, %v696_v36  ;;  %vm953_vm9 = vcmp.gt.f32.partialorder %v697_v37, 0.0 }
  0x2b   :  { %v1462_v44 = vsel %vm950_vm6, %v694_v31, %v1206_v39  ;;  %v1209_v45 = vmul.f32 0.01, %v697_v37  ;;  %vm954_vm10 = vcmp.gt.f32.partialorder %v698_v40, 0.0  ;;  %v1210_v46 = vmul.f32 0.01, %v698_v40 }
  0x2c   :  { %1718 = vst [vmem:[%s3660_s2 + $0xb0] sm:$0xff] %v1462_v44  ;;  %v1463_v48 = vsel %vm951_vm7, %v695_v32, %v1207_v42  ;;  %v1464_v49 = vsel %vm952_vm8, %v696_v36, %v1208_v43  ;;  %v432_v50 = vmul.f32 %v2005_v19, %v166_v34  ;;  %v433_v51 = vmul.f32 %v1981_v4, %v167_v38  ;;  %v30_v32 = vld [vmem:[%s3658_s0 + $0x98] sm:$0xff] }
  0x2d   :  { %1719 = vst [vmem:[%s3660_s2 + $0xb8] sm:$0xff] %v1463_v48  ;;  %v1465_v53 = vsel %vm953_vm9, %v697_v37, %v1209_v45  ;;  %v1466_v54 = vsel %vm954_vm10, %v698_v40, %v1210_v46  ;;  %v168_v55 = vunpack.c.h.bf16 %v25_v27  ;;  %v169_v56 = vunpack.c.l.bf16 %v26_v41  ;;  %v32_v48 = vld [vmem:[%s3658_s0 + $0xa8] sm:$0xff] }
  0x2e   :  { %1720 = vst [vmem:[%s3660_s2 + $0xc0] sm:$0xff] %v1464_v49  ;;  %v699_v57 = vadd.f32 %v2007_v20, %v432_v50  ;;  %v700_v58 = vadd.f32 %v1991_v9, %v433_v51  ;;  %v170_v59 = vunpack.c.h.bf16 %v26_v41  ;;  %v171_v60 = vunpack.c.l.bf16 %v27_v47 }
  0x2f   :  { %1721 = vst [vmem:[%s3660_s2 + $0xc8] sm:$0xff] %v1465_v53  ;;  %v434_v61 = vmul.f32 %v1986_v7, %v168_v55  ;;  %v435_v62 = vmul.f32 %v1995_v12, %v169_v56  ;;  %v172_v63 = vunpack.c.h.bf16 %v27_v47  ;;  %v173_v0 = vunpack.c.l.bf16 %v28_v52 }
  0x30   :  { %1722 = vst [vmem:[%s3660_s2 + $0xd0] sm:$0xff] %v1466_v54  ;;  %vm955_vm11 = vcmp.gt.f32.partialorder %v699_v57, 0.0  ;;  %v1211_v1 = vmul.f32 0.01, %v699_v57  ;;  %vm956_vm12 = vcmp.gt.f32.partialorder %v700_v58, 0.0  ;;  %v436_v2 = vmul.f32 %v2005_v19, %v170_v59 }
  0x31   :  { %v1212_v3 = vmul.f32 0.01, %v700_v58  ;;  %v701_v5 = vadd.f32 %v1993_v10, %v434_v61  ;;  %v702_v6 = vadd.f32 %v2002_v16, %v435_v62  ;;  %v437_v8 = vmul.f32 %v1981_v4, %v171_v60  ;;  %v33_v62 = vld [vmem:[%s3658_s0 + $0xb0] sm:$0xff] }
  0x32   :  { %v1467_v11 = vsel %vm955_vm11, %v699_v57, %v1211_v1  ;;  %v703_v13 = vadd.f32 %v2007_v20, %v436_v2  ;;  %v438_v14 = vmul.f32 %v1986_v7, %v172_v63  ;;  %v439_v15 = vmul.f32 %v1995_v12, %v173_v0 }
  0x33   :  { %1723 = vst [vmem:[%s3660_s2 + $0xd8] sm:$0xff] %v1467_v11  ;;  %v1468_v17 = vsel %vm956_vm12, %v700_v58, %v1212_v3  ;;  %vm957_vm13 = vcmp.gt.f32.partialorder %v701_v5, 0.0  ;;  %v1213_v18 = vmul.f32 0.01, %v701_v5  ;;  %vm958_vm14 = vcmp.gt.f32.partialorder %v702_v6, 0.0 }
  0x34   :  { %1724 = vst [vmem:[%s3660_s2 + $0xe0] sm:$0xff] %v1468_v17  ;;  %v1214_v21 = vmul.f32 0.01, %v702_v6  ;;  %vm959_vm15 = vcmp.gt.f32.partialorder %v703_v13, 0.0  ;;  %v1215_v22 = vmul.f32 0.01, %v703_v13  ;;  %v704_v23 = vadd.f32 %v1991_v9, %v437_v8 }
  0x35   :  { %v1469_v24 = vsel %vm957_vm13, %v701_v5, %v1213_v18  ;;  %v705_v25 = vadd.f32 %v1993_v10, %v438_v14  ;;  %v706_v26 = vadd.f32 %v2002_v16, %v439_v15  ;;  %v174_v27 = vunpack.c.h.bf16 %v28_v52  ;;  %v34_v5 = vld [vmem:[%s3658_s0 + $0xb8] sm:$0xff]  ;;  %v35_v14 = vld [vmem:[%s3658_s0 + $0xc0] sm:$0xff] }
  0x36   :  { %1725 = vst [vmem:[%s3660_s2 + $0xe8] sm:$0xff] %v1469_v24  ;;  %v1470_v29 = vsel %vm958_vm14, %v702_v6, %v1214_v21  ;;  %v1471_v30 = vsel %vm959_vm15, %v703_v13, %v1215_v22  ;;  %vm960_vm0 = vcmp.gt.f32.partialorder %v704_v23, 0.0  ;;  %v1216_v31 = vmul.f32 0.01, %v704_v23 }
  0x37   :  { %1726 = vst [vmem:[%s3660_s2 + $0xf0] sm:$0xff] %v1470_v29  ;;  %vm961_vm1 = vcmp.gt.f32.partialorder %v705_v25, 0.0  ;;  %v1217_v33 = vmul.f32 0.01, %v705_v25  ;;  %vm962_vm2 = vcmp.gt.f32.partialorder %v706_v26, 0.0  ;;  %v440_v34 = vmul.f32 %v2005_v19, %v174_v27 }
  0x38   :  { %1727 = vst [vmem:[%s3660_s2 + $0xf8] sm:$0xff] %v1471_v30  ;;  %v1472_v36 = vsel %vm960_vm0, %v704_v23, %v1216_v31  ;;  %v1218_v37 = vmul.f32 0.01, %v706_v26  ;;  %v175_v38 = vunpack.c.l.bf16 %v29_v28  ;;  %v176_v39 = vunpack.c.h.bf16 %v29_v28 }
  0x39   :  { %1728 = vst [vmem:[%s3660_s2 + $0x100] sm:$0xff] %v1472_v36  ;;  %v1473_v40 = vsel %vm961_vm1, %v705_v25, %v1217_v33  ;;  %v707_v41 = vadd.f32 %v2007_v20, %v440_v34  ;;  %v177_v42 = vunpack.c.l.bf16 %v30_v32  ;;  %v178_v43 = vunpack.c.h.bf16 %v30_v32 }
  0x3a   :  { %1729 = vst [vmem:[%s3660_s2 + $0x108] sm:$0xff] %v1473_v40  ;;  %v1474_v44 = vsel %vm962_vm2, %v706_v26, %v1218_v37  ;;  %v441_v45 = vmul.f32 %v1981_v4, %v175_v38  ;;  %v442_v46 = vmul.f32 %v1986_v7, %v176_v39  ;;  %v179_v47 = vunpack.c.l.bf16 %v31_v35 }
  0x3b   :  { %1730 = vst [vmem:[%s3660_s2 + $0x110] sm:$0xff] %v1474_v44  ;;  %vm963_vm3 = vcmp.gt.f32.partialorder %v707_v41, 0.0  ;;  %v1219_v49 = vmul.f32 0.01, %v707_v41  ;;  %v443_v50 = vmul.f32 %v1995_v12, %v177_v42  ;;  %v444_v51 = vmul.f32 %v2005_v19, %v178_v43 }
  0x3c   :  { %v708_v52 = vadd.f32 %v1991_v9, %v441_v45  ;;  %v709_v53 = vadd.f32 %v1993_v10, %v442_v46  ;;  %v445_v54 = vmul.f32 %v1981_v4, %v179_v47  ;;  %v180_v55 = vunpack.c.h.bf16 %v31_v35 }
  0x3d   :  { %v1475_v56 = vsel %vm963_vm3, %v707_v41, %v1219_v49  ;;  %v710_v57 = vadd.f32 %v2002_v16, %v443_v50  ;;  %v711_v58 = vadd.f32 %v2007_v20, %v444_v51  ;;  %v181_v59 = vunpack.c.l.bf16 %v32_v48  ;;  %v36_v49 = vld [vmem:[%s3658_s0 + $0xc8] sm:$0xff] }
  0x3e   :  { %1731 = vst [vmem:[%s3660_s2 + $0x118] sm:$0xff] %v1475_v56  ;;  %vm964_vm4 = vcmp.gt.f32.partialorder %v708_v52, 0.0  ;;  %v1220_v60 = vmul.f32 0.01, %v708_v52  ;;  %vm965_vm5 = vcmp.gt.f32.partialorder %v709_v53, 0.0  ;;  %v712_v61 = vadd.f32 %v1991_v9, %v445_v54  ;;  %v38_v56 = vld [vmem:[%s3658_s0 + $0xd8] sm:$0xff] }
  0x3f   :  { %v1221_v63 = vmul.f32 0.01, %v709_v53  ;;  %vm966_vm6 = vcmp.gt.f32.partialorder %v710_v57, 0.0  ;;  %v1222_v0 = vmul.f32 0.01, %v710_v57  ;;  %vm967_vm7 = vcmp.gt.f32.partialorder %v711_v58, 0.0 }
  0x40   :  { %v1476_v1 = vsel %vm964_vm4, %v708_v52, %v1220_v60  ;;  %v1223_v2 = vmul.f32 0.01, %v711_v58  ;;  %vm968_vm8 = vcmp.gt.f32.partialorder %v712_v61, 0.0  ;;  %v1224_v3 = vmul.f32 0.01, %v712_v61 }
  0x41   :  { %1732 = vst [vmem:[%s3660_s2 + $0x120] sm:$0xff] %v1476_v1  ;;  %v1477_v6 = vsel %vm965_vm5, %v709_v53, %v1221_v63  ;;  %v1478_v8 = vsel %vm966_vm6, %v710_v57, %v1222_v0  ;;  %v446_v11 = vmul.f32 %v1986_v7, %v180_v55  ;;  %v447_v13 = vmul.f32 %v1995_v12, %v181_v59  ;;  %v37_v53 = vld [vmem:[%s3658_s0 + $0xd0] sm:$0xff] }
  0x42   :  { %1733 = vst [vmem:[%s3660_s2 + $0x128] sm:$0xff] %v1477_v6  ;;  %v1479_v15 = vsel %vm967_vm7, %v711_v58, %v1223_v2  ;;  %v1480_v17 = vsel %vm968_vm8, %v712_v61, %v1224_v3  ;;  %v182_v18 = vunpack.c.h.bf16 %v32_v48  ;;  %v183_v21 = vunpack.c.l.bf16 %v33_v62  ;;  %v39_v6 = vld [vmem:[%s3658_s0 + $0xe0] sm:$0xff] }
  0x43   :  { %1734 = vst [vmem:[%s3660_s2 + $0x130] sm:$0xff] %v1478_v8  ;;  %v713_v22 = vadd.f32 %v1993_v10, %v446_v11  ;;  %v714_v23 = vadd.f32 %v2002_v16, %v447_v13  ;;  %v184_v24 = vunpack.c.h.bf16 %v33_v62  ;;  %v185_v25 = vunpack.c.l.bf16 %v34_v5 }
  0x44   :  { %1735 = vst [vmem:[%s3660_s2 + $0x138] sm:$0xff] %v1479_v15  ;;  %v448_v26 = vmul.f32 %v2005_v19, %v182_v18  ;;  %v449_v27 = vmul.f32 %v1981_v4, %v183_v21  ;;  %v186_v28 = vunpack.c.h.bf16 %v34_v5  ;;  %v187_v29 = vunpack.c.l.bf16 %v35_v14 }
  0x45   :  { %1736 = vst [vmem:[%s3660_s2 + $0x140] sm:$0xff] %v1480_v17  ;;  %vm969_vm9 = vcmp.gt.f32.partialorder %v713_v22, 0.0  ;;  %v1225_v30 = vmul.f32 0.01, %v713_v22  ;;  %vm970_vm10 = vcmp.gt.f32.partialorder %v714_v23, 0.0  ;;  %v450_v31 = vmul.f32 %v1986_v7, %v184_v24 }
  0x46   :  { %v1226_v32 = vmul.f32 0.01, %v714_v23  ;;  %v715_v33 = vadd.f32 %v2007_v20, %v448_v26  ;;  %v716_v34 = vadd.f32 %v1991_v9, %v449_v27  ;;  %v451_v35 = vmul.f32 %v1995_v12, %v185_v25  ;;  %v40_v27 = vld [vmem:[%s3658_s0 + $0xe8] sm:$0xff] }
  0x47   :  { %v1481_v36 = vsel %vm969_vm9, %v713_v22, %v1225_v30  ;;  %v717_v37 = vadd.f32 %v1993_v10, %v450_v31  ;;  %v452_v38 = vmul.f32 %v2005_v19, %v186_v28  ;;  %v453_v39 = vmul.f32 %v1981_v4, %v187_v29 }
  0x48   :  { %1737 = vst [vmem:[%s3660_s2 + $0x148] sm:$0xff] %v1481_v36  ;;  %v1482_v40 = vsel %vm970_vm10, %v714_v23, %v1226_v32  ;;  %vm971_vm11 = vcmp.gt.f32.partialorder %v715_v33, 0.0  ;;  %v1227_v41 = vmul.f32 0.01, %v715_v33  ;;  %vm972_vm12 = vcmp.gt.f32.partialorder %v716_v34, 0.0 }
  0x49   :  { %1738 = vst [vmem:[%s3660_s2 + $0x150] sm:$0xff] %v1482_v40  ;;  %v1228_v42 = vmul.f32 0.01, %v716_v34  ;;  %vm973_vm13 = vcmp.gt.f32.partialorder %v717_v37, 0.0  ;;  %v1229_v43 = vmul.f32 0.01, %v717_v37  ;;  %v718_v44 = vadd.f32 %v2002_v16, %v451_v35 }
  0x4a   :  { %v1483_v45 = vsel %vm971_vm11, %v715_v33, %v1227_v41  ;;  %v719_v46 = vadd.f32 %v2007_v20, %v452_v38  ;;  %v720_v47 = vadd.f32 %v1991_v9, %v453_v39  ;;  %v188_v48 = vunpack.c.h.bf16 %v35_v14  ;;  %v41_v33 = vld [vmem:[%s3658_s0 + $0xf0] sm:$0xff]  ;;  %v42_v38 = vld [vmem:[%s3658_s0 + $0xf8] sm:$0xff] }
  0x4b   :  { %1739 = vst [vmem:[%s3660_s2 + $0x158] sm:$0xff] %v1483_v45  ;;  %v1484_v50 = vsel %vm972_vm12, %v716_v34, %v1228_v42  ;;  %v1485_v51 = vsel %vm973_vm13, %v717_v37, %v1229_v43  ;;  %vm974_vm14 = vcmp.gt.f32.partialorder %v718_v44, 0.0  ;;  %v1230_v52 = vmul.f32 0.01, %v718_v44 }
  0x4c   :  { %1740 = vst [vmem:[%s3660_s2 + $0x160] sm:$0xff] %v1484_v50  ;;  %vm975_vm15 = vcmp.gt.f32.partialorder %v719_v46, 0.0  ;;  %v1231_v54 = vmul.f32 0.01, %v719_v46  ;;  %vm976_vm0 = vcmp.gt.f32.partialorder %v720_v47, 0.0  ;;  %v454_v55 = vmul.f32 %v1986_v7, %v188_v48 }
  0x4d   :  { %1741 = vst [vmem:[%s3660_s2 + $0x168] sm:$0xff] %v1485_v51  ;;  %v1486_v57 = vsel %vm974_vm14, %v718_v44, %v1230_v52  ;;  %v1232_v58 = vmul.f32 0.01, %v720_v47  ;;  %v189_v59 = vunpack.c.l.bf16 %v36_v49  ;;  %v190_v60 = vunpack.c.h.bf16 %v36_v49 }
  0x4e   :  { %1742 = vst [vmem:[%s3660_s2 + $0x170] sm:$0xff] %v1486_v57  ;;  %v1487_v61 = vsel %vm975_vm15, %v719_v46, %v1231_v54  ;;  %v721_v62 = vadd.f32 %v1993_v10, %v454_v55  ;;  %v191_v63 = vunpack.c.l.bf16 %v37_v53  ;;  %v192_v0 = vunpack.c.h.bf16 %v37_v53 }
  0x4f   :  { %1743 = vst [vmem:[%s3660_s2 + $0x178] sm:$0xff] %v1487_v61  ;;  %v1488_v1 = vsel %vm976_vm0, %v720_v47, %v1232_v58  ;;  %v455_v2 = vmul.f32 %v1995_v12, %v189_v59  ;;  %v456_v3 = vmul.f32 %v2005_v19, %v190_v60  ;;  %v193_v5 = vunpack.c.l.bf16 %v38_v56 }
  0x50   :  { %1744 = vst [vmem:[%s3660_s2 + $0x180] sm:$0xff] %v1488_v1  ;;  %vm977_vm1 = vcmp.gt.f32.partialorder %v721_v62, 0.0  ;;  %v1233_v8 = vmul.f32 0.01, %v721_v62  ;;  %v457_v11 = vmul.f32 %v1981_v4, %v191_v63  ;;  %v458_v13 = vmul.f32 %v1986_v7, %v192_v0 }
  0x51   :  { %v722_v14 = vadd.f32 %v2002_v16, %v455_v2  ;;  %v723_v15 = vadd.f32 %v2007_v20, %v456_v3  ;;  %v459_v17 = vmul.f32 %v1995_v12, %v193_v5  ;;  %v194_v18 = vunpack.c.h.bf16 %v38_v56 }
  0x52   :  { %v1489_v21 = vsel %vm977_vm1, %v721_v62, %v1233_v8  ;;  %v724_v22 = vadd.f32 %v1991_v9, %v457_v11  ;;  %v725_v23 = vadd.f32 %v1993_v10, %v458_v13  ;;  %v195_v24 = vunpack.c.l.bf16 %v39_v6  ;;  %v43_v8 = vld [vmem:[%s3658_s0 + $0x100] sm:$0xff] }
  0x53   :  { %1745 = vst [vmem:[%s3660_s2 + $0x188] sm:$0xff] %v1489_v21  ;;  %vm978_vm2 = vcmp.gt.f32.partialorder %v722_v14, 0.0  ;;  %v1234_v25 = vmul.f32 0.01, %v722_v14  ;;  %vm979_vm3 = vcmp.gt.f32.partialorder %v723_v15, 0.0  ;;  %v726_v26 = vadd.f32 %v2002_v16, %v459_v17  ;;  %v45_v21 = vld [vmem:[%s3658_s0 + $0x110] sm:$0xff] }
  0x54   :  { %v1235_v28 = vmul.f32 0.01, %v723_v15  ;;  %vm980_vm4 = vcmp.gt.f32.partialorder %v724_v22, 0.0  ;;  %v1236_v29 = vmul.f32 0.01, %v724_v22  ;;  %vm981_vm5 = vcmp.gt.f32.partialorder %v725_v23, 0.0 }
  0x55   :  { %v1490_v30 = vsel %vm978_vm2, %v722_v14, %v1234_v25  ;;  %v1237_v31 = vmul.f32 0.01, %v725_v23  ;;  %vm982_vm6 = vcmp.gt.f32.partialorder %v726_v26, 0.0  ;;  %v1238_v32 = vmul.f32 0.01, %v726_v26 }
  0x56   :  { %1746 = vst [vmem:[%s3660_s2 + $0x190] sm:$0xff] %v1490_v30  ;;  %v1491_v34 = vsel %vm979_vm3, %v723_v15, %v1235_v28  ;;  %v1492_v35 = vsel %vm980_vm4, %v724_v22, %v1236_v29  ;;  %v460_v36 = vmul.f32 %v2005_v19, %v194_v18  ;;  %v461_v37 = vmul.f32 %v1981_v4, %v195_v24  ;;  %v44_v15 = vld [vmem:[%s3658_s0 + $0x108] sm:$0xff] }
  0x57   :  { %1747 = vst [vmem:[%s3660_s2 + $0x198] sm:$0xff] %v1491_v34  ;;  %v1493_v39 = vsel %vm981_vm5, %v725_v23, %v1237_v31  ;;  %v1494_v40 = vsel %vm982_vm6, %v726_v26, %v1238_v32  ;;  %v196_v41 = vunpack.c.h.bf16 %v39_v6  ;;  %v197_v42 = vunpack.c.l.bf16 %v40_v27  ;;  %v46_v34 = vld [vmem:[%s3658_s0 + $0x118] sm:$0xff] }
  0x58   :  { %1748 = vst [vmem:[%s3660_s2 + $0x1a0] sm:$0xff] %v1492_v35  ;;  %v727_v43 = vadd.f32 %v2007_v20, %v460_v36  ;;  %v728_v44 = vadd.f32 %v1991_v9, %v461_v37  ;;  %v198_v45 = vunpack.c.h.bf16 %v40_v27  ;;  %v199_v46 = vunpack.c.l.bf16 %v41_v33 }
  0x59   :  { %1749 = vst [vmem:[%s3660_s2 + $0x1a8] sm:$0xff] %v1493_v39  ;;  %v462_v47 = vmul.f32 %v1986_v7, %v196_v41  ;;  %v463_v48 = vmul.f32 %v1995_v12, %v197_v42  ;;  %v200_v49 = vunpack.c.h.bf16 %v41_v33  ;;  %v201_v50 = vunpack.c.l.bf16 %v42_v38 }
  0x5a   :  { %1750 = vst [vmem:[%s3660_s2 + $0x1b0] sm:$0xff] %v1494_v40  ;;  %vm983_vm7 = vcmp.gt.f32.partialorder %v727_v43, 0.0  ;;  %v1239_v51 = vmul.f32 0.01, %v727_v43  ;;  %vm984_vm8 = vcmp.gt.f32.partialorder %v728_v44, 0.0  ;;  %v464_v52 = vmul.f32 %v2005_v19, %v198_v45 }
  0x5b   :  { %v1240_v53 = vmul.f32 0.01, %v728_v44  ;;  %v729_v54 = vadd.f32 %v1993_v10, %v462_v47  ;;  %v730_v55 = vadd.f32 %v2002_v16, %v463_v48  ;;  %v465_v56 = vmul.f32 %v1981_v4, %v199_v46  ;;  %v47_v48 = vld [vmem:[%s3658_s0 + $0x120] sm:$0xff] }
  0x5c   :  { %v1495_v57 = vsel %vm983_vm7, %v727_v43, %v1239_v51  ;;  %v731_v58 = vadd.f32 %v2007_v20, %v464_v52  ;;  %v466_v59 = vmul.f32 %v1986_v7, %v200_v49  ;;  %v467_v60 = vmul.f32 %v1995_v12, %v201_v50 }
  0x5d   :  { %1751 = vst [vmem:[%s3660_s2 + $0x1b8] sm:$0xff] %v1495_v57  ;;  %v1496_v61 = vsel %vm984_vm8, %v728_v44, %v1240_v53  ;;  %vm985_vm9 = vcmp.gt.f32.partialorder %v729_v54, 0.0  ;;  %v1241_v62 = vmul.f32 0.01, %v729_v54  ;;  %vm986_vm10 = vcmp.gt.f32.partialorder %v730_v55, 0.0 }
  0x5e   :  { %1752 = vst [vmem:[%s3660_s2 + $0x1c0] sm:$0xff] %v1496_v61  ;;  %v1242_v63 = vmul.f32 0.01, %v730_v55  ;;  %vm987_vm11 = vcmp.gt.f32.partialorder %v731_v58, 0.0  ;;  %v1243_v0 = vmul.f32 0.01, %v731_v58  ;;  %v732_v1 = vadd.f32 %v1991_v9, %v465_v56 }
  0x5f   :  { %v1497_v2 = vsel %vm985_vm9, %v729_v54, %v1241_v62  ;;  %v733_v3 = vadd.f32 %v1993_v10, %v466_v59  ;;  %v734_v5 = vadd.f32 %v2002_v16, %v467_v60  ;;  %v202_v6 = vunpack.c.h.bf16 %v42_v38  ;;  %v48_v54 = vld [vmem:[%s3658_s0 + $0x128] sm:$0xff]  ;;  %v49_v59 = vld [vmem:[%s3658_s0 + $0x130] sm:$0xff] }
  0x60   :  { %1753 = vst [vmem:[%s3660_s2 + $0x1c8] sm:$0xff] %v1497_v2  ;;  %v1498_v11 = vsel %vm986_vm10, %v730_v55, %v1242_v63  ;;  %v1499_v13 = vsel %vm987_vm11, %v731_v58, %v1243_v0  ;;  %vm988_vm12 = vcmp.gt.f32.partialorder %v732_v1, 0.0  ;;  %v1244_v14 = vmul.f32 0.01, %v732_v1 }
  0x61   :  { %1754 = vst [vmem:[%s3660_s2 + $0x1d0] sm:$0xff] %v1498_v11  ;;  %vm989_vm13 = vcmp.gt.f32.partialorder %v733_v3, 0.0  ;;  %v1245_v17 = vmul.f32 0.01, %v733_v3  ;;  %vm990_vm14 = vcmp.gt.f32.partialorder %v734_v5, 0.0  ;;  %v468_v18 = vmul.f32 %v2005_v19, %v202_v6 }
  0x62   :  { %1755 = vst [vmem:[%s3660_s2 + $0x1d8] sm:$0xff] %v1499_v13  ;;  %v1500_v22 = vsel %vm988_vm12, %v732_v1, %v1244_v14  ;;  %v1246_v23 = vmul.f32 0.01, %v734_v5  ;;  %v203_v24 = vunpack.c.l.bf16 %v43_v8  ;;  %v204_v25 = vunpack.c.h.bf16 %v43_v8 }
  0x63   :  { %1756 = vst [vmem:[%s3660_s2 + $0x1e0] sm:$0xff] %v1500_v22  ;;  %v1501_v26 = vsel %vm989_vm13, %v733_v3, %v1245_v17  ;;  %v735_v27 = vadd.f32 %v2007_v20, %v468_v18  ;;  %v205_v28 = vunpack.c.l.bf16 %v44_v15  ;;  %v206_v29 = vunpack.c.h.bf16 %v44_v15 }
  0x64   :  { %1757 = vst [vmem:[%s3660_s2 + $0x1e8] sm:$0xff] %v1501_v26  ;;  %v1502_v30 = vsel %vm990_vm14, %v734_v5, %v1246_v23  ;;  %v469_v31 = vmul.f32 %v1981_v4, %v203_v24  ;;  %v470_v32 = vmul.f32 %v1986_v7, %v204_v25  ;;  %v207_v33 = vunpack.c.l.bf16 %v45_v21 }
  0x65   :  { %1758 = vst [vmem:[%s3660_s2 + $0x1f0] sm:$0xff] %v1502_v30  ;;  %vm991_vm15 = vcmp.gt.f32.partialorder %v735_v27, 0.0  ;;  %v1247_v35 = vmul.f32 0.01, %v735_v27  ;;  %v471_v36 = vmul.f32 %v1995_v12, %v205_v28  ;;  %v472_v37 = vmul.f32 %v2005_v19, %v206_v29 }
  0x66   :  { %v736_v38 = vadd.f32 %v1991_v9, %v469_v31  ;;  %v737_v39 = vadd.f32 %v1993_v10, %v470_v32  ;;  %v473_v40 = vmul.f32 %v1981_v4, %v207_v33  ;;  %v208_v41 = vunpack.c.h.bf16 %v45_v21 }
  0x67   :  { %v1503_v42 = vsel %vm991_vm15, %v735_v27, %v1247_v35  ;;  %v738_v43 = vadd.f32 %v2002_v16, %v471_v36  ;;  %v739_v44 = vadd.f32 %v2007_v20, %v472_v37  ;;  %v209_v45 = vunpack.c.l.bf16 %v46_v34  ;;  %v50_v35 = vld [vmem:[%s3658_s0 + $0x138] sm:$0xff] }
  0x68   :  { %1759 = vst [vmem:[%s3660_s2 + $0x1f8] sm:$0xff] %v1503_v42  ;;  %vm992_vm0 = vcmp.gt.f32.partialorder %v736_v38, 0.0  ;;  %v1248_v46 = vmul.f32 0.01, %v736_v38  ;;  %vm993_vm1 = vcmp.gt.f32.partialorder %v737_v39, 0.0  ;;  %v740_v47 = vadd.f32 %v1991_v9, %v473_v40  ;;  %v52_v42 = vld [vmem:[%s3658_s0 + $0x148] sm:$0xff] }
  0x69   :  { %v1249_v49 = vmul.f32 0.01, %v737_v39  ;;  %vm994_vm2 = vcmp.gt.f32.partialorder %v738_v43, 0.0  ;;  %v1250_v50 = vmul.f32 0.01, %v738_v43  ;;  %vm995_vm3 = vcmp.gt.f32.partialorder %v739_v44, 0.0 }
  0x6a   :  { %v1504_v51 = vsel %vm992_vm0, %v736_v38, %v1248_v46  ;;  %v1251_v52 = vmul.f32 0.01, %v739_v44  ;;  %vm996_vm4 = vcmp.gt.f32.partialorder %v740_v47, 0.0  ;;  %v1252_v53 = vmul.f32 0.01, %v740_v47 }
  0x6b   :  { %1760 = vst [vmem:[%s3660_s2 + $0x200] sm:$0xff] %v1504_v51  ;;  %v1505_v55 = vsel %vm993_vm1, %v737_v39, %v1249_v49  ;;  %v1506_v56 = vsel %vm994_vm2, %v738_v43, %v1250_v50  ;;  %v474_v57 = vmul.f32 %v1986_v7, %v208_v41  ;;  %v475_v58 = vmul.f32 %v1995_v12, %v209_v45  ;;  %v51_v39 = vld [vmem:[%s3658_s0 + $0x140] sm:$0xff] }
  0x6c   :  { %1761 = vst [vmem:[%s3660_s2 + $0x208] sm:$0xff] %v1505_v55  ;;  %v1507_v60 = vsel %vm995_vm3, %v739_v44, %v1251_v52  ;;  %v1508_v61 = vsel %vm996_vm4, %v740_v47, %v1252_v53  ;;  %v210_v62 = vunpack.c.h.bf16 %v46_v34  ;;  %v211_v63 = vunpack.c.l.bf16 %v47_v48  ;;  %v53_v55 = vld [vmem:[%s3658_s0 + $0x150] sm:$0xff] }
  0x6d   :  { %1762 = vst [vmem:[%s3660_s2 + $0x210] sm:$0xff] %v1506_v56  ;;  %v741_v0 = vadd.f32 %v1993_v10, %v474_v57  ;;  %v742_v1 = vadd.f32 %v2002_v16, %v475_v58  ;;  %v212_v2 = vunpack.c.h.bf16 %v47_v48  ;;  %v213_v3 = vunpack.c.l.bf16 %v48_v54 }
  0x6e   :  { %1763 = vst [vmem:[%s3660_s2 + $0x218] sm:$0xff] %v1507_v60  ;;  %v476_v5 = vmul.f32 %v2005_v19, %v210_v62  ;;  %v477_v6 = vmul.f32 %v1981_v4, %v211_v63  ;;  %v214_v8 = vunpack.c.h.bf16 %v48_v54  ;;  %v215_v11 = vunpack.c.l.bf16 %v49_v59 }
  0x6f   :  { %1764 = vst [vmem:[%s3660_s2 + $0x220] sm:$0xff] %v1508_v61  ;;  %vm997_vm5 = vcmp.gt.f32.partialorder %v741_v0, 0.0  ;;  %v1253_v13 = vmul.f32 0.01, %v741_v0  ;;  %vm998_vm6 = vcmp.gt.f32.partialorder %v742_v1, 0.0  ;;  %v478_v14 = vmul.f32 %v1986_v7, %v212_v2 }
  0x70   :  { %v1254_v15 = vmul.f32 0.01, %v742_v1  ;;  %v743_v17 = vadd.f32 %v2007_v20, %v476_v5  ;;  %v744_v18 = vadd.f32 %v1991_v9, %v477_v6  ;;  %v479_v21 = vmul.f32 %v1995_v12, %v213_v3  ;;  %v54_v6 = vld [vmem:[%s3658_s0 + $0x158] sm:$0xff] }
  0x71   :  { %v1509_v22 = vsel %vm997_vm5, %v741_v0, %v1253_v13  ;;  %v745_v23 = vadd.f32 %v1993_v10, %v478_v14  ;;  %v480_v24 = vmul.f32 %v2005_v19, %v214_v8  ;;  %v481_v25 = vmul.f32 %v1981_v4, %v215_v11 }
  0x72   :  { %1765 = vst [vmem:[%s3660_s2 + $0x228] sm:$0xff] %v1509_v22  ;;  %v1510_v26 = vsel %vm998_vm6, %v742_v1, %v1254_v15  ;;  %vm999_vm7 = vcmp.gt.f32.partialorder %v743_v17, 0.0  ;;  %v1255_v27 = vmul.f32 0.01, %v743_v17  ;;  %vm1000_vm8 = vcmp.gt.f32.partialorder %v744_v18, 0.0 }
  0x73   :  { %1766 = vst [vmem:[%s3660_s2 + $0x230] sm:$0xff] %v1510_v26  ;;  %v1256_v28 = vmul.f32 0.01, %v744_v18  ;;  %vm1001_vm9 = vcmp.gt.f32.partialorder %v745_v23, 0.0  ;;  %v1257_v29 = vmul.f32 0.01, %v745_v23  ;;  %v746_v30 = vadd.f32 %v2002_v16, %v479_v21 }
  0x74   :  { %v1511_v31 = vsel %vm999_vm7, %v743_v17, %v1255_v27  ;;  %v747_v32 = vadd.f32 %v2007_v20, %v480_v24  ;;  %v748_v33 = vadd.f32 %v1991_v9, %v481_v25  ;;  %v216_v34 = vunpack.c.h.bf16 %v49_v59  ;;  %v55_v17 = vld [vmem:[%s3658_s0 + $0x160] sm:$0xff]  ;;  %v56_v24 = vld [vmem:[%s3658_s0 + $0x168] sm:$0xff] }
  0x75   :  { %1767 = vst [vmem:[%s3660_s2 + $0x238] sm:$0xff] %v1511_v31  ;;  %v1512_v36 = vsel %vm1000_vm8, %v744_v18, %v1256_v28  ;;  %v1513_v37 = vsel %vm1001_vm9, %v745_v23, %v1257_v29  ;;  %vm1002_vm10 = vcmp.gt.f32.partialorder %v746_v30, 0.0  ;;  %v1258_v38 = vmul.f32 0.01, %v746_v30 }
  0x76   :  { %1768 = vst [vmem:[%s3660_s2 + $0x240] sm:$0xff] %v1512_v36  ;;  %vm1003_vm11 = vcmp.gt.f32.partialorder %v747_v32, 0.0  ;;  %v1259_v40 = vmul.f32 0.01, %v747_v32  ;;  %vm1004_vm12 = vcmp.gt.f32.partialorder %v748_v33, 0.0  ;;  %v482_v41 = vmul.f32 %v1986_v7, %v216_v34 }
  0x77   :  { %1769 = vst [vmem:[%s3660_s2 + $0x248] sm:$0xff] %v1513_v37  ;;  %v1514_v43 = vsel %vm1002_vm10, %v746_v30, %v1258_v38  ;;  %v1260_v44 = vmul.f32 0.01, %v748_v33  ;;  %v217_v45 = vunpack.c.l.bf16 %v50_v35  ;;  %v218_v46 = vunpack.c.h.bf16 %v50_v35 }
  0x78   :  { %1770 = vst [vmem:[%s3660_s2 + $0x250] sm:$0xff] %v1514_v43  ;;  %v1515_v47 = vsel %vm1003_vm11, %v747_v32, %v1259_v40  ;;  %v749_v48 = vadd.f32 %v1993_v10, %v482_v41  ;;  %v219_v49 = vunpack.c.l.bf16 %v51_v39  ;;  %v220_v50 = vunpack.c.h.bf16 %v51_v39 }
  0x79   :  { %1771 = vst [vmem:[%s3660_s2 + $0x258] sm:$0xff] %v1515_v47  ;;  %v1516_v51 = vsel %vm1004_vm12, %v748_v33, %v1260_v44  ;;  %v483_v52 = vmul.f32 %v1995_v12, %v217_v45  ;;  %v484_v53 = vmul.f32 %v2005_v19, %v218_v46  ;;  %v221_v54 = vunpack.c.l.bf16 %v52_v42 }
  0x7a   :  { %1772 = vst [vmem:[%s3660_s2 + $0x260] sm:$0xff] %v1516_v51  ;;  %vm1005_vm13 = vcmp.gt.f32.partialorder %v749_v48, 0.0  ;;  %v1261_v56 = vmul.f32 0.01, %v749_v48  ;;  %v485_v57 = vmul.f32 %v1981_v4, %v219_v49  ;;  %v486_v58 = vmul.f32 %v1986_v7, %v220_v50 }
  0x7b   :  { %v750_v59 = vadd.f32 %v2002_v16, %v483_v52  ;;  %v751_v60 = vadd.f32 %v2007_v20, %v484_v53  ;;  %v487_v61 = vmul.f32 %v1995_v12, %v221_v54  ;;  %v222_v62 = vunpack.c.h.bf16 %v52_v42 }
  0x7c   :  { %v1517_v63 = vsel %vm1005_vm13, %v749_v48, %v1261_v56  ;;  %v752_v0 = vadd.f32 %v1991_v9, %v485_v57  ;;  %v753_v1 = vadd.f32 %v1993_v10, %v486_v58  ;;  %v223_v2 = vunpack.c.l.bf16 %v53_v55  ;;  %v57_v56 = vld [vmem:[%s3658_s0 + $0x170] sm:$0xff] }
  0x7d   :  { %1773 = vst [vmem:[%s3660_s2 + $0x268] sm:$0xff] %v1517_v63  ;;  %vm1006_vm14 = vcmp.gt.f32.partialorder %v750_v59, 0.0  ;;  %v1262_v3 = vmul.f32 0.01, %v750_v59  ;;  %vm1007_vm15 = vcmp.gt.f32.partialorder %v751_v60, 0.0  ;;  %v754_v5 = vadd.f32 %v2002_v16, %v487_v61  ;;  %v59_v63 = vld [vmem:[%s3658_s0 + $0x180] sm:$0xff] }
  0x7e   :  { %v1263_v8 = vmul.f32 0.01, %v751_v60  ;;  %vm1008_vm0 = vcmp.gt.f32.partialorder %v752_v0, 0.0  ;;  %v1264_v11 = vmul.f32 0.01, %v752_v0  ;;  %vm1009_vm1 = vcmp.gt.f32.partialorder %v753_v1, 0.0 }
  0x7f   :  { %v1518_v13 = vsel %vm1006_vm14, %v750_v59, %v1262_v3  ;;  %v1265_v14 = vmul.f32 0.01, %v753_v1  ;;  %vm1010_vm2 = vcmp.gt.f32.partialorder %v754_v5, 0.0  ;;  %v1266_v15 = vmul.f32 0.01, %v754_v5 }
  0x80   :  { %1774 = vst [vmem:[%s3660_s2 + $0x270] sm:$0xff] %v1518_v13  ;;  %v1519_v18 = vsel %vm1007_vm15, %v751_v60, %v1263_v8  ;;  %v1520_v21 = vsel %vm1008_vm0, %v752_v0, %v1264_v11  ;;  %v488_v22 = vmul.f32 %v2005_v19, %v222_v62  ;;  %v489_v23 = vmul.f32 %v1981_v4, %v223_v2  ;;  %v58_v60 = vld [vmem:[%s3658_s0 + $0x178] sm:$0xff] }
  0x81   :  { %1775 = vst [vmem:[%s3660_s2 + $0x278] sm:$0xff] %v1519_v18  ;;  %v1521_v25 = vsel %vm1009_vm1, %v753_v1, %v1265_v14  ;;  %v1522_v26 = vsel %vm1010_vm2, %v754_v5, %v1266_v15  ;;  %v224_v27 = vunpack.c.h.bf16 %v53_v55  ;;  %v225_v28 = vunpack.c.l.bf16 %v54_v6  ;;  %v60_v18 = vld [vmem:[%s3658_s0 + $0x188] sm:$0xff] }
  0x82   :  { %1776 = vst [vmem:[%s3660_s2 + $0x280] sm:$0xff] %v1520_v21  ;;  %v755_v29 = vadd.f32 %v2007_v20, %v488_v22  ;;  %v756_v30 = vadd.f32 %v1991_v9, %v489_v23  ;;  %v226_v31 = vunpack.c.h.bf16 %v54_v6  ;;  %v227_v32 = vunpack.c.l.bf16 %v55_v17 }
  0x83   :  { %1777 = vst [vmem:[%s3660_s2 + $0x288] sm:$0xff] %v1521_v25  ;;  %v490_v33 = vmul.f32 %v1986_v7, %v224_v27  ;;  %v491_v34 = vmul.f32 %v1995_v12, %v225_v28  ;;  %v228_v35 = vunpack.c.h.bf16 %v55_v17  ;;  %v229_v36 = vunpack.c.l.bf16 %v56_v24 }
  0x84   :  { %1778 = vst [vmem:[%s3660_s2 + $0x290] sm:$0xff] %v1522_v26  ;;  %vm1011_vm3 = vcmp.gt.f32.partialorder %v755_v29, 0.0  ;;  %v1267_v37 = vmul.f32 0.01, %v755_v29  ;;  %vm1012_vm4 = vcmp.gt.f32.partialorder %v756_v30, 0.0  ;;  %v492_v38 = vmul.f32 %v2005_v19, %v226_v31 }
  0x85   :  { %v1268_v39 = vmul.f32 0.01, %v756_v30  ;;  %v757_v40 = vadd.f32 %v1993_v10, %v490_v33  ;;  %v758_v41 = vadd.f32 %v2002_v16, %v491_v34  ;;  %v493_v42 = vmul.f32 %v1981_v4, %v227_v32  ;;  %v61_v34 = vld [vmem:[%s3658_s0 + $0x190] sm:$0xff] }
  0x86   :  { %v1523_v43 = vsel %vm1011_vm3, %v755_v29, %v1267_v37  ;;  %v759_v44 = vadd.f32 %v2007_v20, %v492_v38  ;;  %v494_v45 = vmul.f32 %v1986_v7, %v228_v35  ;;  %v495_v46 = vmul.f32 %v1995_v12, %v229_v36 }
  0x87   :  { %1779 = vst [vmem:[%s3660_s2 + $0x298] sm:$0xff] %v1523_v43  ;;  %v1524_v47 = vsel %vm1012_vm4, %v756_v30, %v1268_v39  ;;  %vm1013_vm5 = vcmp.gt.f32.partialorder %v757_v40, 0.0  ;;  %v1269_v48 = vmul.f32 0.01, %v757_v40  ;;  %vm1014_vm6 = vcmp.gt.f32.partialorder %v758_v41, 0.0 }
  0x88   :  { %1780 = vst [vmem:[%s3660_s2 + $0x2a0] sm:$0xff] %v1524_v47  ;;  %v1270_v49 = vmul.f32 0.01, %v758_v41  ;;  %vm1015_vm7 = vcmp.gt.f32.partialorder %v759_v44, 0.0  ;;  %v1271_v50 = vmul.f32 0.01, %v759_v44  ;;  %v760_v51 = vadd.f32 %v1991_v9, %v493_v42 }
  0x89   :  { %v1525_v52 = vsel %vm1013_vm5, %v757_v40, %v1269_v48  ;;  %v761_v53 = vadd.f32 %v1993_v10, %v494_v45  ;;  %v762_v54 = vadd.f32 %v2002_v16, %v495_v46  ;;  %v230_v55 = vunpack.c.h.bf16 %v56_v24  ;;  %v62_v40 = vld [vmem:[%s3658_s0 + $0x198] sm:$0xff]  ;;  %v63_v45 = vld [vmem:[%s3658_s0 + $0x1a0] sm:$0xff] }
  0x8a   :  { %1781 = vst [vmem:[%s3660_s2 + $0x2a8] sm:$0xff] %v1525_v52  ;;  %v1526_v57 = vsel %vm1014_vm6, %v758_v41, %v1270_v49  ;;  %v1527_v58 = vsel %vm1015_vm7, %v759_v44, %v1271_v50  ;;  %vm1016_vm8 = vcmp.gt.f32.partialorder %v760_v51, 0.0  ;;  %v1272_v59 = vmul.f32 0.01, %v760_v51 }
  0x8b   :  { %1782 = vst [vmem:[%s3660_s2 + $0x2b0] sm:$0xff] %v1526_v57  ;;  %vm1017_vm9 = vcmp.gt.f32.partialorder %v761_v53, 0.0  ;;  %v1273_v61 = vmul.f32 0.01, %v761_v53  ;;  %vm1018_vm10 = vcmp.gt.f32.partialorder %v762_v54, 0.0  ;;  %v496_v62 = vmul.f32 %v2005_v19, %v230_v55 }
  0x8c   :  { %1783 = vst [vmem:[%s3660_s2 + $0x2b8] sm:$0xff] %v1527_v58  ;;  %v1528_v0 = vsel %vm1016_vm8, %v760_v51, %v1272_v59  ;;  %v1274_v1 = vmul.f32 0.01, %v762_v54  ;;  %v231_v2 = vunpack.c.l.bf16 %v57_v56  ;;  %v232_v3 = vunpack.c.h.bf16 %v57_v56 }
  0x8d   :  { %1784 = vst [vmem:[%s3660_s2 + $0x2c0] sm:$0xff] %v1528_v0  ;;  %v1529_v5 = vsel %vm1017_vm9, %v761_v53, %v1273_v61  ;;  %v763_v6 = vadd.f32 %v2007_v20, %v496_v62  ;;  %v233_v8 = vunpack.c.l.bf16 %v58_v60  ;;  %v234_v11 = vunpack.c.h.bf16 %v58_v60 }
  0x8e   :  { %1785 = vst [vmem:[%s3660_s2 + $0x2c8] sm:$0xff] %v1529_v5  ;;  %v1530_v13 = vsel %vm1018_vm10, %v762_v54, %v1274_v1  ;;  %v497_v14 = vmul.f32 %v1981_v4, %v231_v2  ;;  %v498_v15 = vmul.f32 %v1986_v7, %v232_v3  ;;  %v235_v17 = vunpack.c.l.bf16 %v59_v63 }
  0x8f   :  { %1786 = vst [vmem:[%s3660_s2 + $0x2d0] sm:$0xff] %v1530_v13  ;;  %vm1019_vm11 = vcmp.gt.f32.partialorder %v763_v6, 0.0  ;;  %v1275_v21 = vmul.f32 0.01, %v763_v6  ;;  %v499_v22 = vmul.f32 %v1995_v12, %v233_v8  ;;  %v500_v23 = vmul.f32 %v2005_v19, %v234_v11 }
  0x90   :  { %v764_v24 = vadd.f32 %v1991_v9, %v497_v14  ;;  %v765_v25 = vadd.f32 %v1993_v10, %v498_v15  ;;  %v501_v26 = vmul.f32 %v1981_v4, %v235_v17  ;;  %v236_v27 = vunpack.c.h.bf16 %v59_v63 }
  0x91   :  { %v1531_v28 = vsel %vm1019_vm11, %v763_v6, %v1275_v21  ;;  %v766_v29 = vadd.f32 %v2002_v16, %v499_v22  ;;  %v767_v30 = vadd.f32 %v2007_v20, %v500_v23  ;;  %v237_v31 = vunpack.c.l.bf16 %v60_v18  ;;  %v64_v21 = vld [vmem:[%s3658_s0 + $0x1a8] sm:$0xff] }
  0x92   :  { %1787 = vst [vmem:[%s3660_s2 + $0x2d8] sm:$0xff] %v1531_v28  ;;  %vm1020_vm12 = vcmp.gt.f32.partialorder %v764_v24, 0.0  ;;  %v1276_v32 = vmul.f32 0.01, %v764_v24  ;;  %vm1021_vm13 = vcmp.gt.f32.partialorder %v765_v25, 0.0  ;;  %v768_v33 = vadd.f32 %v1991_v9, %v501_v26  ;;  %v66_v28 = vld [vmem:[%s3658_s0 + $0x1b8] sm:$0xff] }
  0x93   :  { %v1277_v35 = vmul.f32 0.01, %v765_v25  ;;  %vm1022_vm14 = vcmp.gt.f32.partialorder %v766_v29, 0.0  ;;  %v1278_v36 = vmul.f32 0.01, %v766_v29  ;;  %vm1023_vm15 = vcmp.gt.f32.partialorder %v767_v30, 0.0 }
  0x94   :  { %v1532_v37 = vsel %vm1020_vm12, %v764_v24, %v1276_v32  ;;  %v1279_v38 = vmul.f32 0.01, %v767_v30  ;;  %vm1024_vm0 = vcmp.gt.f32.partialorder %v768_v33, 0.0  ;;  %v1280_v39 = vmul.f32 0.01, %v768_v33 }
  0x95   :  { %1788 = vst [vmem:[%s3660_s2 + $0x2e0] sm:$0xff] %v1532_v37  ;;  %v1533_v41 = vsel %vm1021_vm13, %v765_v25, %v1277_v35  ;;  %v1534_v42 = vsel %vm1022_vm14, %v766_v29, %v1278_v36  ;;  %v502_v43 = vmul.f32 %v1986_v7, %v236_v27  ;;  %v503_v44 = vmul.f32 %v1995_v12, %v237_v31  ;;  %v65_v25 = vld [vmem:[%s3658_s0 + $0x1b0] sm:$0xff] }
  0x96   :  { %1789 = vst [vmem:[%s3660_s2 + $0x2e8] sm:$0xff] %v1533_v41  ;;  %v1535_v46 = vsel %vm1023_vm15, %v767_v30, %v1279_v38  ;;  %v1536_v47 = vsel %vm1024_vm0, %v768_v33, %v1280_v39  ;;  %v238_v48 = vunpack.c.h.bf16 %v60_v18  ;;  %v239_v49 = vunpack.c.l.bf16 %v61_v34  ;;  %v67_v41 = vld [vmem:[%s3658_s0 + $0x1c0] sm:$0xff] }
  0x97   :  { %1790 = vst [vmem:[%s3660_s2 + $0x2f0] sm:$0xff] %v1534_v42  ;;  %v769_v50 = vadd.f32 %v1993_v10, %v502_v43  ;;  %v770_v51 = vadd.f32 %v2002_v16, %v503_v44  ;;  %v240_v52 = vunpack.c.h.bf16 %v61_v34  ;;  %v241_v53 = vunpack.c.l.bf16 %v62_v40 }
  0x98   :  { %1791 = vst [vmem:[%s3660_s2 + $0x2f8] sm:$0xff] %v1535_v46  ;;  %v504_v54 = vmul.f32 %v2005_v19, %v238_v48  ;;  %v505_v55 = vmul.f32 %v1981_v4, %v239_v49  ;;  %v242_v56 = vunpack.c.h.bf16 %v62_v40  ;;  %v243_v57 = vunpack.c.l.bf16 %v63_v45 }
  0x99   :  { %1792 = vst [vmem:[%s3660_s2 + $0x300] sm:$0xff] %v1536_v47  ;;  %vm1025_vm1 = vcmp.gt.f32.partialorder %v769_v50, 0.0  ;;  %v1281_v58 = vmul.f32 0.01, %v769_v50  ;;  %vm1026_vm2 = vcmp.gt.f32.partialorder %v770_v51, 0.0  ;;  %v506_v59 = vmul.f32 %v1986_v7, %v240_v52 }
  0x9a   :  { %v1282_v60 = vmul.f32 0.01, %v770_v51  ;;  %v771_v61 = vadd.f32 %v2007_v20, %v504_v54  ;;  %v772_v62 = vadd.f32 %v1991_v9, %v505_v55  ;;  %v507_v63 = vmul.f32 %v1995_v12, %v241_v53  ;;  %v68_v55 = vld [vmem:[%s3658_s0 + $0x1c8] sm:$0xff] }
  0x9b   :  { %v1537_v0 = vsel %vm1025_vm1, %v769_v50, %v1281_v58  ;;  %v773_v1 = vadd.f32 %v1993_v10, %v506_v59  ;;  %v508_v2 = vmul.f32 %v2005_v19, %v242_v56  ;;  %v509_v3 = vmul.f32 %v1981_v4, %v243_v57 }
  0x9c   :  { %1793 = vst [vmem:[%s3660_s2 + $0x308] sm:$0xff] %v1537_v0  ;;  %v1538_v5 = vsel %vm1026_vm2, %v770_v51, %v1282_v60  ;;  %vm1027_vm3 = vcmp.gt.f32.partialorder %v771_v61, 0.0  ;;  %v1283_v6 = vmul.f32 0.01, %v771_v61  ;;  %vm1028_vm4 = vcmp.gt.f32.partialorder %v772_v62, 0.0 }
  0x9d   :  { %1794 = vst [vmem:[%s3660_s2 + $0x310] sm:$0xff] %v1538_v5  ;;  %v1284_v8 = vmul.f32 0.01, %v772_v62  ;;  %vm1029_vm5 = vcmp.gt.f32.partialorder %v773_v1, 0.0  ;;  %v1285_v11 = vmul.f32 0.01, %v773_v1  ;;  %v774_v13 = vadd.f32 %v2002_v16, %v507_v63 }
  0x9e   :  { %v1539_v14 = vsel %vm1027_vm3, %v771_v61, %v1283_v6  ;;  %v775_v15 = vadd.f32 %v2007_v20, %v508_v2  ;;  %v776_v17 = vadd.f32 %v1991_v9, %v509_v3  ;;  %v244_v18 = vunpack.c.h.bf16 %v63_v45  ;;  %v69_v61 = vld [vmem:[%s3658_s0 + $0x1d0] sm:$0xff]  ;;  %v70_v2 = vld [vmem:[%s3658_s0 + $0x1d8] sm:$0xff] }
  0x9f   :  { %1795 = vst [vmem:[%s3660_s2 + $0x318] sm:$0xff] %v1539_v14  ;;  %v1540_v22 = vsel %vm1028_vm4, %v772_v62, %v1284_v8  ;;  %v1541_v23 = vsel %vm1029_vm5, %v773_v1, %v1285_v11  ;;  %vm1030_vm6 = vcmp.gt.f32.partialorder %v774_v13, 0.0  ;;  %v1286_v24 = vmul.f32 0.01, %v774_v13 }
  0xa0   :  { %1796 = vst [vmem:[%s3660_s2 + $0x320] sm:$0xff] %v1540_v22  ;;  %vm1031_vm7 = vcmp.gt.f32.partialorder %v775_v15, 0.0  ;;  %v1287_v26 = vmul.f32 0.01, %v775_v15  ;;  %vm1032_vm8 = vcmp.gt.f32.partialorder %v776_v17, 0.0  ;;  %v510_v27 = vmul.f32 %v1986_v7, %v244_v18 }
  0xa1   :  { %1797 = vst [vmem:[%s3660_s2 + $0x328] sm:$0xff] %v1541_v23  ;;  %v1542_v29 = vsel %vm1030_vm6, %v774_v13, %v1286_v24  ;;  %v1288_v30 = vmul.f32 0.01, %v776_v17  ;;  %v245_v31 = vunpack.c.l.bf16 %v64_v21  ;;  %v246_v32 = vunpack.c.h.bf16 %v64_v21 }
  0xa2   :  { %1798 = vst [vmem:[%s3660_s2 + $0x330] sm:$0xff] %v1542_v29  ;;  %v1543_v33 = vsel %vm1031_vm7, %v775_v15, %v1287_v26  ;;  %v777_v34 = vadd.f32 %v1993_v10, %v510_v27  ;;  %v247_v35 = vunpack.c.l.bf16 %v65_v25  ;;  %v248_v36 = vunpack.c.h.bf16 %v65_v25 }
  0xa3   :  { %1799 = vst [vmem:[%s3660_s2 + $0x338] sm:$0xff] %v1543_v33  ;;  %v1544_v37 = vsel %vm1032_vm8, %v776_v17, %v1288_v30  ;;  %v511_v38 = vmul.f32 %v1995_v12, %v245_v31  ;;  %v512_v39 = vmul.f32 %v2005_v19, %v246_v32  ;;  %v249_v40 = vunpack.c.l.bf16 %v66_v28 }
  0xa4   :  { %1800 = vst [vmem:[%s3660_s2 + $0x340] sm:$0xff] %v1544_v37  ;;  %vm1033_vm9 = vcmp.gt.f32.partialorder %v777_v34, 0.0  ;;  %v1289_v42 = vmul.f32 0.01, %v777_v34  ;;  %v513_v43 = vmul.f32 %v1981_v4, %v247_v35  ;;  %v514_v44 = vmul.f32 %v1986_v7, %v248_v36 }
  0xa5   :  { %v778_v45 = vadd.f32 %v2002_v16, %v511_v38  ;;  %v779_v46 = vadd.f32 %v2007_v20, %v512_v39  ;;  %v515_v47 = vmul.f32 %v1995_v12, %v249_v40  ;;  %v250_v48 = vunpack.c.h.bf16 %v66_v28 }
  0xa6   :  { %v1545_v49 = vsel %vm1033_vm9, %v777_v34, %v1289_v42  ;;  %v780_v50 = vadd.f32 %v1991_v9, %v513_v43  ;;  %v781_v51 = vadd.f32 %v1993_v10, %v514_v44  ;;  %v251_v52 = vunpack.c.l.bf16 %v67_v41  ;;  %v71_v42 = vld [vmem:[%s3658_s0 + $0x1e0] sm:$0xff] }
  0xa7   :  { %1801 = vst [vmem:[%s3660_s2 + $0x348] sm:$0xff] %v1545_v49  ;;  %vm1034_vm10 = vcmp.gt.f32.partialorder %v778_v45, 0.0  ;;  %v1290_v53 = vmul.f32 0.01, %v778_v45  ;;  %vm1035_vm11 = vcmp.gt.f32.partialorder %v779_v46, 0.0  ;;  %v782_v54 = vadd.f32 %v2002_v16, %v515_v47  ;;  %v73_v49 = vld [vmem:[%s3658_s0 + $0x1f0] sm:$0xff] }
  0xa8   :  { %v1291_v56 = vmul.f32 0.01, %v779_v46  ;;  %vm1036_vm12 = vcmp.gt.f32.partialorder %v780_v50, 0.0  ;;  %v1292_v57 = vmul.f32 0.01, %v780_v50  ;;  %vm1037_vm13 = vcmp.gt.f32.partialorder %v781_v51, 0.0 }
  0xa9   :  { %v1546_v58 = vsel %vm1034_vm10, %v778_v45, %v1290_v53  ;;  %v1293_v59 = vmul.f32 0.01, %v781_v51  ;;  %vm1038_vm14 = vcmp.gt.f32.partialorder %v782_v54, 0.0  ;;  %v1294_v60 = vmul.f32 0.01, %v782_v54 }
  0xaa   :  { %1802 = vst [vmem:[%s3660_s2 + $0x350] sm:$0xff] %v1546_v58  ;;  %v1547_v62 = vsel %vm1035_vm11, %v779_v46, %v1291_v56  ;;  %v1548_v63 = vsel %vm1036_vm12, %v780_v50, %v1292_v57  ;;  %v516_v0 = vmul.f32 %v2005_v19, %v250_v48  ;;  %v517_v1 = vmul.f32 %v1981_v4, %v251_v52  ;;  %v72_v46 = vld [vmem:[%s3658_s0 + $0x1e8] sm:$0xff] }
  0xab   :  { %1803 = vst [vmem:[%s3660_s2 + $0x358] sm:$0xff] %v1547_v62  ;;  %v1549_v3 = vsel %vm1037_vm13, %v781_v51, %v1293_v59  ;;  %v1550_v5 = vsel %vm1038_vm14, %v782_v54, %v1294_v60  ;;  %v252_v6 = vunpack.c.h.bf16 %v67_v41  ;;  %v253_v8 = vunpack.c.l.bf16 %v68_v55  ;;  %v74_v62 = vld [vmem:[%s3658_s0 + $0x1f8] sm:$0xff] }
  0xac   :  { %1804 = vst [vmem:[%s3660_s2 + $0x360] sm:$0xff] %v1548_v63  ;;  %v783_v11 = vadd.f32 %v2007_v20, %v516_v0  ;;  %v784_v13 = vadd.f32 %v1991_v9, %v517_v1  ;;  %v254_v14 = vunpack.c.h.bf16 %v68_v55  ;;  %v255_v15 = vunpack.c.l.bf16 %v69_v61 }
  0xad   :  { %1805 = vst [vmem:[%s3660_s2 + $0x368] sm:$0xff] %v1549_v3  ;;  %v518_v17 = vmul.f32 %v1986_v7, %v252_v6  ;;  %v519_v18 = vmul.f32 %v1995_v12, %v253_v8  ;;  %v256_v21 = vunpack.c.h.bf16 %v69_v61  ;;  %v257_v22 = vunpack.c.l.bf16 %v70_v2 }
  0xae   :  { %1806 = vst [vmem:[%s3660_s2 + $0x370] sm:$0xff] %v1550_v5  ;;  %vm1039_vm15 = vcmp.gt.f32.partialorder %v783_v11, 0.0  ;;  %v1295_v23 = vmul.f32 0.01, %v783_v11  ;;  %vm1040_vm0 = vcmp.gt.f32.partialorder %v784_v13, 0.0  ;;  %v520_v24 = vmul.f32 %v2005_v19, %v254_v14 }
  0xaf   :  { %v1296_v25 = vmul.f32 0.01, %v784_v13  ;;  %v785_v26 = vadd.f32 %v1993_v10, %v518_v17  ;;  %v786_v27 = vadd.f32 %v2002_v16, %v519_v18  ;;  %v521_v28 = vmul.f32 %v1981_v4, %v255_v15  ;;  %v75_v18 = vld [vmem:[%s3658_s0 + $0x200] sm:$0xff] }
  0xb0   :  { %v1551_v29 = vsel %vm1039_vm15, %v783_v11, %v1295_v23  ;;  %v787_v30 = vadd.f32 %v2007_v20, %v520_v24  ;;  %v522_v31 = vmul.f32 %v1986_v7, %v256_v21  ;;  %v523_v32 = vmul.f32 %v1995_v12, %v257_v22 }
  0xb1   :  { %1807 = vst [vmem:[%s3660_s2 + $0x378] sm:$0xff] %v1551_v29  ;;  %v1552_v33 = vsel %vm1040_vm0, %v784_v13, %v1296_v25  ;;  %vm1041_vm1 = vcmp.gt.f32.partialorder %v785_v26, 0.0  ;;  %v1297_v34 = vmul.f32 0.01, %v785_v26  ;;  %vm1042_vm2 = vcmp.gt.f32.partialorder %v786_v27, 0.0 }
  0xb2   :  { %1808 = vst [vmem:[%s3660_s2 + $0x380] sm:$0xff] %v1552_v33  ;;  %v1298_v35 = vmul.f32 0.01, %v786_v27  ;;  %vm1043_vm3 = vcmp.gt.f32.partialorder %v787_v30, 0.0  ;;  %v1299_v36 = vmul.f32 0.01, %v787_v30  ;;  %v788_v37 = vadd.f32 %v1991_v9, %v521_v28 }
  0xb3   :  { %v1553_v38 = vsel %vm1041_vm1, %v785_v26, %v1297_v34  ;;  %v789_v39 = vadd.f32 %v1993_v10, %v522_v31  ;;  %v790_v40 = vadd.f32 %v2002_v16, %v523_v32  ;;  %v258_v41 = vunpack.c.h.bf16 %v70_v2  ;;  %v76_v26 = vld [vmem:[%s3658_s0 + $0x208] sm:$0xff]  ;;  %v77_v31 = vld [vmem:[%s3658_s0 + $0x210] sm:$0xff] }
  0xb4   :  { %1809 = vst [vmem:[%s3660_s2 + $0x388] sm:$0xff] %v1553_v38  ;;  %v1554_v43 = vsel %vm1042_vm2, %v786_v27, %v1298_v35  ;;  %v1555_v44 = vsel %vm1043_vm3, %v787_v30, %v1299_v36  ;;  %vm1044_vm4 = vcmp.gt.f32.partialorder %v788_v37, 0.0  ;;  %v1300_v45 = vmul.f32 0.01, %v788_v37 }
  0xb5   :  { %1810 = vst [vmem:[%s3660_s2 + $0x390] sm:$0xff] %v1554_v43  ;;  %vm1045_vm5 = vcmp.gt.f32.partialorder %v789_v39, 0.0  ;;  %v1301_v47 = vmul.f32 0.01, %v789_v39  ;;  %vm1046_vm6 = vcmp.gt.f32.partialorder %v790_v40, 0.0  ;;  %v524_v48 = vmul.f32 %v2005_v19, %v258_v41 }
  0xb6   :  { %1811 = vst [vmem:[%s3660_s2 + $0x398] sm:$0xff] %v1555_v44  ;;  %v1556_v50 = vsel %vm1044_vm4, %v788_v37, %v1300_v45  ;;  %v1302_v51 = vmul.f32 0.01, %v790_v40  ;;  %v259_v52 = vunpack.c.l.bf16 %v71_v42  ;;  %v260_v53 = vunpack.c.h.bf16 %v71_v42 }
  0xb7   :  { %1812 = vst [vmem:[%s3660_s2 + $0x3a0] sm:$0xff] %v1556_v50  ;;  %v1557_v54 = vsel %vm1045_vm5, %v789_v39, %v1301_v47  ;;  %v791_v55 = vadd.f32 %v2007_v20, %v524_v48  ;;  %v261_v56 = vunpack.c.l.bf16 %v72_v46  ;;  %v262_v57 = vunpack.c.h.bf16 %v72_v46 }
  0xb8   :  { %1813 = vst [vmem:[%s3660_s2 + $0x3a8] sm:$0xff] %v1557_v54  ;;  %v1558_v58 = vsel %vm1046_vm6, %v790_v40, %v1302_v51  ;;  %v525_v59 = vmul.f32 %v1981_v4, %v259_v52  ;;  %v526_v60 = vmul.f32 %v1986_v7, %v260_v53  ;;  %v263_v61 = vunpack.c.l.bf16 %v73_v49 }
  0xb9   :  { %1814 = vst [vmem:[%s3660_s2 + $0x3b0] sm:$0xff] %v1558_v58  ;;  %vm1047_vm7 = vcmp.gt.f32.partialorder %v791_v55, 0.0  ;;  %v1303_v63 = vmul.f32 0.01, %v791_v55  ;;  %v527_v0 = vmul.f32 %v1995_v12, %v261_v56  ;;  %v528_v1 = vmul.f32 %v2005_v19, %v262_v57 }
  0xba   :  { %v792_v2 = vadd.f32 %v1991_v9, %v525_v59  ;;  %v793_v3 = vadd.f32 %v1993_v10, %v526_v60  ;;  %v529_v5 = vmul.f32 %v1981_v4, %v263_v61  ;;  %v264_v6 = vunpack.c.h.bf16 %v73_v49 }
  0xbb   :  { %v1559_v8 = vsel %vm1047_vm7, %v791_v55, %v1303_v63  ;;  %v794_v11 = vadd.f32 %v2002_v16, %v527_v0  ;;  %v795_v13 = vadd.f32 %v2007_v20, %v528_v1  ;;  %v265_v14 = vunpack.c.l.bf16 %v74_v62  ;;  %v78_v63 = vld [vmem:[%s3658_s0 + $0x218] sm:$0xff] }
  0xbc   :  { %1815 = vst [vmem:[%s3660_s2 + $0x3b8] sm:$0xff] %v1559_v8  ;;  %vm1048_vm8 = vcmp.gt.f32.partialorder %v792_v2, 0.0  ;;  %v1304_v15 = vmul.f32 0.01, %v792_v2  ;;  %vm1049_vm9 = vcmp.gt.f32.partialorder %v793_v3, 0.0  ;;  %v796_v17 = vadd.f32 %v1991_v9, %v529_v5  ;;  %v80_v8 = vld [vmem:[%s3658_s0 + $0x228] sm:$0xff] }
  0xbd   :  { %v1305_v21 = vmul.f32 0.01, %v793_v3  ;;  %vm1050_vm10 = vcmp.gt.f32.partialorder %v794_v11, 0.0  ;;  %v1306_v22 = vmul.f32 0.01, %v794_v11  ;;  %vm1051_vm11 = vcmp.gt.f32.partialorder %v795_v13, 0.0 }
  0xbe   :  { %v1560_v23 = vsel %vm1048_vm8, %v792_v2, %v1304_v15  ;;  %v1307_v24 = vmul.f32 0.01, %v795_v13  ;;  %vm1052_vm12 = vcmp.gt.f32.partialorder %v796_v17, 0.0  ;;  %v1308_v25 = vmul.f32 0.01, %v796_v17 }
  0xbf   :  { %1816 = vst [vmem:[%s3660_s2 + $0x3c0] sm:$0xff] %v1560_v23  ;;  %v1561_v27 = vsel %vm1049_vm9, %v793_v3, %v1305_v21  ;;  %v1562_v28 = vsel %vm1050_vm10, %v794_v11, %v1306_v22  ;;  %v530_v29 = vmul.f32 %v1986_v7, %v264_v6  ;;  %v531_v30 = vmul.f32 %v1995_v12, %v265_v14  ;;  %v79_v3 = vld [vmem:[%s3658_s0 + $0x220] sm:$0xff] }
  0xc0   :  { %1817 = vst [vmem:[%s3660_s2 + $0x3c8] sm:$0xff] %v1561_v27  ;;  %v1563_v32 = vsel %vm1051_vm11, %v795_v13, %v1307_v24  ;;  %v1564_v33 = vsel %vm1052_vm12, %v796_v17, %v1308_v25  ;;  %v266_v34 = vunpack.c.h.bf16 %v74_v62  ;;  %v267_v35 = vunpack.c.l.bf16 %v75_v18  ;;  %v81_v27 = vld [vmem:[%s3658_s0 + $0x230] sm:$0xff] }
  0xc1   :  { %1818 = vst [vmem:[%s3660_s2 + $0x3d0] sm:$0xff] %v1562_v28  ;;  %v797_v36 = vadd.f32 %v1993_v10, %v530_v29  ;;  %v798_v37 = vadd.f32 %v2002_v16, %v531_v30  ;;  %v268_v38 = vunpack.c.h.bf16 %v75_v18  ;;  %v269_v39 = vunpack.c.l.bf16 %v76_v26 }
  0xc2   :  { %1819 = vst [vmem:[%s3660_s2 + $0x3d8] sm:$0xff] %v1563_v32  ;;  %v532_v40 = vmul.f32 %v2005_v19, %v266_v34  ;;  %v533_v41 = vmul.f32 %v1981_v4, %v267_v35  ;;  %v270_v42 = vunpack.c.h.bf16 %v76_v26  ;;  %v271_v43 = vunpack.c.l.bf16 %v77_v31 }
  0xc3   :  { %1820 = vst [vmem:[%s3660_s2 + $0x3e0] sm:$0xff] %v1564_v33  ;;  %vm1053_vm13 = vcmp.gt.f32.partialorder %v797_v36, 0.0  ;;  %v1309_v44 = vmul.f32 0.01, %v797_v36  ;;  %vm1054_vm14 = vcmp.gt.f32.partialorder %v798_v37, 0.0  ;;  %v534_v45 = vmul.f32 %v1986_v7, %v268_v38 }
  0xc4   :  { %v1310_v46 = vmul.f32 0.01, %v798_v37  ;;  %v799_v47 = vadd.f32 %v2007_v20, %v532_v40  ;;  %v800_v48 = vadd.f32 %v1991_v9, %v533_v41  ;;  %v535_v49 = vmul.f32 %v1995_v12, %v269_v39  ;;  %v82_v41 = vld [vmem:[%s3658_s0 + $0x238] sm:$0xff] }
  0xc5   :  { %v1565_v50 = vsel %vm1053_vm13, %v797_v36, %v1309_v44  ;;  %v801_v51 = vadd.f32 %v1993_v10, %v534_v45  ;;  %v536_v52 = vmul.f32 %v2005_v19, %v270_v42  ;;  %v537_v53 = vmul.f32 %v1981_v4, %v271_v43 }
  0xc6   :  { %1821 = vst [vmem:[%s3660_s2 + $0x3e8] sm:$0xff] %v1565_v50  ;;  %v1566_v54 = vsel %vm1054_vm14, %v798_v37, %v1310_v46  ;;  %vm1055_vm15 = vcmp.gt.f32.partialorder %v799_v47, 0.0  ;;  %v1311_v55 = vmul.f32 0.01, %v799_v47  ;;  %vm1056_vm0 = vcmp.gt.f32.partialorder %v800_v48, 0.0 }
  0xc7   :  { %1822 = vst [vmem:[%s3660_s2 + $0x3f0] sm:$0xff] %v1566_v54  ;;  %v1312_v56 = vmul.f32 0.01, %v800_v48  ;;  %vm1057_vm1 = vcmp.gt.f32.partialorder %v801_v51, 0.0  ;;  %v1313_v57 = vmul.f32 0.01, %v801_v51  ;;  %v802_v58 = vadd.f32 %v2002_v16, %v535_v49 }
  0xc8   :  { %v1567_v59 = vsel %vm1055_vm15, %v799_v47, %v1311_v55  ;;  %v803_v60 = vadd.f32 %v2007_v20, %v536_v52  ;;  %v804_v61 = vadd.f32 %v1991_v9, %v537_v53  ;;  %v272_v62 = vunpack.c.h.bf16 %v77_v31  ;;  %v83_v47 = vld [vmem:[%s3658_s0 + $0x240] sm:$0xff]  ;;  %v84_v52 = vld [vmem:[%s3658_s0 + $0x248] sm:$0xff] }
  0xc9   :  { %1823 = vst [vmem:[%s3660_s2 + $0x3f8] sm:$0xff] %v1567_v59  ;;  %v1568_v0 = vsel %vm1056_vm0, %v800_v48, %v1312_v56  ;;  %v1569_v1 = vsel %vm1057_vm1, %v801_v51, %v1313_v57  ;;  %vm1058_vm2 = vcmp.gt.f32.partialorder %v802_v58, 0.0  ;;  %v1314_v2 = vmul.f32 0.01, %v802_v58 }
  0xca   :  { %1824 = vst [vmem:[%s3660_s2 + $0x400] sm:$0xff] %v1568_v0  ;;  %vm1059_vm3 = vcmp.gt.f32.partialorder %v803_v60, 0.0  ;;  %v1315_v5 = vmul.f32 0.01, %v803_v60  ;;  %vm1060_vm4 = vcmp.gt.f32.partialorder %v804_v61, 0.0  ;;  %v538_v6 = vmul.f32 %v1986_v7, %v272_v62 }
  0xcb   :  { %1825 = vst [vmem:[%s3660_s2 + $0x408] sm:$0xff] %v1569_v1  ;;  %v1570_v11 = vsel %vm1058_vm2, %v802_v58, %v1314_v2  ;;  %v1316_v13 = vmul.f32 0.01, %v804_v61  ;;  %v273_v14 = vunpack.c.l.bf16 %v78_v63  ;;  %v274_v15 = vunpack.c.h.bf16 %v78_v63 }
  0xcc   :  { %1826 = vst [vmem:[%s3660_s2 + $0x410] sm:$0xff] %v1570_v11  ;;  %v1571_v17 = vsel %vm1059_vm3, %v803_v60, %v1315_v5  ;;  %v805_v18 = vadd.f32 %v1993_v10, %v538_v6  ;;  %v275_v21 = vunpack.c.l.bf16 %v79_v3  ;;  %v276_v22 = vunpack.c.h.bf16 %v79_v3 }
  0xcd   :  { %1827 = vst [vmem:[%s3660_s2 + $0x418] sm:$0xff] %v1571_v17  ;;  %v1572_v23 = vsel %vm1060_vm4, %v804_v61, %v1316_v13  ;;  %v539_v24 = vmul.f32 %v1995_v12, %v273_v14  ;;  %v540_v25 = vmul.f32 %v2005_v19, %v274_v15  ;;  %v277_v26 = vunpack.c.l.bf16 %v80_v8 }
  0xce   :  { %1828 = vst [vmem:[%s3660_s2 + $0x420] sm:$0xff] %v1572_v23  ;;  %vm1061_vm5 = vcmp.gt.f32.partialorder %v805_v18, 0.0  ;;  %v1317_v28 = vmul.f32 0.01, %v805_v18  ;;  %v541_v29 = vmul.f32 %v1981_v4, %v275_v21  ;;  %v542_v30 = vmul.f32 %v1986_v7, %v276_v22 }
  0xcf   :  { %v806_v31 = vadd.f32 %v2002_v16, %v539_v24  ;;  %v807_v32 = vadd.f32 %v2007_v20, %v540_v25  ;;  %v543_v33 = vmul.f32 %v1995_v12, %v277_v26  ;;  %v278_v34 = vunpack.c.h.bf16 %v80_v8 }
  0xd0   :  { %v1573_v35 = vsel %vm1061_vm5, %v805_v18, %v1317_v28  ;;  %v808_v36 = vadd.f32 %v1991_v9, %v541_v29  ;;  %v809_v37 = vadd.f32 %v1993_v10, %v542_v30  ;;  %v279_v38 = vunpack.c.l.bf16 %v81_v27  ;;  %v85_v28 = vld [vmem:[%s3658_s0 + $0x250] sm:$0xff] }
  0xd1   :  { %1829 = vst [vmem:[%s3660_s2 + $0x428] sm:$0xff] %v1573_v35  ;;  %vm1062_vm6 = vcmp.gt.f32.partialorder %v806_v31, 0.0  ;;  %v1318_v39 = vmul.f32 0.01, %v806_v31  ;;  %vm1063_vm7 = vcmp.gt.f32.partialorder %v807_v32, 0.0  ;;  %v810_v40 = vadd.f32 %v2002_v16, %v543_v33  ;;  %v87_v35 = vld [vmem:[%s3658_s0 + $0x260] sm:$0xff] }
  0xd2   :  { %v1319_v42 = vmul.f32 0.01, %v807_v32  ;;  %vm1064_vm8 = vcmp.gt.f32.partialorder %v808_v36, 0.0  ;;  %v1320_v43 = vmul.f32 0.01, %v808_v36  ;;  %vm1065_vm9 = vcmp.gt.f32.partialorder %v809_v37, 0.0 }
  0xd3   :  { %v1574_v44 = vsel %vm1062_vm6, %v806_v31, %v1318_v39  ;;  %v1321_v45 = vmul.f32 0.01, %v809_v37  ;;  %vm1066_vm10 = vcmp.gt.f32.partialorder %v810_v40, 0.0  ;;  %v1322_v46 = vmul.f32 0.01, %v810_v40 }
  0xd4   :  { %1830 = vst [vmem:[%s3660_s2 + $0x430] sm:$0xff] %v1574_v44  ;;  %v1575_v48 = vsel %vm1063_vm7, %v807_v32, %v1319_v42  ;;  %v1576_v49 = vsel %vm1064_vm8, %v808_v36, %v1320_v43  ;;  %v544_v50 = vmul.f32 %v2005_v19, %v278_v34  ;;  %v545_v51 = vmul.f32 %v1981_v4, %v279_v38  ;;  %v86_v32 = vld [vmem:[%s3658_s0 + $0x258] sm:$0xff] }
  0xd5   :  { %1831 = vst [vmem:[%s3660_s2 + $0x438] sm:$0xff] %v1575_v48  ;;  %v1577_v53 = vsel %vm1065_vm9, %v809_v37, %v1321_v45  ;;  %v1578_v54 = vsel %vm1066_vm10, %v810_v40, %v1322_v46  ;;  %v280_v55 = vunpack.c.h.bf16 %v81_v27  ;;  %v281_v56 = vunpack.c.l.bf16 %v82_v41  ;;  %v88_v48 = vld [vmem:[%s3658_s0 + $0x268] sm:$0xff] }
  0xd6   :  { %1832 = vst [vmem:[%s3660_s2 + $0x440] sm:$0xff] %v1576_v49  ;;  %v811_v57 = vadd.f32 %v2007_v20, %v544_v50  ;;  %v812_v58 = vadd.f32 %v1991_v9, %v545_v51  ;;  %v282_v59 = vunpack.c.h.bf16 %v82_v41  ;;  %v283_v60 = vunpack.c.l.bf16 %v83_v47 }
  0xd7   :  { %1833 = vst [vmem:[%s3660_s2 + $0x448] sm:$0xff] %v1577_v53  ;;  %v546_v61 = vmul.f32 %v1986_v7, %v280_v55  ;;  %v547_v62 = vmul.f32 %v1995_v12, %v281_v56  ;;  %v284_v63 = vunpack.c.h.bf16 %v83_v47  ;;  %v285_v0 = vunpack.c.l.bf16 %v84_v52 }
  0xd8   :  { %1834 = vst [vmem:[%s3660_s2 + $0x450] sm:$0xff] %v1578_v54  ;;  %vm1067_vm11 = vcmp.gt.f32.partialorder %v811_v57, 0.0  ;;  %v1323_v1 = vmul.f32 0.01, %v811_v57  ;;  %vm1068_vm12 = vcmp.gt.f32.partialorder %v812_v58, 0.0  ;;  %v548_v2 = vmul.f32 %v2005_v19, %v282_v59 }
  0xd9   :  { %v1324_v3 = vmul.f32 0.01, %v812_v58  ;;  %v813_v5 = vadd.f32 %v1993_v10, %v546_v61  ;;  %v814_v6 = vadd.f32 %v2002_v16, %v547_v62  ;;  %v549_v8 = vmul.f32 %v1981_v4, %v283_v60  ;;  %v89_v62 = vld [vmem:[%s3658_s0 + $0x270] sm:$0xff] }
  0xda   :  { %v1579_v11 = vsel %vm1067_vm11, %v811_v57, %v1323_v1  ;;  %v815_v13 = vadd.f32 %v2007_v20, %v548_v2  ;;  %v550_v14 = vmul.f32 %v1986_v7, %v284_v63  ;;  %v551_v15 = vmul.f32 %v1995_v12, %v285_v0 }
  0xdb   :  { %1835 = vst [vmem:[%s3660_s2 + $0x458] sm:$0xff] %v1579_v11  ;;  %v1580_v17 = vsel %vm1068_vm12, %v812_v58, %v1324_v3  ;;  %vm1069_vm13 = vcmp.gt.f32.partialorder %v813_v5, 0.0  ;;  %v1325_v18 = vmul.f32 0.01, %v813_v5  ;;  %vm1070_vm14 = vcmp.gt.f32.partialorder %v814_v6, 0.0 }
  0xdc   :  { %1836 = vst [vmem:[%s3660_s2 + $0x460] sm:$0xff] %v1580_v17  ;;  %v1326_v21 = vmul.f32 0.01, %v814_v6  ;;  %vm1071_vm15 = vcmp.gt.f32.partialorder %v815_v13, 0.0  ;;  %v1327_v22 = vmul.f32 0.01, %v815_v13  ;;  %v816_v23 = vadd.f32 %v1991_v9, %v549_v8 }
  0xdd   :  { %v1581_v24 = vsel %vm1069_vm13, %v813_v5, %v1325_v18  ;;  %v817_v25 = vadd.f32 %v1993_v10, %v550_v14  ;;  %v818_v26 = vadd.f32 %v2002_v16, %v551_v15  ;;  %v286_v27 = vunpack.c.h.bf16 %v84_v52  ;;  %v90_v5 = vld [vmem:[%s3658_s0 + $0x278] sm:$0xff]  ;;  %v91_v14 = vld [vmem:[%s3658_s0 + $0x280] sm:$0xff] }
  0xde   :  { %1837 = vst [vmem:[%s3660_s2 + $0x468] sm:$0xff] %v1581_v24  ;;  %v1582_v29 = vsel %vm1070_vm14, %v814_v6, %v1326_v21  ;;  %v1583_v30 = vsel %vm1071_vm15, %v815_v13, %v1327_v22  ;;  %vm1072_vm0 = vcmp.gt.f32.partialorder %v816_v23, 0.0  ;;  %v1328_v31 = vmul.f32 0.01, %v816_v23 }
  0xdf   :  { %1838 = vst [vmem:[%s3660_s2 + $0x470] sm:$0xff] %v1582_v29  ;;  %vm1073_vm1 = vcmp.gt.f32.partialorder %v817_v25, 0.0  ;;  %v1329_v33 = vmul.f32 0.01, %v817_v25  ;;  %vm1074_vm2 = vcmp.gt.f32.partialorder %v818_v26, 0.0  ;;  %v552_v34 = vmul.f32 %v2005_v19, %v286_v27 }
  0xe0   :  { %1839 = vst [vmem:[%s3660_s2 + $0x478] sm:$0xff] %v1583_v30  ;;  %v1584_v36 = vsel %vm1072_vm0, %v816_v23, %v1328_v31  ;;  %v1330_v37 = vmul.f32 0.01, %v818_v26  ;;  %v287_v38 = vunpack.c.l.bf16 %v85_v28  ;;  %v288_v39 = vunpack.c.h.bf16 %v85_v28 }
  0xe1   :  { %1840 = vst [vmem:[%s3660_s2 + $0x480] sm:$0xff] %v1584_v36  ;;  %v1585_v40 = vsel %vm1073_vm1, %v817_v25, %v1329_v33  ;;  %v819_v41 = vadd.f32 %v2007_v20, %v552_v34  ;;  %v289_v42 = vunpack.c.l.bf16 %v86_v32  ;;  %v290_v43 = vunpack.c.h.bf16 %v86_v32 }
  0xe2   :  { %1841 = vst [vmem:[%s3660_s2 + $0x488] sm:$0xff] %v1585_v40  ;;  %v1586_v44 = vsel %vm1074_vm2, %v818_v26, %v1330_v37  ;;  %v553_v45 = vmul.f32 %v1981_v4, %v287_v38  ;;  %v554_v46 = vmul.f32 %v1986_v7, %v288_v39  ;;  %v291_v47 = vunpack.c.l.bf16 %v87_v35 }
  0xe3   :  { %1842 = vst [vmem:[%s3660_s2 + $0x490] sm:$0xff] %v1586_v44  ;;  %vm1075_vm3 = vcmp.gt.f32.partialorder %v819_v41, 0.0  ;;  %v1331_v49 = vmul.f32 0.01, %v819_v41  ;;  %v555_v50 = vmul.f32 %v1995_v12, %v289_v42  ;;  %v556_v51 = vmul.f32 %v2005_v19, %v290_v43 }
  0xe4   :  { %v820_v52 = vadd.f32 %v1991_v9, %v553_v45  ;;  %v821_v53 = vadd.f32 %v1993_v10, %v554_v46  ;;  %v557_v54 = vmul.f32 %v1981_v4, %v291_v47  ;;  %v292_v55 = vunpack.c.h.bf16 %v87_v35 }
  0xe5   :  { %v1587_v56 = vsel %vm1075_vm3, %v819_v41, %v1331_v49  ;;  %v822_v57 = vadd.f32 %v2002_v16, %v555_v50  ;;  %v823_v58 = vadd.f32 %v2007_v20, %v556_v51  ;;  %v293_v59 = vunpack.c.l.bf16 %v88_v48  ;;  %v92_v49 = vld [vmem:[%s3658_s0 + $0x288] sm:$0xff] }
  0xe6   :  { %1843 = vst [vmem:[%s3660_s2 + $0x498] sm:$0xff] %v1587_v56  ;;  %vm1076_vm4 = vcmp.gt.f32.partialorder %v820_v52, 0.0  ;;  %v1332_v60 = vmul.f32 0.01, %v820_v52  ;;  %vm1077_vm5 = vcmp.gt.f32.partialorder %v821_v53, 0.0  ;;  %v824_v61 = vadd.f32 %v1991_v9, %v557_v54  ;;  %v94_v56 = vld [vmem:[%s3658_s0 + $0x298] sm:$0xff] }
  0xe7   :  { %v1333_v63 = vmul.f32 0.01, %v821_v53  ;;  %vm1078_vm6 = vcmp.gt.f32.partialorder %v822_v57, 0.0  ;;  %v1334_v0 = vmul.f32 0.01, %v822_v57  ;;  %vm1079_vm7 = vcmp.gt.f32.partialorder %v823_v58, 0.0 }
  0xe8   :  { %v1588_v1 = vsel %vm1076_vm4, %v820_v52, %v1332_v60  ;;  %v1335_v2 = vmul.f32 0.01, %v823_v58  ;;  %vm1080_vm8 = vcmp.gt.f32.partialorder %v824_v61, 0.0  ;;  %v1336_v3 = vmul.f32 0.01, %v824_v61 }
  0xe9   :  { %1844 = vst [vmem:[%s3660_s2 + $0x4a0] sm:$0xff] %v1588_v1  ;;  %v1589_v6 = vsel %vm1077_vm5, %v821_v53, %v1333_v63  ;;  %v1590_v8 = vsel %vm1078_vm6, %v822_v57, %v1334_v0  ;;  %v558_v11 = vmul.f32 %v1986_v7, %v292_v55  ;;  %v559_v13 = vmul.f32 %v1995_v12, %v293_v59  ;;  %v93_v53 = vld [vmem:[%s3658_s0 + $0x290] sm:$0xff] }
  0xea   :  { %1845 = vst [vmem:[%s3660_s2 + $0x4a8] sm:$0xff] %v1589_v6  ;;  %v1591_v15 = vsel %vm1079_vm7, %v823_v58, %v1335_v2  ;;  %v1592_v17 = vsel %vm1080_vm8, %v824_v61, %v1336_v3  ;;  %v294_v18 = vunpack.c.h.bf16 %v88_v48  ;;  %v295_v21 = vunpack.c.l.bf16 %v89_v62  ;;  %v95_v6 = vld [vmem:[%s3658_s0 + $0x2a0] sm:$0xff] }
  0xeb   :  { %1846 = vst [vmem:[%s3660_s2 + $0x4b0] sm:$0xff] %v1590_v8  ;;  %v825_v22 = vadd.f32 %v1993_v10, %v558_v11  ;;  %v826_v23 = vadd.f32 %v2002_v16, %v559_v13  ;;  %v296_v24 = vunpack.c.h.bf16 %v89_v62  ;;  %v297_v25 = vunpack.c.l.bf16 %v90_v5 }
  0xec   :  { %1847 = vst [vmem:[%s3660_s2 + $0x4b8] sm:$0xff] %v1591_v15  ;;  %v560_v26 = vmul.f32 %v2005_v19, %v294_v18  ;;  %v561_v27 = vmul.f32 %v1981_v4, %v295_v21  ;;  %v298_v28 = vunpack.c.h.bf16 %v90_v5  ;;  %v299_v29 = vunpack.c.l.bf16 %v91_v14 }
  0xed   :  { %1848 = vst [vmem:[%s3660_s2 + $0x4c0] sm:$0xff] %v1592_v17  ;;  %vm1081_vm9 = vcmp.gt.f32.partialorder %v825_v22, 0.0  ;;  %v1337_v30 = vmul.f32 0.01, %v825_v22  ;;  %vm1082_vm10 = vcmp.gt.f32.partialorder %v826_v23, 0.0  ;;  %v562_v31 = vmul.f32 %v1986_v7, %v296_v24 }
  0xee   :  { %v1338_v32 = vmul.f32 0.01, %v826_v23  ;;  %v827_v33 = vadd.f32 %v2007_v20, %v560_v26  ;;  %v828_v34 = vadd.f32 %v1991_v9, %v561_v27  ;;  %v563_v35 = vmul.f32 %v1995_v12, %v297_v25  ;;  %v96_v27 = vld [vmem:[%s3658_s0 + $0x2a8] sm:$0xff] }
  0xef   :  { %v1593_v36 = vsel %vm1081_vm9, %v825_v22, %v1337_v30  ;;  %v829_v37 = vadd.f32 %v1993_v10, %v562_v31  ;;  %v564_v38 = vmul.f32 %v2005_v19, %v298_v28  ;;  %v565_v39 = vmul.f32 %v1981_v4, %v299_v29 }
  0xf0   :  { %1849 = vst [vmem:[%s3660_s2 + $0x4c8] sm:$0xff] %v1593_v36  ;;  %v1594_v40 = vsel %vm1082_vm10, %v826_v23, %v1338_v32  ;;  %vm1083_vm11 = vcmp.gt.f32.partialorder %v827_v33, 0.0  ;;  %v1339_v41 = vmul.f32 0.01, %v827_v33  ;;  %vm1084_vm12 = vcmp.gt.f32.partialorder %v828_v34, 0.0 }
  0xf1   :  { %1850 = vst [vmem:[%s3660_s2 + $0x4d0] sm:$0xff] %v1594_v40  ;;  %v1340_v42 = vmul.f32 0.01, %v828_v34  ;;  %vm1085_vm13 = vcmp.gt.f32.partialorder %v829_v37, 0.0  ;;  %v1341_v43 = vmul.f32 0.01, %v829_v37  ;;  %v830_v44 = vadd.f32 %v2002_v16, %v563_v35 }
  0xf2   :  { %v1595_v45 = vsel %vm1083_vm11, %v827_v33, %v1339_v41  ;;  %v831_v46 = vadd.f32 %v2007_v20, %v564_v38  ;;  %v832_v47 = vadd.f32 %v1991_v9, %v565_v39  ;;  %v300_v48 = vunpack.c.h.bf16 %v91_v14  ;;  %v97_v33 = vld [vmem:[%s3658_s0 + $0x2b0] sm:$0xff]  ;;  %v98_v38 = vld [vmem:[%s3658_s0 + $0x2b8] sm:$0xff] }
  0xf3   :  { %1851 = vst [vmem:[%s3660_s2 + $0x4d8] sm:$0xff] %v1595_v45  ;;  %v1596_v50 = vsel %vm1084_vm12, %v828_v34, %v1340_v42  ;;  %v1597_v51 = vsel %vm1085_vm13, %v829_v37, %v1341_v43  ;;  %vm1086_vm14 = vcmp.gt.f32.partialorder %v830_v44, 0.0  ;;  %v1342_v52 = vmul.f32 0.01, %v830_v44 }
  0xf4   :  { %1852 = vst [vmem:[%s3660_s2 + $0x4e0] sm:$0xff] %v1596_v50  ;;  %vm1087_vm15 = vcmp.gt.f32.partialorder %v831_v46, 0.0  ;;  %v1343_v54 = vmul.f32 0.01, %v831_v46  ;;  %vm1088_vm0 = vcmp.gt.f32.partialorder %v832_v47, 0.0  ;;  %v566_v55 = vmul.f32 %v1986_v7, %v300_v48 }
  0xf5   :  { %1853 = vst [vmem:[%s3660_s2 + $0x4e8] sm:$0xff] %v1597_v51  ;;  %v1598_v57 = vsel %vm1086_vm14, %v830_v44, %v1342_v52  ;;  %v1344_v58 = vmul.f32 0.01, %v832_v47  ;;  %v301_v59 = vunpack.c.l.bf16 %v92_v49  ;;  %v302_v60 = vunpack.c.h.bf16 %v92_v49 }
  0xf6   :  { %1854 = vst [vmem:[%s3660_s2 + $0x4f0] sm:$0xff] %v1598_v57  ;;  %v1599_v61 = vsel %vm1087_vm15, %v831_v46, %v1343_v54  ;;  %v833_v62 = vadd.f32 %v1993_v10, %v566_v55  ;;  %v303_v63 = vunpack.c.l.bf16 %v93_v53  ;;  %v304_v0 = vunpack.c.h.bf16 %v93_v53 }
  0xf7   :  { %1855 = vst [vmem:[%s3660_s2 + $0x4f8] sm:$0xff] %v1599_v61  ;;  %v1600_v1 = vsel %vm1088_vm0, %v832_v47, %v1344_v58  ;;  %v567_v2 = vmul.f32 %v1995_v12, %v301_v59  ;;  %v568_v3 = vmul.f32 %v2005_v19, %v302_v60  ;;  %v305_v5 = vunpack.c.l.bf16 %v94_v56 }
  0xf8   :  { %1856 = vst [vmem:[%s3660_s2 + $0x500] sm:$0xff] %v1600_v1  ;;  %vm1089_vm1 = vcmp.gt.f32.partialorder %v833_v62, 0.0  ;;  %v1345_v8 = vmul.f32 0.01, %v833_v62  ;;  %v569_v11 = vmul.f32 %v1981_v4, %v303_v63  ;;  %v570_v13 = vmul.f32 %v1986_v7, %v304_v0 }
  0xf9   :  { %v834_v14 = vadd.f32 %v2002_v16, %v567_v2  ;;  %v835_v15 = vadd.f32 %v2007_v20, %v568_v3  ;;  %v571_v17 = vmul.f32 %v1995_v12, %v305_v5  ;;  %v306_v18 = vunpack.c.h.bf16 %v94_v56 }
  0xfa   :  { %v1601_v21 = vsel %vm1089_vm1, %v833_v62, %v1345_v8  ;;  %v836_v22 = vadd.f32 %v1991_v9, %v569_v11  ;;  %v837_v23 = vadd.f32 %v1993_v10, %v570_v13  ;;  %v307_v24 = vunpack.c.l.bf16 %v95_v6  ;;  %v99_v8 = vld [vmem:[%s3658_s0 + $0x2c0] sm:$0xff] }
  0xfb   :  { %1857 = vst [vmem:[%s3660_s2 + $0x508] sm:$0xff] %v1601_v21  ;;  %vm1090_vm2 = vcmp.gt.f32.partialorder %v834_v14, 0.0  ;;  %v1346_v25 = vmul.f32 0.01, %v834_v14  ;;  %vm1091_vm3 = vcmp.gt.f32.partialorder %v835_v15, 0.0  ;;  %v838_v26 = vadd.f32 %v2002_v16, %v571_v17  ;;  %v101_v21 = vld [vmem:[%s3658_s0 + $0x2d0] sm:$0xff] }
  0xfc   :  { %v1347_v28 = vmul.f32 0.01, %v835_v15  ;;  %vm1092_vm4 = vcmp.gt.f32.partialorder %v836_v22, 0.0  ;;  %v1348_v29 = vmul.f32 0.01, %v836_v22  ;;  %vm1093_vm5 = vcmp.gt.f32.partialorder %v837_v23, 0.0 }
  0xfd   :  { %v1602_v30 = vsel %vm1090_vm2, %v834_v14, %v1346_v25  ;;  %v1349_v31 = vmul.f32 0.01, %v837_v23  ;;  %vm1094_vm6 = vcmp.gt.f32.partialorder %v838_v26, 0.0  ;;  %v1350_v32 = vmul.f32 0.01, %v838_v26 }
  0xfe   :  { %1858 = vst [vmem:[%s3660_s2 + $0x510] sm:$0xff] %v1602_v30  ;;  %v1603_v34 = vsel %vm1091_vm3, %v835_v15, %v1347_v28  ;;  %v1604_v35 = vsel %vm1092_vm4, %v836_v22, %v1348_v29  ;;  %v572_v36 = vmul.f32 %v2005_v19, %v306_v18  ;;  %v573_v37 = vmul.f32 %v1981_v4, %v307_v24  ;;  %v100_v15 = vld [vmem:[%s3658_s0 + $0x2c8] sm:$0xff] }
  0xff   :  { %1859 = vst [vmem:[%s3660_s2 + $0x518] sm:$0xff] %v1603_v34  ;;  %v1605_v39 = vsel %vm1093_vm5, %v837_v23, %v1349_v31  ;;  %v1606_v40 = vsel %vm1094_vm6, %v838_v26, %v1350_v32  ;;  %v308_v41 = vunpack.c.h.bf16 %v95_v6  ;;  %v309_v42 = vunpack.c.l.bf16 %v96_v27  ;;  %v102_v34 = vld [vmem:[%s3658_s0 + $0x2d8] sm:$0xff] }
 0x100   :  { %1860 = vst [vmem:[%s3660_s2 + $0x520] sm:$0xff] %v1604_v35  ;;  %v839_v43 = vadd.f32 %v2007_v20, %v572_v36  ;;  %v840_v44 = vadd.f32 %v1991_v9, %v573_v37  ;;  %v310_v45 = vunpack.c.h.bf16 %v96_v27  ;;  %v311_v46 = vunpack.c.l.bf16 %v97_v33 }
 0x101   :  { %1861 = vst [vmem:[%s3660_s2 + $0x528] sm:$0xff] %v1605_v39  ;;  %v574_v47 = vmul.f32 %v1986_v7, %v308_v41  ;;  %v575_v48 = vmul.f32 %v1995_v12, %v309_v42  ;;  %v312_v49 = vunpack.c.h.bf16 %v97_v33  ;;  %v313_v50 = vunpack.c.l.bf16 %v98_v38 }
 0x102   :  { %1862 = vst [vmem:[%s3660_s2 + $0x530] sm:$0xff] %v1606_v40  ;;  %vm1095_vm7 = vcmp.gt.f32.partialorder %v839_v43, 0.0  ;;  %v1351_v51 = vmul.f32 0.01, %v839_v43  ;;  %vm1096_vm8 = vcmp.gt.f32.partialorder %v840_v44, 0.0  ;;  %v576_v52 = vmul.f32 %v2005_v19, %v310_v45 }
 0x103   :  { %v1352_v53 = vmul.f32 0.01, %v840_v44  ;;  %v841_v54 = vadd.f32 %v1993_v10, %v574_v47  ;;  %v842_v55 = vadd.f32 %v2002_v16, %v575_v48  ;;  %v577_v56 = vmul.f32 %v1981_v4, %v311_v46  ;;  %v103_v48 = vld [vmem:[%s3658_s0 + $0x2e0] sm:$0xff] }
 0x104   :  { %v1607_v57 = vsel %vm1095_vm7, %v839_v43, %v1351_v51  ;;  %v843_v58 = vadd.f32 %v2007_v20, %v576_v52  ;;  %v578_v59 = vmul.f32 %v1986_v7, %v312_v49  ;;  %v579_v60 = vmul.f32 %v1995_v12, %v313_v50 }
 0x105   :  { %1863 = vst [vmem:[%s3660_s2 + $0x538] sm:$0xff] %v1607_v57  ;;  %v1608_v61 = vsel %vm1096_vm8, %v840_v44, %v1352_v53  ;;  %vm1097_vm9 = vcmp.gt.f32.partialorder %v841_v54, 0.0  ;;  %v1353_v62 = vmul.f32 0.01, %v841_v54  ;;  %vm1098_vm10 = vcmp.gt.f32.partialorder %v842_v55, 0.0 }
 0x106   :  { %1864 = vst [vmem:[%s3660_s2 + $0x540] sm:$0xff] %v1608_v61  ;;  %v1354_v63 = vmul.f32 0.01, %v842_v55  ;;  %vm1099_vm11 = vcmp.gt.f32.partialorder %v843_v58, 0.0  ;;  %v1355_v0 = vmul.f32 0.01, %v843_v58  ;;  %v844_v1 = vadd.f32 %v1991_v9, %v577_v56 }
 0x107   :  { %v1609_v2 = vsel %vm1097_vm9, %v841_v54, %v1353_v62  ;;  %v845_v3 = vadd.f32 %v1993_v10, %v578_v59  ;;  %v846_v5 = vadd.f32 %v2002_v16, %v579_v60  ;;  %v314_v6 = vunpack.c.h.bf16 %v98_v38  ;;  %v104_v54 = vld [vmem:[%s3658_s0 + $0x2e8] sm:$0xff]  ;;  %v105_v59 = vld [vmem:[%s3658_s0 + $0x2f0] sm:$0xff] }
 0x108   :  { %1865 = vst [vmem:[%s3660_s2 + $0x548] sm:$0xff] %v1609_v2  ;;  %v1610_v11 = vsel %vm1098_vm10, %v842_v55, %v1354_v63  ;;  %v1611_v13 = vsel %vm1099_vm11, %v843_v58, %v1355_v0  ;;  %vm1100_vm12 = vcmp.gt.f32.partialorder %v844_v1, 0.0  ;;  %v1356_v14 = vmul.f32 0.01, %v844_v1 }
 0x109   :  { %1866 = vst [vmem:[%s3660_s2 + $0x550] sm:$0xff] %v1610_v11  ;;  %vm1101_vm13 = vcmp.gt.f32.partialorder %v845_v3, 0.0  ;;  %v1357_v17 = vmul.f32 0.01, %v845_v3  ;;  %vm1102_vm14 = vcmp.gt.f32.partialorder %v846_v5, 0.0  ;;  %v580_v18 = vmul.f32 %v2005_v19, %v314_v6 }
 0x10a   :  { %1867 = vst [vmem:[%s3660_s2 + $0x558] sm:$0xff] %v1611_v13  ;;  %v1612_v22 = vsel %vm1100_vm12, %v844_v1, %v1356_v14  ;;  %v1358_v23 = vmul.f32 0.01, %v846_v5  ;;  %v315_v24 = vunpack.c.l.bf16 %v99_v8  ;;  %v316_v25 = vunpack.c.h.bf16 %v99_v8 }
 0x10b   :  { %1868 = vst [vmem:[%s3660_s2 + $0x560] sm:$0xff] %v1612_v22  ;;  %v1613_v26 = vsel %vm1101_vm13, %v845_v3, %v1357_v17  ;;  %v847_v27 = vadd.f32 %v2007_v20, %v580_v18  ;;  %v317_v28 = vunpack.c.l.bf16 %v100_v15  ;;  %v318_v29 = vunpack.c.h.bf16 %v100_v15 }
 0x10c   :  { %1869 = vst [vmem:[%s3660_s2 + $0x568] sm:$0xff] %v1613_v26  ;;  %v1614_v30 = vsel %vm1102_vm14, %v846_v5, %v1358_v23  ;;  %v581_v31 = vmul.f32 %v1981_v4, %v315_v24  ;;  %v582_v32 = vmul.f32 %v1986_v7, %v316_v25  ;;  %v319_v33 = vunpack.c.l.bf16 %v101_v21 }
 0x10d   :  { %1870 = vst [vmem:[%s3660_s2 + $0x570] sm:$0xff] %v1614_v30  ;;  %vm1103_vm15 = vcmp.gt.f32.partialorder %v847_v27, 0.0  ;;  %v1359_v35 = vmul.f32 0.01, %v847_v27  ;;  %v583_v36 = vmul.f32 %v1995_v12, %v317_v28  ;;  %v584_v37 = vmul.f32 %v2005_v19, %v318_v29 }
 0x10e   :  { %v848_v38 = vadd.f32 %v1991_v9, %v581_v31  ;;  %v849_v39 = vadd.f32 %v1993_v10, %v582_v32  ;;  %v585_v40 = vmul.f32 %v1981_v4, %v319_v33  ;;  %v320_v41 = vunpack.c.h.bf16 %v101_v21 }
 0x10f   :  { %v1615_v42 = vsel %vm1103_vm15, %v847_v27, %v1359_v35  ;;  %v850_v43 = vadd.f32 %v2002_v16, %v583_v36  ;;  %v851_v44 = vadd.f32 %v2007_v20, %v584_v37  ;;  %v321_v45 = vunpack.c.l.bf16 %v102_v34  ;;  %v106_v35 = vld [vmem:[%s3658_s0 + $0x2f8] sm:$0xff] }
 0x110   :  { %1871 = vst [vmem:[%s3660_s2 + $0x578] sm:$0xff] %v1615_v42  ;;  %vm1104_vm0 = vcmp.gt.f32.partialorder %v848_v38, 0.0  ;;  %v1360_v46 = vmul.f32 0.01, %v848_v38  ;;  %vm1105_vm1 = vcmp.gt.f32.partialorder %v849_v39, 0.0  ;;  %v852_v47 = vadd.f32 %v1991_v9, %v585_v40  ;;  %v108_v42 = vld [vmem:[%s3658_s0 + $0x308] sm:$0xff] }
 0x111   :  { %v1361_v49 = vmul.f32 0.01, %v849_v39  ;;  %vm1106_vm2 = vcmp.gt.f32.partialorder %v850_v43, 0.0  ;;  %v1362_v50 = vmul.f32 0.01, %v850_v43  ;;  %vm1107_vm3 = vcmp.gt.f32.partialorder %v851_v44, 0.0 }
 0x112   :  { %v1616_v51 = vsel %vm1104_vm0, %v848_v38, %v1360_v46  ;;  %v1363_v52 = vmul.f32 0.01, %v851_v44  ;;  %vm1108_vm4 = vcmp.gt.f32.partialorder %v852_v47, 0.0  ;;  %v1364_v53 = vmul.f32 0.01, %v852_v47 }
 0x113   :  { %1872 = vst [vmem:[%s3660_s2 + $0x580] sm:$0xff] %v1616_v51  ;;  %v1617_v55 = vsel %vm1105_vm1, %v849_v39, %v1361_v49  ;;  %v1618_v56 = vsel %vm1106_vm2, %v850_v43, %v1362_v50  ;;  %v586_v57 = vmul.f32 %v1986_v7, %v320_v41  ;;  %v587_v58 = vmul.f32 %v1995_v12, %v321_v45  ;;  %v107_v39 = vld [vmem:[%s3658_s0 + $0x300] sm:$0xff] }
 0x114   :  { %1873 = vst [vmem:[%s3660_s2 + $0x588] sm:$0xff] %v1617_v55  ;;  %v1619_v60 = vsel %vm1107_vm3, %v851_v44, %v1363_v52  ;;  %v1620_v61 = vsel %vm1108_vm4, %v852_v47, %v1364_v53  ;;  %v322_v62 = vunpack.c.h.bf16 %v102_v34  ;;  %v323_v63 = vunpack.c.l.bf16 %v103_v48  ;;  %v109_v55 = vld [vmem:[%s3658_s0 + $0x310] sm:$0xff] }
 0x115   :  { %1874 = vst [vmem:[%s3660_s2 + $0x590] sm:$0xff] %v1618_v56  ;;  %v853_v0 = vadd.f32 %v1993_v10, %v586_v57  ;;  %v854_v1 = vadd.f32 %v2002_v16, %v587_v58  ;;  %v324_v2 = vunpack.c.h.bf16 %v103_v48  ;;  %v325_v3 = vunpack.c.l.bf16 %v104_v54 }
 0x116   :  { %1875 = vst [vmem:[%s3660_s2 + $0x598] sm:$0xff] %v1619_v60  ;;  %v588_v5 = vmul.f32 %v2005_v19, %v322_v62  ;;  %v589_v6 = vmul.f32 %v1981_v4, %v323_v63  ;;  %v326_v8 = vunpack.c.h.bf16 %v104_v54  ;;  %v327_v11 = vunpack.c.l.bf16 %v105_v59 }
 0x117   :  { %1876 = vst [vmem:[%s3660_s2 + $0x5a0] sm:$0xff] %v1620_v61  ;;  %vm1109_vm5 = vcmp.gt.f32.partialorder %v853_v0, 0.0  ;;  %v1365_v13 = vmul.f32 0.01, %v853_v0  ;;  %vm1110_vm6 = vcmp.gt.f32.partialorder %v854_v1, 0.0  ;;  %v590_v14 = vmul.f32 %v1986_v7, %v324_v2 }
 0x118   :  { %v1366_v15 = vmul.f32 0.01, %v854_v1  ;;  %v855_v17 = vadd.f32 %v2007_v20, %v588_v5  ;;  %v856_v18 = vadd.f32 %v1991_v9, %v589_v6  ;;  %v591_v21 = vmul.f32 %v1995_v12, %v325_v3  ;;  %v110_v6 = vld [vmem:[%s3658_s0 + $0x318] sm:$0xff] }
 0x119   :  { %v1621_v22 = vsel %vm1109_vm5, %v853_v0, %v1365_v13  ;;  %v857_v23 = vadd.f32 %v1993_v10, %v590_v14  ;;  %v592_v24 = vmul.f32 %v2005_v19, %v326_v8  ;;  %v593_v25 = vmul.f32 %v1981_v4, %v327_v11 }
 0x11a   :  { %1877 = vst [vmem:[%s3660_s2 + $0x5a8] sm:$0xff] %v1621_v22  ;;  %v1622_v26 = vsel %vm1110_vm6, %v854_v1, %v1366_v15  ;;  %vm1111_vm7 = vcmp.gt.f32.partialorder %v855_v17, 0.0  ;;  %v1367_v27 = vmul.f32 0.01, %v855_v17  ;;  %vm1112_vm8 = vcmp.gt.f32.partialorder %v856_v18, 0.0 }
 0x11b   :  { %1878 = vst [vmem:[%s3660_s2 + $0x5b0] sm:$0xff] %v1622_v26  ;;  %v1368_v28 = vmul.f32 0.01, %v856_v18  ;;  %vm1113_vm9 = vcmp.gt.f32.partialorder %v857_v23, 0.0  ;;  %v1369_v29 = vmul.f32 0.01, %v857_v23  ;;  %v858_v30 = vadd.f32 %v2002_v16, %v591_v21 }
 0x11c   :  { %v1623_v31 = vsel %vm1111_vm7, %v855_v17, %v1367_v27  ;;  %v859_v32 = vadd.f32 %v2007_v20, %v592_v24  ;;  %v860_v33 = vadd.f32 %v1991_v9, %v593_v25  ;;  %v328_v34 = vunpack.c.h.bf16 %v105_v59  ;;  %v111_v17 = vld [vmem:[%s3658_s0 + $0x320] sm:$0xff]  ;;  %v112_v24 = vld [vmem:[%s3658_s0 + $0x328] sm:$0xff] }
 0x11d   :  { %1879 = vst [vmem:[%s3660_s2 + $0x5b8] sm:$0xff] %v1623_v31  ;;  %v1624_v36 = vsel %vm1112_vm8, %v856_v18, %v1368_v28  ;;  %v1625_v37 = vsel %vm1113_vm9, %v857_v23, %v1369_v29  ;;  %vm1114_vm10 = vcmp.gt.f32.partialorder %v858_v30, 0.0  ;;  %v1370_v38 = vmul.f32 0.01, %v858_v30 }
 0x11e   :  { %1880 = vst [vmem:[%s3660_s2 + $0x5c0] sm:$0xff] %v1624_v36  ;;  %vm1115_vm11 = vcmp.gt.f32.partialorder %v859_v32, 0.0  ;;  %v1371_v40 = vmul.f32 0.01, %v859_v32  ;;  %vm1116_vm12 = vcmp.gt.f32.partialorder %v860_v33, 0.0  ;;  %v594_v41 = vmul.f32 %v1986_v7, %v328_v34 }
 0x11f   :  { %1881 = vst [vmem:[%s3660_s2 + $0x5c8] sm:$0xff] %v1625_v37  ;;  %v1626_v43 = vsel %vm1114_vm10, %v858_v30, %v1370_v38  ;;  %v1372_v44 = vmul.f32 0.01, %v860_v33  ;;  %v329_v45 = vunpack.c.l.bf16 %v106_v35  ;;  %v330_v46 = vunpack.c.h.bf16 %v106_v35 }
 0x120   :  { %1882 = vst [vmem:[%s3660_s2 + $0x5d0] sm:$0xff] %v1626_v43  ;;  %v1627_v47 = vsel %vm1115_vm11, %v859_v32, %v1371_v40  ;;  %v861_v48 = vadd.f32 %v1993_v10, %v594_v41  ;;  %v331_v49 = vunpack.c.l.bf16 %v107_v39  ;;  %v332_v50 = vunpack.c.h.bf16 %v107_v39 }
 0x121   :  { %1883 = vst [vmem:[%s3660_s2 + $0x5d8] sm:$0xff] %v1627_v47  ;;  %v1628_v51 = vsel %vm1116_vm12, %v860_v33, %v1372_v44  ;;  %v595_v52 = vmul.f32 %v1995_v12, %v329_v45  ;;  %v596_v53 = vmul.f32 %v2005_v19, %v330_v46  ;;  %v333_v54 = vunpack.c.l.bf16 %v108_v42 }
 0x122   :  { %1884 = vst [vmem:[%s3660_s2 + $0x5e0] sm:$0xff] %v1628_v51  ;;  %vm1117_vm13 = vcmp.gt.f32.partialorder %v861_v48, 0.0  ;;  %v1373_v56 = vmul.f32 0.01, %v861_v48  ;;  %v597_v57 = vmul.f32 %v1981_v4, %v331_v49  ;;  %v598_v58 = vmul.f32 %v1986_v7, %v332_v50 }
 0x123   :  { %v862_v59 = vadd.f32 %v2002_v16, %v595_v52  ;;  %v863_v60 = vadd.f32 %v2007_v20, %v596_v53  ;;  %v599_v61 = vmul.f32 %v1995_v12, %v333_v54  ;;  %v334_v62 = vunpack.c.h.bf16 %v108_v42 }
 0x124   :  { %v1629_v63 = vsel %vm1117_vm13, %v861_v48, %v1373_v56  ;;  %v864_v0 = vadd.f32 %v1991_v9, %v597_v57  ;;  %v865_v1 = vadd.f32 %v1993_v10, %v598_v58  ;;  %v335_v2 = vunpack.c.l.bf16 %v109_v55  ;;  %v113_v56 = vld [vmem:[%s3658_s0 + $0x330] sm:$0xff] }
 0x125   :  { %1885 = vst [vmem:[%s3660_s2 + $0x5e8] sm:$0xff] %v1629_v63  ;;  %vm1118_vm14 = vcmp.gt.f32.partialorder %v862_v59, 0.0  ;;  %v1374_v3 = vmul.f32 0.01, %v862_v59  ;;  %vm1119_vm15 = vcmp.gt.f32.partialorder %v863_v60, 0.0  ;;  %v866_v5 = vadd.f32 %v2002_v16, %v599_v61  ;;  %v115_v63 = vld [vmem:[%s3658_s0 + $0x340] sm:$0xff] }
 0x126   :  { %v1375_v8 = vmul.f32 0.01, %v863_v60  ;;  %vm1120_vm0 = vcmp.gt.f32.partialorder %v864_v0, 0.0  ;;  %v1376_v11 = vmul.f32 0.01, %v864_v0  ;;  %vm1121_vm1 = vcmp.gt.f32.partialorder %v865_v1, 0.0 }
 0x127   :  { %v1630_v13 = vsel %vm1118_vm14, %v862_v59, %v1374_v3  ;;  %v1377_v14 = vmul.f32 0.01, %v865_v1  ;;  %vm1122_vm2 = vcmp.gt.f32.partialorder %v866_v5, 0.0  ;;  %v1378_v15 = vmul.f32 0.01, %v866_v5 }
 0x128   :  { %1886 = vst [vmem:[%s3660_s2 + $0x5f0] sm:$0xff] %v1630_v13  ;;  %v1631_v18 = vsel %vm1119_vm15, %v863_v60, %v1375_v8  ;;  %v1632_v21 = vsel %vm1120_vm0, %v864_v0, %v1376_v11  ;;  %v600_v22 = vmul.f32 %v2005_v19, %v334_v62  ;;  %v601_v23 = vmul.f32 %v1981_v4, %v335_v2  ;;  %v114_v60 = vld [vmem:[%s3658_s0 + $0x338] sm:$0xff] }
 0x129   :  { %1887 = vst [vmem:[%s3660_s2 + $0x5f8] sm:$0xff] %v1631_v18  ;;  %v1633_v25 = vsel %vm1121_vm1, %v865_v1, %v1377_v14  ;;  %v1634_v26 = vsel %vm1122_vm2, %v866_v5, %v1378_v15  ;;  %v336_v27 = vunpack.c.h.bf16 %v109_v55  ;;  %v337_v28 = vunpack.c.l.bf16 %v110_v6  ;;  %v116_v18 = vld [vmem:[%s3658_s0 + $0x348] sm:$0xff] }
 0x12a   :  { %1888 = vst [vmem:[%s3660_s2 + $0x600] sm:$0xff] %v1632_v21  ;;  %v867_v29 = vadd.f32 %v2007_v20, %v600_v22  ;;  %v868_v30 = vadd.f32 %v1991_v9, %v601_v23  ;;  %v338_v31 = vunpack.c.h.bf16 %v110_v6  ;;  %v339_v32 = vunpack.c.l.bf16 %v111_v17 }
 0x12b   :  { %1889 = vst [vmem:[%s3660_s2 + $0x608] sm:$0xff] %v1633_v25  ;;  %v602_v33 = vmul.f32 %v1986_v7, %v336_v27  ;;  %v603_v34 = vmul.f32 %v1995_v12, %v337_v28  ;;  %v340_v35 = vunpack.c.h.bf16 %v111_v17  ;;  %v341_v36 = vunpack.c.l.bf16 %v112_v24 }
 0x12c   :  { %1890 = vst [vmem:[%s3660_s2 + $0x610] sm:$0xff] %v1634_v26  ;;  %vm1123_vm3 = vcmp.gt.f32.partialorder %v867_v29, 0.0  ;;  %v1379_v37 = vmul.f32 0.01, %v867_v29  ;;  %vm1124_vm4 = vcmp.gt.f32.partialorder %v868_v30, 0.0  ;;  %v604_v38 = vmul.f32 %v2005_v19, %v338_v31 }
 0x12d   :  { %v1380_v39 = vmul.f32 0.01, %v868_v30  ;;  %v869_v40 = vadd.f32 %v1993_v10, %v602_v33  ;;  %v870_v41 = vadd.f32 %v2002_v16, %v603_v34  ;;  %v605_v42 = vmul.f32 %v1981_v4, %v339_v32  ;;  %v117_v34 = vld [vmem:[%s3658_s0 + $0x350] sm:$0xff] }
 0x12e   :  { %v1635_v43 = vsel %vm1123_vm3, %v867_v29, %v1379_v37  ;;  %v871_v44 = vadd.f32 %v2007_v20, %v604_v38  ;;  %v606_v45 = vmul.f32 %v1986_v7, %v340_v35  ;;  %v607_v46 = vmul.f32 %v1995_v12, %v341_v36 }
 0x12f   :  { %1891 = vst [vmem:[%s3660_s2 + $0x618] sm:$0xff] %v1635_v43  ;;  %v1636_v47 = vsel %vm1124_vm4, %v868_v30, %v1380_v39  ;;  %vm1125_vm5 = vcmp.gt.f32.partialorder %v869_v40, 0.0  ;;  %v1381_v48 = vmul.f32 0.01, %v869_v40  ;;  %vm1126_vm6 = vcmp.gt.f32.partialorder %v870_v41, 0.0 }
 0x130   :  { %1892 = vst [vmem:[%s3660_s2 + $0x620] sm:$0xff] %v1636_v47  ;;  %v1382_v49 = vmul.f32 0.01, %v870_v41  ;;  %vm1127_vm7 = vcmp.gt.f32.partialorder %v871_v44, 0.0  ;;  %v1383_v50 = vmul.f32 0.01, %v871_v44  ;;  %v872_v51 = vadd.f32 %v1991_v9, %v605_v42 }
 0x131   :  { %v1637_v52 = vsel %vm1125_vm5, %v869_v40, %v1381_v48  ;;  %v873_v53 = vadd.f32 %v1993_v10, %v606_v45  ;;  %v874_v54 = vadd.f32 %v2002_v16, %v607_v46  ;;  %v342_v55 = vunpack.c.h.bf16 %v112_v24  ;;  %v118_v40 = vld [vmem:[%s3658_s0 + $0x358] sm:$0xff]  ;;  %v119_v45 = vld [vmem:[%s3658_s0 + $0x360] sm:$0xff] }
 0x132   :  { %1893 = vst [vmem:[%s3660_s2 + $0x628] sm:$0xff] %v1637_v52  ;;  %v1638_v57 = vsel %vm1126_vm6, %v870_v41, %v1382_v49  ;;  %v1639_v58 = vsel %vm1127_vm7, %v871_v44, %v1383_v50  ;;  %vm1128_vm8 = vcmp.gt.f32.partialorder %v872_v51, 0.0  ;;  %v1384_v59 = vmul.f32 0.01, %v872_v51 }
 0x133   :  { %1894 = vst [vmem:[%s3660_s2 + $0x630] sm:$0xff] %v1638_v57  ;;  %vm1129_vm9 = vcmp.gt.f32.partialorder %v873_v53, 0.0  ;;  %v1385_v61 = vmul.f32 0.01, %v873_v53  ;;  %vm1130_vm10 = vcmp.gt.f32.partialorder %v874_v54, 0.0  ;;  %v608_v62 = vmul.f32 %v2005_v19, %v342_v55 }
 0x134   :  { %1895 = vst [vmem:[%s3660_s2 + $0x638] sm:$0xff] %v1639_v58  ;;  %v1640_v0 = vsel %vm1128_vm8, %v872_v51, %v1384_v59  ;;  %v1386_v1 = vmul.f32 0.01, %v874_v54  ;;  %v343_v2 = vunpack.c.l.bf16 %v113_v56  ;;  %v344_v3 = vunpack.c.h.bf16 %v113_v56 }
 0x135   :  { %1896 = vst [vmem:[%s3660_s2 + $0x640] sm:$0xff] %v1640_v0  ;;  %v1641_v5 = vsel %vm1129_vm9, %v873_v53, %v1385_v61  ;;  %v875_v6 = vadd.f32 %v2007_v20, %v608_v62  ;;  %v345_v8 = vunpack.c.l.bf16 %v114_v60  ;;  %v346_v11 = vunpack.c.h.bf16 %v114_v60 }
 0x136   :  { %1897 = vst [vmem:[%s3660_s2 + $0x648] sm:$0xff] %v1641_v5  ;;  %v1642_v13 = vsel %vm1130_vm10, %v874_v54, %v1386_v1  ;;  %v609_v14 = vmul.f32 %v1981_v4, %v343_v2  ;;  %v610_v15 = vmul.f32 %v1986_v7, %v344_v3  ;;  %v347_v17 = vunpack.c.l.bf16 %v115_v63 }
 0x137   :  { %1898 = vst [vmem:[%s3660_s2 + $0x650] sm:$0xff] %v1642_v13  ;;  %vm1131_vm11 = vcmp.gt.f32.partialorder %v875_v6, 0.0  ;;  %v1387_v21 = vmul.f32 0.01, %v875_v6  ;;  %v611_v22 = vmul.f32 %v1995_v12, %v345_v8  ;;  %v612_v23 = vmul.f32 %v2005_v19, %v346_v11 }
 0x138   :  { %v876_v24 = vadd.f32 %v1991_v9, %v609_v14  ;;  %v877_v25 = vadd.f32 %v1993_v10, %v610_v15  ;;  %v613_v26 = vmul.f32 %v1981_v4, %v347_v17  ;;  %v348_v27 = vunpack.c.h.bf16 %v115_v63 }
 0x139   :  { %v1643_v28 = vsel %vm1131_vm11, %v875_v6, %v1387_v21  ;;  %v878_v29 = vadd.f32 %v2002_v16, %v611_v22  ;;  %v879_v30 = vadd.f32 %v2007_v20, %v612_v23  ;;  %v349_v31 = vunpack.c.l.bf16 %v116_v18  ;;  %v120_v21 = vld [vmem:[%s3658_s0 + $0x368] sm:$0xff] }
 0x13a   :  { %1899 = vst [vmem:[%s3660_s2 + $0x658] sm:$0xff] %v1643_v28  ;;  %vm1132_vm12 = vcmp.gt.f32.partialorder %v876_v24, 0.0  ;;  %v1388_v32 = vmul.f32 0.01, %v876_v24  ;;  %vm1133_vm13 = vcmp.gt.f32.partialorder %v877_v25, 0.0  ;;  %v880_v33 = vadd.f32 %v1991_v9, %v613_v26  ;;  %v122_v28 = vld [vmem:[%s3658_s0 + $0x378] sm:$0xff] }
 0x13b   :  { %v1389_v35 = vmul.f32 0.01, %v877_v25  ;;  %vm1134_vm14 = vcmp.gt.f32.partialorder %v878_v29, 0.0  ;;  %v1390_v36 = vmul.f32 0.01, %v878_v29  ;;  %vm1135_vm15 = vcmp.gt.f32.partialorder %v879_v30, 0.0 }
 0x13c   :  { %v1644_v37 = vsel %vm1132_vm12, %v876_v24, %v1388_v32  ;;  %v1391_v38 = vmul.f32 0.01, %v879_v30  ;;  %vm1136_vm0 = vcmp.gt.f32.partialorder %v880_v33, 0.0  ;;  %v1392_v39 = vmul.f32 0.01, %v880_v33 }
 0x13d   :  { %1900 = vst [vmem:[%s3660_s2 + $0x660] sm:$0xff] %v1644_v37  ;;  %v1645_v41 = vsel %vm1133_vm13, %v877_v25, %v1389_v35  ;;  %v1646_v42 = vsel %vm1134_vm14, %v878_v29, %v1390_v36  ;;  %v614_v43 = vmul.f32 %v1986_v7, %v348_v27  ;;  %v615_v44 = vmul.f32 %v1995_v12, %v349_v31  ;;  %v121_v25 = vld [vmem:[%s3658_s0 + $0x370] sm:$0xff] }
 0x13e   :  { %1901 = vst [vmem:[%s3660_s2 + $0x668] sm:$0xff] %v1645_v41  ;;  %v1647_v46 = vsel %vm1135_vm15, %v879_v30, %v1391_v38  ;;  %v1648_v47 = vsel %vm1136_vm0, %v880_v33, %v1392_v39  ;;  %v350_v48 = vunpack.c.h.bf16 %v116_v18  ;;  %v351_v49 = vunpack.c.l.bf16 %v117_v34  ;;  %v123_v41 = vld [vmem:[%s3658_s0 + $0x380] sm:$0xff] }
 0x13f   :  { %1902 = vst [vmem:[%s3660_s2 + $0x670] sm:$0xff] %v1646_v42  ;;  %v881_v50 = vadd.f32 %v1993_v10, %v614_v43  ;;  %v882_v51 = vadd.f32 %v2002_v16, %v615_v44  ;;  %v352_v52 = vunpack.c.h.bf16 %v117_v34  ;;  %v353_v53 = vunpack.c.l.bf16 %v118_v40 }
 0x140   :  { %1903 = vst [vmem:[%s3660_s2 + $0x678] sm:$0xff] %v1647_v46  ;;  %v616_v54 = vmul.f32 %v2005_v19, %v350_v48  ;;  %v617_v55 = vmul.f32 %v1981_v4, %v351_v49  ;;  %v354_v56 = vunpack.c.h.bf16 %v118_v40  ;;  %v355_v57 = vunpack.c.l.bf16 %v119_v45 }
 0x141   :  { %1904 = vst [vmem:[%s3660_s2 + $0x680] sm:$0xff] %v1648_v47  ;;  %vm1137_vm1 = vcmp.gt.f32.partialorder %v881_v50, 0.0  ;;  %v1393_v58 = vmul.f32 0.01, %v881_v50  ;;  %vm1138_vm2 = vcmp.gt.f32.partialorder %v882_v51, 0.0  ;;  %v618_v59 = vmul.f32 %v1986_v7, %v352_v52 }
 0x142   :  { %v1394_v60 = vmul.f32 0.01, %v882_v51  ;;  %v883_v61 = vadd.f32 %v2007_v20, %v616_v54  ;;  %v884_v62 = vadd.f32 %v1991_v9, %v617_v55  ;;  %v619_v63 = vmul.f32 %v1995_v12, %v353_v53  ;;  %v124_v55 = vld [vmem:[%s3658_s0 + $0x388] sm:$0xff] }
 0x143   :  { %v1649_v0 = vsel %vm1137_vm1, %v881_v50, %v1393_v58  ;;  %v885_v1 = vadd.f32 %v1993_v10, %v618_v59  ;;  %v620_v2 = vmul.f32 %v2005_v19, %v354_v56  ;;  %v621_v3 = vmul.f32 %v1981_v4, %v355_v57 }
 0x144   :  { %1905 = vst [vmem:[%s3660_s2 + $0x688] sm:$0xff] %v1649_v0  ;;  %v1650_v5 = vsel %vm1138_vm2, %v882_v51, %v1394_v60  ;;  %vm1139_vm3 = vcmp.gt.f32.partialorder %v883_v61, 0.0  ;;  %v1395_v6 = vmul.f32 0.01, %v883_v61  ;;  %vm1140_vm4 = vcmp.gt.f32.partialorder %v884_v62, 0.0 }
 0x145   :  { %1906 = vst [vmem:[%s3660_s2 + $0x690] sm:$0xff] %v1650_v5  ;;  %v1396_v8 = vmul.f32 0.01, %v884_v62  ;;  %vm1141_vm5 = vcmp.gt.f32.partialorder %v885_v1, 0.0  ;;  %v1397_v11 = vmul.f32 0.01, %v885_v1  ;;  %v886_v13 = vadd.f32 %v2002_v16, %v619_v63 }
 0x146   :  { %v1651_v14 = vsel %vm1139_vm3, %v883_v61, %v1395_v6  ;;  %v887_v15 = vadd.f32 %v2007_v20, %v620_v2  ;;  %v888_v17 = vadd.f32 %v1991_v9, %v621_v3  ;;  %v356_v18 = vunpack.c.h.bf16 %v119_v45  ;;  %v125_v61 = vld [vmem:[%s3658_s0 + $0x390] sm:$0xff]  ;;  %v126_v2 = vld [vmem:[%s3658_s0 + $0x398] sm:$0xff] }
 0x147   :  { %1907 = vst [vmem:[%s3660_s2 + $0x698] sm:$0xff] %v1651_v14  ;;  %v1652_v22 = vsel %vm1140_vm4, %v884_v62, %v1396_v8  ;;  %v1653_v23 = vsel %vm1141_vm5, %v885_v1, %v1397_v11  ;;  %vm1142_vm6 = vcmp.gt.f32.partialorder %v886_v13, 0.0  ;;  %v1398_v24 = vmul.f32 0.01, %v886_v13 }
 0x148   :  { %1908 = vst [vmem:[%s3660_s2 + $0x6a0] sm:$0xff] %v1652_v22  ;;  %vm1143_vm7 = vcmp.gt.f32.partialorder %v887_v15, 0.0  ;;  %v1399_v26 = vmul.f32 0.01, %v887_v15  ;;  %vm1144_vm8 = vcmp.gt.f32.partialorder %v888_v17, 0.0  ;;  %v622_v27 = vmul.f32 %v1986_v7, %v356_v18 }
 0x149   :  { %1909 = vst [vmem:[%s3660_s2 + $0x6a8] sm:$0xff] %v1653_v23  ;;  %v1654_v29 = vsel %vm1142_vm6, %v886_v13, %v1398_v24  ;;  %v1400_v30 = vmul.f32 0.01, %v888_v17  ;;  %v357_v31 = vunpack.c.l.bf16 %v120_v21  ;;  %v358_v32 = vunpack.c.h.bf16 %v120_v21 }
 0x14a   :  { %1910 = vst [vmem:[%s3660_s2 + $0x6b0] sm:$0xff] %v1654_v29  ;;  %v1655_v33 = vsel %vm1143_vm7, %v887_v15, %v1399_v26  ;;  %v889_v34 = vadd.f32 %v1993_v10, %v622_v27  ;;  %v359_v35 = vunpack.c.l.bf16 %v121_v25  ;;  %v360_v36 = vunpack.c.h.bf16 %v121_v25 }
 0x14b   :  { %1911 = vst [vmem:[%s3660_s2 + $0x6b8] sm:$0xff] %v1655_v33  ;;  %v1656_v37 = vsel %vm1144_vm8, %v888_v17, %v1400_v30  ;;  %v623_v38 = vmul.f32 %v1995_v12, %v357_v31  ;;  %v624_v39 = vmul.f32 %v2005_v19, %v358_v32  ;;  %v361_v40 = vunpack.c.l.bf16 %v122_v28 }
 0x14c   :  { %1912 = vst [vmem:[%s3660_s2 + $0x6c0] sm:$0xff] %v1656_v37  ;;  %vm1145_vm9 = vcmp.gt.f32.partialorder %v889_v34, 0.0  ;;  %v1401_v42 = vmul.f32 0.01, %v889_v34  ;;  %v625_v43 = vmul.f32 %v1981_v4, %v359_v35  ;;  %v626_v44 = vmul.f32 %v1986_v7, %v360_v36 }
 0x14d   :  { %v890_v45 = vadd.f32 %v2002_v16, %v623_v38  ;;  %v891_v46 = vadd.f32 %v2007_v20, %v624_v39  ;;  %v627_v47 = vmul.f32 %v1995_v12, %v361_v40  ;;  %v362_v48 = vunpack.c.h.bf16 %v122_v28 }
 0x14e   :  { %v1657_v49 = vsel %vm1145_vm9, %v889_v34, %v1401_v42  ;;  %v892_v50 = vadd.f32 %v1991_v9, %v625_v43  ;;  %v893_v51 = vadd.f32 %v1993_v10, %v626_v44  ;;  %v363_v52 = vunpack.c.l.bf16 %v123_v41  ;;  %v127_v42 = vld [vmem:[%s3658_s0 + $0x3a0] sm:$0xff] }
 0x14f   :  { %1913 = vst [vmem:[%s3660_s2 + $0x6c8] sm:$0xff] %v1657_v49  ;;  %vm1146_vm10 = vcmp.gt.f32.partialorder %v890_v45, 0.0  ;;  %v1402_v53 = vmul.f32 0.01, %v890_v45  ;;  %vm1147_vm11 = vcmp.gt.f32.partialorder %v891_v46, 0.0  ;;  %v894_v54 = vadd.f32 %v2002_v16, %v627_v47  ;;  %v129_v49 = vld [vmem:[%s3658_s0 + $0x3b0] sm:$0xff] }
 0x150   :  { %v1403_v56 = vmul.f32 0.01, %v891_v46  ;;  %vm1148_vm12 = vcmp.gt.f32.partialorder %v892_v50, 0.0  ;;  %v1404_v57 = vmul.f32 0.01, %v892_v50  ;;  %vm1149_vm13 = vcmp.gt.f32.partialorder %v893_v51, 0.0 }
 0x151   :  { %v1658_v58 = vsel %vm1146_vm10, %v890_v45, %v1402_v53  ;;  %v1405_v59 = vmul.f32 0.01, %v893_v51  ;;  %vm1150_vm14 = vcmp.gt.f32.partialorder %v894_v54, 0.0  ;;  %v1406_v60 = vmul.f32 0.01, %v894_v54 }
 0x152   :  { %1914 = vst [vmem:[%s3660_s2 + $0x6d0] sm:$0xff] %v1658_v58  ;;  %v1659_v62 = vsel %vm1147_vm11, %v891_v46, %v1403_v56  ;;  %v1660_v63 = vsel %vm1148_vm12, %v892_v50, %v1404_v57  ;;  %v628_v0 = vmul.f32 %v2005_v19, %v362_v48  ;;  %v629_v1 = vmul.f32 %v1981_v4, %v363_v52  ;;  %v128_v46 = vld [vmem:[%s3658_s0 + $0x3a8] sm:$0xff] }
 0x153   :  { %1915 = vst [vmem:[%s3660_s2 + $0x6d8] sm:$0xff] %v1659_v62  ;;  %v1661_v3 = vsel %vm1149_vm13, %v893_v51, %v1405_v59  ;;  %v1662_v5 = vsel %vm1150_vm14, %v894_v54, %v1406_v60  ;;  %v364_v6 = vunpack.c.h.bf16 %v123_v41  ;;  %v365_v8 = vunpack.c.l.bf16 %v124_v55  ;;  %v130_v62 = vld [vmem:[%s3658_s0 + $0x3b8] sm:$0xff] }
 0x154   :  { %1916 = vst [vmem:[%s3660_s2 + $0x6e0] sm:$0xff] %v1660_v63  ;;  %v895_v11 = vadd.f32 %v2007_v20, %v628_v0  ;;  %v896_v13 = vadd.f32 %v1991_v9, %v629_v1  ;;  %v366_v14 = vunpack.c.h.bf16 %v124_v55  ;;  %v367_v15 = vunpack.c.l.bf16 %v125_v61 }
 0x155   :  { %1917 = vst [vmem:[%s3660_s2 + $0x6e8] sm:$0xff] %v1661_v3  ;;  %v630_v17 = vmul.f32 %v1986_v7, %v364_v6  ;;  %v631_v18 = vmul.f32 %v1995_v12, %v365_v8  ;;  %v368_v21 = vunpack.c.h.bf16 %v125_v61  ;;  %v369_v22 = vunpack.c.l.bf16 %v126_v2 }
 0x156   :  { %1918 = vst [vmem:[%s3660_s2 + $0x6f0] sm:$0xff] %v1662_v5  ;;  %vm1151_vm15 = vcmp.gt.f32.partialorder %v895_v11, 0.0  ;;  %v1407_v23 = vmul.f32 0.01, %v895_v11  ;;  %vm1152_vm0 = vcmp.gt.f32.partialorder %v896_v13, 0.0  ;;  %v632_v24 = vmul.f32 %v2005_v19, %v366_v14 }
 0x157   :  { %v1408_v25 = vmul.f32 0.01, %v896_v13  ;;  %v897_v26 = vadd.f32 %v1993_v10, %v630_v17  ;;  %v898_v27 = vadd.f32 %v2002_v16, %v631_v18  ;;  %v633_v28 = vmul.f32 %v1981_v4, %v367_v15  ;;  %v131_v18 = vld [vmem:[%s3658_s0 + $0x3c0] sm:$0xff] }
 0x158   :  { %v1663_v29 = vsel %vm1151_vm15, %v895_v11, %v1407_v23  ;;  %v899_v30 = vadd.f32 %v2007_v20, %v632_v24  ;;  %v634_v31 = vmul.f32 %v1986_v7, %v368_v21  ;;  %v635_v32 = vmul.f32 %v1995_v12, %v369_v22 }
 0x159   :  { %1919 = vst [vmem:[%s3660_s2 + $0x6f8] sm:$0xff] %v1663_v29  ;;  %v1664_v33 = vsel %vm1152_vm0, %v896_v13, %v1408_v25  ;;  %vm1153_vm1 = vcmp.gt.f32.partialorder %v897_v26, 0.0  ;;  %v1409_v34 = vmul.f32 0.01, %v897_v26  ;;  %vm1154_vm2 = vcmp.gt.f32.partialorder %v898_v27, 0.0 }
 0x15a   :  { %1920 = vst [vmem:[%s3660_s2 + $0x700] sm:$0xff] %v1664_v33  ;;  %v1410_v35 = vmul.f32 0.01, %v898_v27  ;;  %vm1155_vm3 = vcmp.gt.f32.partialorder %v899_v30, 0.0  ;;  %v1411_v36 = vmul.f32 0.01, %v899_v30  ;;  %v900_v37 = vadd.f32 %v1991_v9, %v633_v28 }
 0x15b   :  { %v1665_v38 = vsel %vm1153_vm1, %v897_v26, %v1409_v34  ;;  %v901_v39 = vadd.f32 %v1993_v10, %v634_v31  ;;  %v902_v40 = vadd.f32 %v2002_v16, %v635_v32  ;;  %v370_v41 = vunpack.c.h.bf16 %v126_v2  ;;  %v132_v26 = vld [vmem:[%s3658_s0 + $0x3c8] sm:$0xff]  ;;  %v133_v31 = vld [vmem:[%s3658_s0 + $0x3d0] sm:$0xff] }
 0x15c   :  { %1921 = vst [vmem:[%s3660_s2 + $0x708] sm:$0xff] %v1665_v38  ;;  %v1666_v43 = vsel %vm1154_vm2, %v898_v27, %v1410_v35  ;;  %v1667_v44 = vsel %vm1155_vm3, %v899_v30, %v1411_v36  ;;  %vm1156_vm4 = vcmp.gt.f32.partialorder %v900_v37, 0.0  ;;  %v1412_v45 = vmul.f32 0.01, %v900_v37 }
 0x15d   :  { %1922 = vst [vmem:[%s3660_s2 + $0x710] sm:$0xff] %v1666_v43  ;;  %vm1157_vm5 = vcmp.gt.f32.partialorder %v901_v39, 0.0  ;;  %v1413_v47 = vmul.f32 0.01, %v901_v39  ;;  %vm1158_vm6 = vcmp.gt.f32.partialorder %v902_v40, 0.0  ;;  %v636_v48 = vmul.f32 %v2005_v19, %v370_v41 }
 0x15e   :  { %1923 = vst [vmem:[%s3660_s2 + $0x718] sm:$0xff] %v1667_v44  ;;  %v1668_v50 = vsel %vm1156_vm4, %v900_v37, %v1412_v45  ;;  %v1414_v51 = vmul.f32 0.01, %v902_v40  ;;  %v371_v52 = vunpack.c.l.bf16 %v127_v42  ;;  %v372_v53 = vunpack.c.h.bf16 %v127_v42 }
 0x15f   :  { %1924 = vst [vmem:[%s3660_s2 + $0x720] sm:$0xff] %v1668_v50  ;;  %v1669_v54 = vsel %vm1157_vm5, %v901_v39, %v1413_v47  ;;  %v903_v55 = vadd.f32 %v2007_v20, %v636_v48  ;;  %v373_v56 = vunpack.c.l.bf16 %v128_v46  ;;  %v374_v57 = vunpack.c.h.bf16 %v128_v46 }
 0x160   :  { %1925 = vst [vmem:[%s3660_s2 + $0x728] sm:$0xff] %v1669_v54  ;;  %v1670_v58 = vsel %vm1158_vm6, %v902_v40, %v1414_v51  ;;  %v637_v59 = vmul.f32 %v1981_v4, %v371_v52  ;;  %v638_v60 = vmul.f32 %v1986_v7, %v372_v53  ;;  %v375_v61 = vunpack.c.l.bf16 %v129_v49 }
 0x161   :  { %1926 = vst [vmem:[%s3660_s2 + $0x730] sm:$0xff] %v1670_v58  ;;  %vm1159_vm7 = vcmp.gt.f32.partialorder %v903_v55, 0.0  ;;  %v1415_v63 = vmul.f32 0.01, %v903_v55  ;;  %v639_v0 = vmul.f32 %v1995_v12, %v373_v56  ;;  %v640_v1 = vmul.f32 %v2005_v19, %v374_v57 }
 0x162   :  { %v904_v2 = vadd.f32 %v1991_v9, %v637_v59  ;;  %v905_v3 = vadd.f32 %v1993_v10, %v638_v60  ;;  %v641_v5 = vmul.f32 %v1981_v4, %v375_v61  ;;  %v376_v6 = vunpack.c.h.bf16 %v129_v49 }
 0x163   :  { %v1671_v8 = vsel %vm1159_vm7, %v903_v55, %v1415_v63  ;;  %v906_v11 = vadd.f32 %v2002_v16, %v639_v0  ;;  %v907_v13 = vadd.f32 %v2007_v20, %v640_v1  ;;  %v377_v14 = vunpack.c.l.bf16 %v130_v62  ;;  %v134_v63 = vld [vmem:[%s3658_s0 + $0x3d8] sm:$0xff] }
 0x164   :  { %1927 = vst [vmem:[%s3660_s2 + $0x738] sm:$0xff] %v1671_v8  ;;  %vm1160_vm8 = vcmp.gt.f32.partialorder %v904_v2, 0.0  ;;  %v1416_v15 = vmul.f32 0.01, %v904_v2  ;;  %vm1161_vm9 = vcmp.gt.f32.partialorder %v905_v3, 0.0  ;;  %v908_v17 = vadd.f32 %v1991_v9, %v641_v5  ;;  %v136_v8 = vld [vmem:[%s3658_s0 + $0x3e8] sm:$0xff] }
 0x165   :  { %v1417_v21 = vmul.f32 0.01, %v905_v3  ;;  %vm1162_vm10 = vcmp.gt.f32.partialorder %v906_v11, 0.0  ;;  %v1418_v22 = vmul.f32 0.01, %v906_v11  ;;  %vm1163_vm11 = vcmp.gt.f32.partialorder %v907_v13, 0.0 }
 0x166   :  { %v1672_v23 = vsel %vm1160_vm8, %v904_v2, %v1416_v15  ;;  %v1419_v24 = vmul.f32 0.01, %v907_v13  ;;  %vm1164_vm12 = vcmp.gt.f32.partialorder %v908_v17, 0.0  ;;  %v1420_v25 = vmul.f32 0.01, %v908_v17 }
 0x167   :  { %1928 = vst [vmem:[%s3660_s2 + $0x740] sm:$0xff] %v1672_v23  ;;  %v1673_v27 = vsel %vm1161_vm9, %v905_v3, %v1417_v21  ;;  %v1674_v28 = vsel %vm1162_vm10, %v906_v11, %v1418_v22  ;;  %v642_v29 = vmul.f32 %v1986_v7, %v376_v6  ;;  %v643_v30 = vmul.f32 %v1995_v12, %v377_v14  ;;  %v135_v3 = vld [vmem:[%s3658_s0 + $0x3e0] sm:$0xff] }
 0x168   :  { %1929 = vst [vmem:[%s3660_s2 + $0x748] sm:$0xff] %v1673_v27  ;;  %v1675_v32 = vsel %vm1163_vm11, %v907_v13, %v1419_v24  ;;  %v1676_v33 = vsel %vm1164_vm12, %v908_v17, %v1420_v25  ;;  %v378_v34 = vunpack.c.h.bf16 %v130_v62  ;;  %v379_v35 = vunpack.c.l.bf16 %v131_v18  ;;  %v137_v27 = vld [vmem:[%s3658_s0 + $0x3f0] sm:$0xff] }
 0x169   :  { %1930 = vst [vmem:[%s3660_s2 + $0x750] sm:$0xff] %v1674_v28  ;;  %v909_v36 = vadd.f32 %v1993_v10, %v642_v29  ;;  %v910_v37 = vadd.f32 %v2002_v16, %v643_v30  ;;  %v380_v38 = vunpack.c.h.bf16 %v131_v18  ;;  %v381_v39 = vunpack.c.l.bf16 %v132_v26 }
 0x16a   :  { %1931 = vst [vmem:[%s3660_s2 + $0x758] sm:$0xff] %v1675_v32  ;;  %v644_v40 = vmul.f32 %v2005_v19, %v378_v34  ;;  %v645_v41 = vmul.f32 %v1981_v4, %v379_v35  ;;  %v382_v42 = vunpack.c.h.bf16 %v132_v26  ;;  %v383_v43 = vunpack.c.l.bf16 %v133_v31 }
 0x16b   :  { %1932 = vst [vmem:[%s3660_s2 + $0x760] sm:$0xff] %v1676_v33  ;;  %vm1165_vm13 = vcmp.gt.f32.partialorder %v909_v36, 0.0  ;;  %v1421_v44 = vmul.f32 0.01, %v909_v36  ;;  %vm1166_vm14 = vcmp.gt.f32.partialorder %v910_v37, 0.0  ;;  %v646_v45 = vmul.f32 %v1986_v7, %v380_v38 }
 0x16c   :  { %v1422_v46 = vmul.f32 0.01, %v910_v37  ;;  %v911_v47 = vadd.f32 %v2007_v20, %v644_v40  ;;  %v912_v48 = vadd.f32 %v1991_v9, %v645_v41  ;;  %v647_v49 = vmul.f32 %v1995_v12, %v381_v39  ;;  %v138_v41 = vld [vmem:[%s3658_s0 + $0x3f8] sm:$0xff] }
 0x16d   :  { %v1677_v50 = vsel %vm1165_vm13, %v909_v36, %v1421_v44  ;;  %v913_v51 = vadd.f32 %v1993_v10, %v646_v45  ;;  %v648_v52 = vmul.f32 %v2005_v19, %v382_v42  ;;  %v649_v53 = vmul.f32 %v1981_v4, %v383_v43 }
 0x16e   :  { %1933 = vst [vmem:[%s3660_s2 + $0x768] sm:$0xff] %v1677_v50  ;;  %v1678_v54 = vsel %vm1166_vm14, %v910_v37, %v1422_v46  ;;  %vm1167_vm15 = vcmp.gt.f32.partialorder %v911_v47, 0.0  ;;  %v1423_v55 = vmul.f32 0.01, %v911_v47  ;;  %vm1168_vm0 = vcmp.gt.f32.partialorder %v912_v48, 0.0 }
 0x16f   :  { %1934 = vst [vmem:[%s3660_s2 + $0x770] sm:$0xff] %v1678_v54  ;;  %v1424_v56 = vmul.f32 0.01, %v912_v48  ;;  %vm1169_vm1 = vcmp.gt.f32.partialorder %v913_v51, 0.0  ;;  %v1425_v57 = vmul.f32 0.01, %v913_v51  ;;  %v914_v58 = vadd.f32 %v2002_v16, %v647_v49 }
 0x170   :  { %v1679_v59 = vsel %vm1167_vm15, %v911_v47, %v1423_v55  ;;  %v915_v60 = vadd.f32 %v2007_v20, %v648_v52  ;;  %v916_v61 = vadd.f32 %v1991_v9, %v649_v53  ;;  %v384_v62 = vunpack.c.h.bf16 %v133_v31 }
 0x171   :  { %1935 = vst [vmem:[%s3660_s2 + $0x778] sm:$0xff] %v1679_v59  ;;  %v1680_v0 = vsel %vm1168_vm0, %v912_v48, %v1424_v56  ;;  %v1681_v1 = vsel %vm1169_vm1, %v913_v51, %v1425_v57  ;;  %vm1170_vm2 = vcmp.gt.f32.partialorder %v914_v58, 0.0  ;;  %v1426_v2 = vmul.f32 0.01, %v914_v58 }
 0x172   :  { %1936 = vst [vmem:[%s3660_s2 + $0x780] sm:$0xff] %v1680_v0  ;;  %vm1171_vm3 = vcmp.gt.f32.partialorder %v915_v60, 0.0  ;;  %v1427_v5 = vmul.f32 0.01, %v915_v60  ;;  %vm1172_vm4 = vcmp.gt.f32.partialorder %v916_v61, 0.0  ;;  %v650_v6 = vmul.f32 %v1986_v7, %v384_v62 }
 0x173   :  { %1937 = vst [vmem:[%s3660_s2 + $0x788] sm:$0xff] %v1681_v1  ;;  %v1682_v11 = vsel %vm1170_vm2, %v914_v58, %v1426_v2  ;;  %v1428_v13 = vmul.f32 0.01, %v916_v61  ;;  %v385_v14 = vunpack.c.l.bf16 %v134_v63  ;;  %v386_v15 = vunpack.c.h.bf16 %v134_v63 }
 0x174   :  { %1938 = vst [vmem:[%s3660_s2 + $0x790] sm:$0xff] %v1682_v11  ;;  %v1683_v17 = vsel %vm1171_vm3, %v915_v60, %v1427_v5  ;;  %v917_v18 = vadd.f32 %v1993_v10, %v650_v6  ;;  %v387_v21 = vunpack.c.l.bf16 %v135_v3  ;;  %v388_v22 = vunpack.c.h.bf16 %v135_v3 }
 0x175   :  { %1939 = vst [vmem:[%s3660_s2 + $0x798] sm:$0xff] %v1683_v17  ;;  %v1684_v23 = vsel %vm1172_vm4, %v916_v61, %v1428_v13  ;;  %v651_v24 = vmul.f32 %v1995_v12, %v385_v14  ;;  %v652_v25 = vmul.f32 %v2005_v19, %v386_v15  ;;  %v389_v26 = vunpack.c.l.bf16 %v136_v8 }
 0x176   :  { %1940 = vst [vmem:[%s3660_s2 + $0x7a0] sm:$0xff] %v1684_v23  ;;  %vm1173_vm5 = vcmp.gt.f32.partialorder %v917_v18, 0.0  ;;  %v1429_v28 = vmul.f32 0.01, %v917_v18  ;;  %v653_v29 = vmul.f32 %v1981_v4, %v387_v21  ;;  %v654_v30 = vmul.f32 %v1986_v7, %v388_v22 }
 0x177   :  { %v918_v31 = vadd.f32 %v2002_v16, %v651_v24  ;;  %v919_v32 = vadd.f32 %v2007_v20, %v652_v25  ;;  %v655_v33 = vmul.f32 %v1995_v12, %v389_v26  ;;  %v390_v34 = vunpack.c.h.bf16 %v136_v8 }
 0x178   :  { %v1685_v35 = vsel %vm1173_vm5, %v917_v18, %v1429_v28  ;;  %v920_v36 = vadd.f32 %v1991_v9, %v653_v29  ;;  %v921_v37 = vadd.f32 %v1993_v10, %v654_v30  ;;  %v391_v38 = vunpack.c.l.bf16 %v137_v27 }
 0x179   :  { %1941 = vst [vmem:[%s3660_s2 + $0x7a8] sm:$0xff] %v1685_v35  ;;  %vm1174_vm6 = vcmp.gt.f32.partialorder %v918_v31, 0.0  ;;  %v1430_v39 = vmul.f32 0.01, %v918_v31  ;;  %vm1175_vm7 = vcmp.gt.f32.partialorder %v919_v32, 0.0  ;;  %v922_v40 = vadd.f32 %v2002_v16, %v655_v33 }
 0x17a   :  { %v1431_v42 = vmul.f32 0.01, %v919_v32  ;;  %vm1176_vm8 = vcmp.gt.f32.partialorder %v920_v36, 0.0  ;;  %v1432_v43 = vmul.f32 0.01, %v920_v36  ;;  %vm1177_vm9 = vcmp.gt.f32.partialorder %v921_v37, 0.0 }
 0x17b   :  { %v1686_v44 = vsel %vm1174_vm6, %v918_v31, %v1430_v39  ;;  %v1433_v45 = vmul.f32 0.01, %v921_v37  ;;  %vm1178_vm10 = vcmp.gt.f32.partialorder %v922_v40, 0.0  ;;  %v1434_v46 = vmul.f32 0.01, %v922_v40 }
 0x17c   :  { %1942 = vst [vmem:[%s3660_s2 + $0x7b0] sm:$0xff] %v1686_v44  ;;  %v1687_v47 = vsel %vm1175_vm7, %v919_v32, %v1431_v42  ;;  %v1688_v48 = vsel %vm1176_vm8, %v920_v36, %v1432_v43  ;;  %v656_v49 = vmul.f32 %v2005_v19, %v390_v34  ;;  %v657_v50 = vmul.f32 %v1981_v4, %v391_v38 }
 0x17d   :  { %1943 = vst [vmem:[%s3660_s2 + $0x7b8] sm:$0xff] %v1687_v47  ;;  %v1689_v51 = vsel %vm1177_vm9, %v921_v37, %v1433_v45  ;;  %v1690_v52 = vsel %vm1178_vm10, %v922_v40, %v1434_v46  ;;  %v392_v53 = vunpack.c.h.bf16 %v137_v27  ;;  %v393_v54 = vunpack.c.l.bf16 %v138_v41 }
 0x17e   :  { %1944 = vst [vmem:[%s3660_s2 + $0x7c0] sm:$0xff] %v1688_v48  ;;  %v923_v55 = vadd.f32 %v2007_v20, %v656_v49  ;;  %v924_v56 = vadd.f32 %v1991_v9, %v657_v50  ;;  %v394_v57 = vunpack.c.h.bf16 %v138_v41 }
 0x17f   :  { %1945 = vst [vmem:[%s3660_s2 + $0x7c8] sm:$0xff] %v1689_v51  ;;  %v658_v4 = vmul.f32 %v1986_v7, %v392_v53  ;;  %v659_v58 = vmul.f32 %v1995_v12, %v393_v54 }
 0x180   :  { %1946 = vst [vmem:[%s3660_s2 + $0x7d0] sm:$0xff] %v1690_v52  ;;  %vm1179_vm11 = vcmp.gt.f32.partialorder %v923_v55, 0.0  ;;  %v1435_v59 = vmul.f32 0.01, %v923_v55  ;;  %vm1180_vm12 = vcmp.gt.f32.partialorder %v924_v56, 0.0  ;;  %v660_v60 = vmul.f32 %v2005_v19, %v394_v57 }
 0x181   :  { %v1436_v61 = vmul.f32 0.01, %v924_v56  ;;  %v925_v9 = vadd.f32 %v1993_v10, %v658_v4  ;;  %v926_v62 = vadd.f32 %v2002_v16, %v659_v58 }
 0x182   :  { %v1691_v63 = vsel %vm1179_vm11, %v923_v55, %v1435_v59  ;;  %v927_v0 = vadd.f32 %v2007_v20, %v660_v60 }
 0x183   :  { %1947 = vst [vmem:[%s3660_s2 + $0x7d8] sm:$0xff] %v1691_v63  ;;  %v1692_v7 = vsel %vm1180_vm12, %v924_v56, %v1436_v61  ;;  %vm1181_vm13 = vcmp.gt.f32.partialorder %v925_v9, 0.0  ;;  %v1437_v12 = vmul.f32 0.01, %v925_v9  ;;  %vm1182_vm14 = vcmp.gt.f32.partialorder %v926_v62, 0.0 }
 0x184   :  { %1948 = vst [vmem:[%s3660_s2 + $0x7e0] sm:$0xff] %v1692_v7  ;;  %v1438_v19 = vmul.f32 0.01, %v926_v62  ;;  %vm1183_vm15 = vcmp.gt.f32.partialorder %v927_v0, 0.0  ;;  %v1439_v10 = vmul.f32 0.01, %v927_v0 }
 0x185   :  { %v1693_v1 = vsel %vm1181_vm13, %v925_v9, %v1437_v12 }
 0x186   :  { %1949 = vst [vmem:[%s3660_s2 + $0x7e8] sm:$0xff] %v1693_v1  ;;  %v1694_v16 = vsel %vm1182_vm14, %v926_v62, %v1438_v19  ;;  %v1695_v20 = vsel %vm1183_vm15, %v927_v0, %v1439_v10 }
 0x187   :  { %1950 = vst [vmem:[%s3660_s2 + $0x7f0] sm:$0xff] %v1694_v16 }
 0x188   :  { %1951 = vst [vmem:[%s3660_s2 + $0x7f8] sm:$0xff] %v1695_v20 }

</bundles_post_ra>
